<compile_context>
chip_gen: v7x
topology: tpu7x:2x2x1
jax: 0.10.0
libtpu: 0.0.40
codegen_flags: <defaults>
</compile_context>

<pallas_src>
import functools

import jax
import jax.numpy as jnp
from jax.experimental import pallas as pl
from jax.experimental.pallas import tpu as pltpu


def attention_kernel(z_ref, w1bd_ref, b1_ref, w2bd_ref, packed_ref,
                     *, num_views, feat_dim):
    z = z_ref[...]                                       # (TN, M*D) f32, lane-dense

    # --- batched per-view MLP: one big MXU push, bf16 operands / f32 accumulate ---
    z_bf = z.astype(jnp.bfloat16)
    h = jnp.dot(z_bf, w1bd_ref[...], preferred_element_type=jnp.float32)   # (TN, M*H)
    h = jnp.maximum(h + b1_ref[...], 0.0)                                  # bias + ReLU (f32)
    w = jnp.dot(h.astype(jnp.bfloat16), w2bd_ref[...],
                preferred_element_type=jnp.float32)                        # (TN, M)

    # --- softmax over the view axis (dim=1), exact divide in f32 ---
    w_max = jnp.max(w, axis=1, keepdims=True)
    e = jnp.exp(w - w_max)
    beta = e / jnp.sum(e, axis=1, keepdims=True)

    # --- weighted sum over views (static lane slices of the collapsed z, f32) ---
    out = beta[:, 0:1] * z[:, 0:feat_dim]
    for m in range(1, num_views):
        out = out + beta[:, m:m + 1] * z[:, m * feat_dim:(m + 1) * feat_dim]

    # --- single packed output block: lanes [0, D) = out, [D, D+M) = beta ---
    packed_ref[:, 0:feat_dim] = out.astype(packed_ref.dtype)
    packed_ref[:, feat_dim:feat_dim + num_views] = beta.astype(packed_ref.dtype)


def _round_up(x, m):
    return ((x + m - 1) // m) * m


def attention_forward(z, w1, b1, w2, *, tile_n=2048):
    """z: (N, M, D) float32. Returns (out (N, D), beta (N, M, 1))."""
    n, num_views, d = z.shape
    hid = w1.shape[1]
    md, mh = num_views * d, num_views * hid

    # ---- node tile: as large as possible (mem-bound op); no forced multi-step
    #      grid, no wrapper-side padding of z (ragged last block handled by Pallas).
    tn = min(_round_up(tile_n, 8), _round_up(n, 8))
    grid = (pl.cdiv(n, tn),)

    # ---- lane-collapsed z layout (N, M*D) ----
    z2 = z.reshape(n, md)

    # ---- batched-view weights (block-diagonal, built once, tiny), bf16 for the MXU ----
    w1bd = jax.scipy.linalg.block_diag(*([w1] * num_views)).astype(jnp.bfloat16)   # (M*D, M*H)
    w2bd = jax.scipy.linalg.block_diag(
        *([w2.reshape(hid, 1)] * num_views)).astype(jnp.bfloat16)                  # (M*H, M)
    b1t = jnp.tile(b1.reshape(1, hid), (1, num_views)).astype(jnp.float32)         # (1, M*H)

    # ---- VMEM budget: double-buffered tiles + constants + in-kernel temporaries,
    #      with headroom; capped at 48 MiB (leaves margin under v7x's 64 MiB). ----
    need = (2 * tn * md * 4                        # z tiles (f32, double-buffered)
            + 2 * tn * (d + num_views) * 4         # packed output tiles (f32)
            + 2 * (md * mh + mh * num_views) * 2   # bf16 block-diag weights
            + mh * 4                               # bias
            + tn * mh * 4 + tn * md * 2)           # h / z_bf temporaries
    vmem_limit = int(min(48 * 1024 * 1024, max(4 * need, 16 * 1024 * 1024)))

    kernel = functools.partial(attention_kernel, num_views=num_views, feat_dim=d)

    packed = pl.pallas_call(
        kernel,
        out_shape=jax.ShapeDtypeStruct((n, d + num_views), z.dtype),
        grid_spec=pltpu.PrefetchScalarGridSpec(
            num_scalar_prefetch=0,
            grid=grid,
            in_specs=[
                pl.BlockSpec((tn, md), lambda i: (i, 0)),          # z tile (lane-dense)
                pl.BlockSpec((md, mh), lambda i: (0, 0)),          # block-diag W1 (bf16)
                pl.BlockSpec((1, mh), lambda i: (0, 0)),           # tiled b1 (f32)
                pl.BlockSpec((mh, num_views), lambda i: (0, 0)),   # block-diag w2 (bf16)
            ],
            out_specs=pl.BlockSpec((tn, d + num_views), lambda i: (i, 0)),
        ),
        compiler_params=pltpu.CompilerParams(
            dimension_semantics=("parallel",),
            vmem_limit_bytes=vmem_limit,
        ),
    )(z2, w1bd, b1t, w2bd)

    out = packed[:, :d]
    beta = packed[:, d:].reshape(n, num_views, 1)
    return out, beta


def attention_reference(z, w1, b1, w2):
    """Pure-JAX f32 reference matching the PyTorch forward."""
    h = jnp.maximum(jnp.einsum("nmd,dh->nmh", z, w1) + b1, 0.0)
    w = jnp.einsum("nmh,h->nm", h, w2.reshape(-1))[..., None]   # (N, M, 1)
    beta = jax.nn.softmax(w, axis=1)
    out = (beta * z).sum(axis=1)
    return out, beta


if __name__ == "__main__":
    key = jax.random.PRNGKey(0)
    k_z, k_w1, k_b1, k_w2 = jax.random.split(key, 4)

    # nodes, views, in_size, hidden_size (module default hidden=64)
    N, M, D, H = 300, 4, 32, 64

    z = jax.random.normal(k_z, (N, M, D), dtype=jnp.float32)
    # deterministic synthetic parameters (roughly PyTorch-Linear-scale init)
    w1 = jax.random.normal(k_w1, (D, H), dtype=jnp.float32) * (1.0 / jnp.sqrt(D))
    b1 = jax.random.normal(k_b1, (H,), dtype=jnp.float32) * 0.01
    w2 = jax.random.normal(k_w2, (H, 1), dtype=jnp.float32) * (1.0 / jnp.sqrt(H))

    out, beta = attention_forward(z, w1, b1, w2)
    out = jax.block_until_ready(out)
    beta = jax.block_until_ready(beta)

    out_ref, beta_ref = attention_reference(z, w1, b1, w2)
    assert out.shape == (N, D) and beta.shape == (N, M, 1)
    # bf16 MXU operands vs f32 reference -> a few-1e-3 relative error budget
    assert jnp.allclose(out, out_ref, atol=2e-2, rtol=2e-2)
    assert jnp.allclose(beta, beta_ref, atol=2e-2, rtol=2e-2)

    print("KERNEL_OK")
</pallas_src>

<mosaic_0001>
module attributes {stable_mosaic.version = 11 : i64} {
  func.func @attention_kernel(%arg0: i32, %arg1: memref<304x128xf32, #tpu.memory_space<vmem>>, %arg2: memref<128x256xbf16, #tpu.memory_space<vmem>>, %arg3: memref<1x256xf32, #tpu.memory_space<vmem>>, %arg4: memref<256x4xbf16, #tpu.memory_space<vmem>>, %arg5: memref<304x36xf32, #tpu.memory_space<vmem>>) attributes {dimension_semantics = [#tpu.dimension_semantics<parallel>], iteration_bounds = array<i64: 1>, scalar_prefetch = 0 : i64, scratch_operands = 0 : i64, tpu.core_type = #tpu.core_type<tc>, window_params = [{transform_indices = @transform_0, window_bounds = array<i64: 304, 128>}, {pipeline_mode = #tpu.pipeline_mode<synchronous>, transform_indices = @transform_1, window_bounds = array<i64: 128, 256>}, {pipeline_mode = #tpu.pipeline_mode<synchronous>, transform_indices = @transform_2, window_bounds = array<i64: 1, 256>}, {pipeline_mode = #tpu.pipeline_mode<synchronous>, transform_indices = @transform_3, window_bounds = array<i64: 256, 4>}, {transform_indices = @transform_4, window_bounds = array<i64: 304, 36>}]} {
    %c0 = arith.constant 0 : index
    %c0_0 = arith.constant 0 : index
    %0 = vector.load %arg1[%c0, %c0_0] : memref<304x128xf32, #tpu.memory_space<vmem>>, vector<304x128xf32>
    %1 = arith.truncf %0 : vector<304x128xf32> to vector<304x128xbf16>
    %c0_1 = arith.constant 0 : index
    %c0_2 = arith.constant 0 : index
    %2 = vector.load %arg2[%c0_1, %c0_2] : memref<128x256xbf16, #tpu.memory_space<vmem>>, vector<128x256xbf16>
    %cst = arith.constant dense<0.000000e+00> : vector<304x256xf32>
    %3 = tpu.matmul %1, %2, %cst {dimension_numbers = #tpu.dot_dimension_numbers<[1], [0], [0], [1], [0, 0, 1, 1], [], []>} : vector<304x128xbf16>, vector<128x256xbf16>, vector<304x256xf32> -> vector<304x256xf32>
    %c0_3 = arith.constant 0 : index
    %c0_4 = arith.constant 0 : index
    %4 = vector.load %arg3[%c0_3, %c0_4] : memref<1x256xf32, #tpu.memory_space<vmem>>, vector<1x256xf32>
    %5 = vector.broadcast %4 : vector<1x256xf32> to vector<304x256xf32>
    %6 = arith.addf %3, %5 : vector<304x256xf32>
    %cst_5 = arith.constant 0.000000e+00 : f32
    %7 = vector.broadcast %cst_5 : f32 to vector<304x256xf32>
    %8 = arith.maximumf %6, %7 : vector<304x256xf32>
    %9 = arith.truncf %8 : vector<304x256xf32> to vector<304x256xbf16>
    %c0_6 = arith.constant 0 : index
    %c0_7 = arith.constant 0 : index
    %10 = vector.load %arg4[%c0_6, %c0_7] : memref<256x4xbf16, #tpu.memory_space<vmem>>, vector<256x4xbf16>
    %cst_8 = arith.constant dense<0.000000e+00> : vector<304x4xf32>
    %11 = tpu.matmul %9, %10, %cst_8 {dimension_numbers = #tpu.dot_dimension_numbers<[1], [0], [0], [1], [0, 0, 1, 1], [], []>} : vector<304x256xbf16>, vector<256x4xbf16>, vector<304x4xf32> -> vector<304x4xf32>
    %cst_9 = arith.constant dense<0xFF800000> : vector<304xf32>
    %12 = vector.multi_reduction <maximumf>, %11, %cst_9 [1] : vector<304x4xf32> to vector<304xf32>
    %13 = vector.shape_cast %12 : vector<304xf32> to vector<304x1xf32>
    %14 = vector.broadcast %13 : vector<304x1xf32> to vector<304x4xf32>
    %15 = arith.subf %11, %14 : vector<304x4xf32>
    %16 = math.exp %15 : vector<304x4xf32>
    %cst_10 = arith.constant dense<0.000000e+00> : vector<304xf32>
    %17 = vector.multi_reduction <add>, %16, %cst_10 [1] : vector<304x4xf32> to vector<304xf32>
    %18 = vector.shape_cast %17 : vector<304xf32> to vector<304x1xf32>
    %19 = vector.broadcast %18 : vector<304x1xf32> to vector<304x4xf32>
    %20 = arith.divf %16, %19 : vector<304x4xf32>
    %21 = vector.extract_strided_slice %20 {offsets = [0, 0], sizes = [304, 1], strides = [1, 1]} : vector<304x4xf32> to vector<304x1xf32>
    %22 = vector.extract_strided_slice %0 {offsets = [0, 0], sizes = [304, 32], strides = [1, 1]} : vector<304x128xf32> to vector<304x32xf32>
    %23 = vector.broadcast %21 : vector<304x1xf32> to vector<304x32xf32>
    %24 = arith.mulf %23, %22 : vector<304x32xf32>
    %25 = vector.extract_strided_slice %20 {offsets = [0, 1], sizes = [304, 1], strides = [1, 1]} : vector<304x4xf32> to vector<304x1xf32>
    %26 = vector.extract_strided_slice %0 {offsets = [0, 32], sizes = [304, 32], strides = [1, 1]} : vector<304x128xf32> to vector<304x32xf32>
    %27 = vector.broadcast %25 : vector<304x1xf32> to vector<304x32xf32>
    %28 = arith.mulf %27, %26 : vector<304x32xf32>
    %29 = arith.addf %24, %28 : vector<304x32xf32>
    %30 = vector.extract_strided_slice %20 {offsets = [0, 2], sizes = [304, 1], strides = [1, 1]} : vector<304x4xf32> to vector<304x1xf32>
    %31 = vector.extract_strided_slice %0 {offsets = [0, 64], sizes = [304, 32], strides = [1, 1]} : vector<304x128xf32> to vector<304x32xf32>
    %32 = vector.broadcast %30 : vector<304x1xf32> to vector<304x32xf32>
    %33 = arith.mulf %32, %31 : vector<304x32xf32>
    %34 = arith.addf %29, %33 : vector<304x32xf32>
    %35 = vector.extract_strided_slice %20 {offsets = [0, 3], sizes = [304, 1], strides = [1, 1]} : vector<304x4xf32> to vector<304x1xf32>
    %36 = vector.extract_strided_slice %0 {offsets = [0, 96], sizes = [304, 32], strides = [1, 1]} : vector<304x128xf32> to vector<304x32xf32>
    %37 = vector.broadcast %35 : vector<304x1xf32> to vector<304x32xf32>
    %38 = arith.mulf %37, %36 : vector<304x32xf32>
    %39 = arith.addf %34, %38 : vector<304x32xf32>
    %c0_11 = arith.constant 0 : index
    %c0_12 = arith.constant 0 : index
    %40 = vector.load %arg5[%c0_11, %c0_12] : memref<304x36xf32, #tpu.memory_space<vmem>>, vector<304x32xf32>
    tpu.vector_store %arg5[%c0_11, %c0_12], %39 {strides = array<i32>} : memref<304x36xf32, #tpu.memory_space<vmem>>, vector<304x32xf32>,
    %c0_13 = arith.constant 0 : index
    %c32 = arith.constant 32 : index
    %41 = vector.load %arg5[%c0_13, %c32] : memref<304x36xf32, #tpu.memory_space<vmem>>, vector<304x4xf32>
    tpu.vector_store %arg5[%c0_13, %c32], %20 {strides = array<i32>} : memref<304x36xf32, #tpu.memory_space<vmem>>, vector<304x4xf32>,
    return
  }
  func.func @transform_0(%arg0: i32) -> (i32, i32) {
    %c0_i32 = arith.constant 0 : i32
    %c0_i32_0 = arith.constant 0 : i32
    return %arg0, %c0_i32 : i32, i32
  }
  func.func @transform_1(%arg0: i32) -> (i32, i32) {
    %c0_i32 = arith.constant 0 : i32
    %c0_i32_0 = arith.constant 0 : i32
    %c0_i32_1 = arith.constant 0 : i32
    return %c0_i32, %c0_i32_0 : i32, i32
  }
  func.func @transform_2(%arg0: i32) -> (i32, i32) {
    %c0_i32 = arith.constant 0 : i32
    %c0_i32_0 = arith.constant 0 : i32
    %c0_i32_1 = arith.constant 0 : i32
    return %c0_i32, %c0_i32_0 : i32, i32
  }
  func.func @transform_3(%arg0: i32) -> (i32, i32) {
    %c0_i32 = arith.constant 0 : i32
    %c0_i32_0 = arith.constant 0 : i32
    %c0_i32_1 = arith.constant 0 : i32
    return %c0_i32, %c0_i32_0 : i32, i32
  }
  func.func @transform_4(%arg0: i32) -> (i32, i32) {
    %c0_i32 = arith.constant 0 : i32
    %c0_i32_0 = arith.constant 0 : i32
    return %arg0, %c0_i32 : i32, i32
  }
}

</mosaic_0001>

<bundles_post_ra>
// kernel: tpu_custom_call.1
= control target key start
LH: loop header
LB: loop body
LE: loop exit
PB: predicated region body
PF: predicated region fallthrough
CT: control target
= control target key end

     0   :  { %9 = vsyncpa [#allocation3], 0  ;;  %s3312_s15 = smov [#allocation2]   ;;  %s5785_s0 = inlined_call_operand.hbm [shape: f32[300,128], index: 0, kind: input, shape index: {}]   ;;  %s5786_s1 = inlined_call_operand.vmem [shape: bf16[128,256], index: 1, kind: input, shape index: {}]   ;;  %s5787_s2 = inlined_call_operand.vmem [shape: f32[1,256], index: 2, kind: input, shape index: {}]   ;;  %s5788_s3 = inlined_call_operand.vmem [shape: bf16[256,4], index: 3, kind: input, shape index: {}]   ;;  %s5789_s4 = inlined_call_operand.vmem [shape: f32[300,36], index: 4, kind: output, shape index: {}]  }
   0x1   :  { %s15_s16 = sshll.u32 %s3312_s15, 4  ;;  %s3288_s19 = scalar_lea.hbm %s5785_s0, 4864  ;;  %s16_s16 = int_to_ptr.vmem [resolvable:$true] %s15_s16 }
   0x2   :  { %p3289_p0 = scmp.ne.s32.totalorder %s5785_s0, %s3288_s19  ;;  %p3292_p1 = scmp.lt.u32.totalorder %s3288_s19, %s5785_s0 }
   0x4   :  { %p3294_p2 = pnand %p3292_p1, %p3289_p0 }
   0x6   :  { %3297 = shalt.err (!%p3294_p2)
}
   0x7   :  { %s3298_s24 = scalar_lea.vmem %s16_s16, 4864  ;;  %p3303_p4 = scmp.lt.s32.totalorder %s16_s16, %s16_s16 }
   0x8   :  { %p3299_p3 = scmp.ne.s32.totalorder %s16_s16, %s3298_s24  ;;  %p3304_p5 = scmp.lt.s32.totalorder %s3298_s24, %s3298_s24 }
   0xa   :  { %p3305_p6 = por %p3304_p5, %p3303_p4 }
   0xc   :  { %p3306_p7 = pnand %p3305_p6, %p3299_p3 }
   0xe   :  { %3309 = shalt.err (!%p3306_p7)
}
   0xf   :  { %s3313_s25 = smov 128   ;;  %s3314_s26 = smov 8  }
  0x10   :  { %21 = dma.hbm_to_vmem [thread:$0]  %s5785_s0, 4864, %s16_s16, [#allocation3], %s3313_s25, %s3313_s25, %s3314_s26  }
  0x11   :  { %3310 = dma.done.wait [#allocation3], 4864  }
  0x12   :  { %3311 = vsyncadd [#allocation3], 4294962432  ;;  %v5792_v0 = vmov 0   ;;  %v3058_v1 = vld [vmem:[%s5786_s1 + $0x4] ss:$8 sps:$4 sm:$0xff]   ;;  %v3084_v18 = vld [vmem:[%s5788_s3 + $0x10] sm:$0xff]  }
  0x13   :  { %229 = vmatprep.mubr.bf16.mxu0 %v5792_v0  ;;  %2863 = vmatprep.subr.bf16.mxu1 %v5792_v0  ;;  %v3060_v2 = vld [vmem:[%s5786_s1] ss:$8 sps:$4 sm:$0xff]   ;;  %v3061_v3 = vld [vmem:[%s5786_s1 + $0x14] ss:$8 sps:$4 sm:$0xff]   ;;  %v3063_v4 = vld [vmem:[%s5786_s1 + $0x10] ss:$8 sps:$4 sm:$0xff]  }
  0x14   :  { %2905 = vset.pattern.permute.xlu0 %v5792_v0  ;;  %197 = vmatprep.subr.bf16.mxu0 %v3058_v1  ;;  %v3064_v5 = vld [vmem:[%s5786_s1 + $0x24] ss:$8 sps:$4 sm:$0xff]   ;;  %v3066_v6 = vld [vmem:[%s5786_s1 + $0x20] ss:$8 sps:$4 sm:$0xff]   ;;  %v3067_v7 = vld [vmem:[%s5786_s1 + $0x34] ss:$8 sps:$4 sm:$0xff]  }
  0x15   :  { %198 = vmatpush1.bf16.msra.mxu0 %v3060_v2  ;;  %v3069_v8 = vld [vmem:[%s5786_s1 + $0x30] ss:$8 sps:$4 sm:$0xff]   ;;  %v3070_v9 = vld [vmem:[%s5786_s1 + $0x44] ss:$8 sps:$4 sm:$0xff]   ;;  %v3072_v10 = vld [vmem:[%s5786_s1 + $0x40] ss:$8 sps:$4 sm:$0xff]  }
  0x16   :  { %199 = vmatprep.subr.bf16.mxu0 %v3061_v3  ;;  %v3073_v11 = vld [vmem:[%s5786_s1 + $0x54] ss:$8 sps:$4 sm:$0xff]   ;;  %v3082_v12 = vld [vmem:[%s5788_s3] sm:$0xff]   ;;  %v3075_v13 = vld [vmem:[%s5786_s1 + $0x50] ss:$8 sps:$4 sm:$0xff]   ;;  %vm847_vm0 = vcmask 31744  }
  0x17   :  { %v3076_v14 = vld [vmem:[%s5786_s1 + $0x64] ss:$8 sps:$4 sm:$0xff]   ;;  %2879 = vmatpush1.bf16.msra.mxu1 %v3082_v12  ;;  %v3078_v16 = vld [vmem:[%s5786_s1 + $0x60] ss:$8 sps:$4 sm:$0xff]   ;;  %v3079_v17 = vld [vmem:[%s5786_s1 + $0x74] ss:$8 sps:$4 sm:$0xff]  }
  0x18   :  { %2864 = vmatprep.subr.bf16.mxu1 %v5792_v0  ;;  %v3083_v15 = vld [vmem:[%s5788_s3 + $0x8] sm:$0xff]   ;;  %v3081_v19 = vld [vmem:[%s5786_s1 + $0x70] ss:$8 sps:$4 sm:$0xff]   ;;  %v32_v20 = vld [vmem:[#allocation2] sm:$0xff]  ;;  %s3320_s12 = smov 96   ;;  %s3321_s13 = smov 64  }
  0x19   :  { %200 = vmatpush1.bf16.msra.mxu0 %v3063_v4  ;;  %v33_v21 = vld [vmem:[#allocation2 + $0x8] sm:$0xff]  ;;  %v3085_v22 = vld [vmem:[%s5788_s3 + $0x18] sm:$0xff]   ;;  %v3086_v24 = vld [vmem:[%s5788_s3 + $0x20] sm:$0xff]   ;;  %vm2634_vm1 = vcmask 261120   ;;  %vm2787_vm2 = vcmask 294144  }
  0x1a   :  { %201 = vmatprep.subr.bf16.mxu0 %v3064_v5  ;;  %v70_v23 = vpack.c.bf16 %v33_v21, %v32_v20  ;;  %v34_v25 = vld [vmem:[#allocation2 + $0x10] sm:$0xff]  ;;  %v35_v26 = vld [vmem:[#allocation2 + $0x18] sm:$0xff]  ;;  %v3087_v28 = vld [vmem:[%s5788_s3 + $0x28] sm:$0xff]  }
  0x1b   :  { %2880 = vmatpush1.bf16.msra.mxu1 %v3083_v15  ;;  %v71_v27 = vpack.c.bf16 %v35_v26, %v34_v25  ;;  %v3088_v29 = vld [vmem:[%s5788_s3 + $0x30] sm:$0xff]   ;;  %v36_v30 = vld [vmem:[#allocation2 + $0x20] sm:$0xff]  ;;  %v37_v31 = vld [vmem:[#allocation2 + $0x28] sm:$0xff] }
  0x1c   :  { %2865 = vmatprep.subr.bf16.mxu1 %v5792_v0  ;;  %v72_v32 = vpack.c.bf16 %v37_v31, %v36_v30  ;;  %v3089_v33 = vld [vmem:[%s5788_s3 + $0x38] sm:$0xff]   ;;  %v38_v34 = vld [vmem:[#allocation2 + $0x30] sm:$0xff]  ;;  %v3090_v37 = vld [vmem:[%s5788_s3 + $0x40] sm:$0xff]  }
  0x1d   :  { %202 = vmatpush1.bf16.msra.mxu0 %v3066_v6  ;;  %v39_v35 = vld [vmem:[#allocation2 + $0x38] sm:$0xff]  ;;  %v3091_v38 = vld [vmem:[%s5788_s3 + $0x48] sm:$0xff]   ;;  %v40_v39 = vld [vmem:[#allocation2 + $0x40] sm:$0xff] }
  0x1e   :  { %203 = vmatprep.subr.bf16.mxu0 %v3067_v7  ;;  %v73_v36 = vpack.c.bf16 %v39_v35, %v38_v34  ;;  %v41_v40 = vld [vmem:[#allocation2 + $0x48] sm:$0xff]  ;;  %v3092_v42 = vld [vmem:[%s5788_s3 + $0x50] sm:$0xff]   ;;  %v3093_v43 = vld [vmem:[%s5788_s3 + $0x58] sm:$0xff]  }
  0x1f   :  { %2881 = vmatpush1.bf16.msra.mxu1 %v3084_v18  ;;  %v74_v41 = vpack.c.bf16 %v41_v40, %v40_v39  ;;  %v42_v44 = vld [vmem:[#allocation2 + $0x50] sm:$0xff]  ;;  %v43_v45 = vld [vmem:[#allocation2 + $0x58] sm:$0xff]  ;;  %v3094_v47 = vld [vmem:[%s5788_s3 + $0x60] sm:$0xff]  }
  0x20   :  { %2866 = vmatprep.subr.bf16.mxu1 %v5792_v0  ;;  %v75_v46 = vpack.c.bf16 %v43_v45, %v42_v44  ;;  %v3095_v48 = vld [vmem:[%s5788_s3 + $0x68] sm:$0xff]   ;;  %v44_v49 = vld [vmem:[#allocation2 + $0x60] sm:$0xff]  ;;  %v46_v52 = vld [vmem:[#allocation2 + $0x70] sm:$0xff] }
  0x21   :  { %204 = vmatpush1.bf16.msra.mxu0 %v3069_v8  ;;  %v45_v50 = vld [vmem:[#allocation2 + $0x68] sm:$0xff]  ;;  %v47_v53 = vld [vmem:[#allocation2 + $0x78] sm:$0xff]  ;;  %v48_v55 = vld [vmem:[#allocation2 + $0x80] sm:$0xff] }
  0x22   :  { %205 = vmatprep.subr.bf16.mxu0 %v3070_v9  ;;  %v76_v51 = vpack.c.bf16 %v45_v50, %v44_v49  ;;  %v77_v54 = vpack.c.bf16 %v47_v53, %v46_v52  ;;  %v49_v56 = vld [vmem:[#allocation2 + $0x88] sm:$0xff]  ;;  %v50_v58 = vld [vmem:[#allocation2 + $0x90] sm:$0xff]  ;;  %v51_v59 = vld [vmem:[#allocation2 + $0x98] sm:$0xff] }
  0x23   :  { %2882 = vmatpush1.bf16.msra.mxu1 %v3085_v22  ;;  %v78_v57 = vpack.c.bf16 %v49_v56, %v48_v55  ;;  %v79_v60 = vpack.c.bf16 %v51_v59, %v50_v58  ;;  %v52_v61 = vld [vmem:[#allocation2 + $0xa0] sm:$0xff]  ;;  %v53_v62 = vld [vmem:[#allocation2 + $0xa8] sm:$0xff]  ;;  %v54_v1 = vld [vmem:[#allocation2 + $0xb0] sm:$0xff] }
  0x24   :  { %2867 = vmatprep.subr.bf16.mxu1 %v5792_v0  ;;  %v80_v63 = vpack.c.bf16 %v53_v62, %v52_v61  ;;  %v55_v2 = vld [vmem:[#allocation2 + $0xb8] sm:$0xff]  ;;  %v3096_v4 = vld [vmem:[%s5788_s3 + $0x70] sm:$0xff]   ;;  %v56_v5 = vld [vmem:[#allocation2 + $0xc0] sm:$0xff] }
  0x25   :  { %206 = vmatpush1.bf16.msra.mxu0 %v3072_v10  ;;  %v81_v3 = vpack.c.bf16 %v55_v2, %v54_v1  ;;  %v57_v6 = vld [vmem:[#allocation2 + $0xc8] sm:$0xff]  ;;  %v3097_v7 = vld [vmem:[%s5788_s3 + $0x78] sm:$0xff]   ;;  %v58_v9 = vld [vmem:[#allocation2 + $0xd0] sm:$0xff] }
  0x26   :  { %207 = vmatprep.subr.bf16.mxu0 %v3073_v11  ;;  %v82_v8 = vpack.c.bf16 %v57_v6, %v56_v5  ;;  %v59_v10 = vld [vmem:[#allocation2 + $0xd8] sm:$0xff]  ;;  %v66_v21 = vld [vmem:[#allocation2 + $0x110] sm:$0xff]  ;;  %v69_v25 = vld [vmem:[#allocation2 + $0x128] sm:$0xff] }
  0x27   :  { %2883 = vmatpush1.bf16.msra.mxu1 %v3086_v24  ;;  %v83_v11 = vpack.c.bf16 %v59_v10, %v58_v9  ;;  %v105_v30 = vld [vmem:[%s5787_s2] sm:$0x3]  ;;  %s3319_s2 = smov 32  }
  0x28   :  { %2868 = vmatprep.subr.bf16.mxu1 %v5792_v0 }
  0x29   :  { %208 = vmatpush1.bf16.msra.mxu0 %v3075_v13  ;;  %v61_v13 = vld [vmem:[#allocation2 + $0xe8] sm:$0xff] }
  0x2a   :  { %209 = vmatprep.subr.bf16.mxu0 %v3076_v14 }
  0x2b   :  { %2884 = vmatpush1.bf16.msra.mxu1 %v3087_v28 }
  0x2c   :  { %2869 = vmatprep.subr.bf16.mxu1 %v5792_v0 }
  0x2d   :  { %210 = vmatpush1.bf16.msra.mxu0 %v3078_v16  ;;  %v63_v16 = vld [vmem:[#allocation2 + $0xf8] sm:$0xff] }
  0x2e   :  { %211 = vmatprep.subr.bf16.mxu0 %v3079_v17 }
  0x2f   :  { %2885 = vmatpush1.bf16.msra.mxu1 %v3088_v29 }
  0x30   :  { %2870 = vmatprep.subr.bf16.mxu1 %v5792_v0 }
  0x31   :  { %212 = vmatpush1.bf16.msra.mxu0 %v3081_v19  ;;  %v65_v19 = vld [vmem:[#allocation2 + $0x108] sm:$0xff] }
  0x32   :  { %662 = vmatprep.subr.bf16.mxu0 %v5792_v0 }
  0x33   :  { %2886 = vmatpush1.bf16.msra.mxu1 %v3089_v33 }
  0x34   :  { %230 = vmatmul.mubr.bf16.vlgmr.msra.gmra.mrb[0].mxu0 %v70_v23  ;;  %2871 = vmatprep.subr.bf16.mxu1 %v5792_v0 }
  0x35   :  { %239 = vmatprep.mubr.bf16.mxu0 %v5792_v0  ;;  %663 = vmatpush1.bf16.msra.mxu0 %v3082_v12  ;;  %v60_v12 = vld [vmem:[#allocation2 + $0xe0] sm:$0xff] }
  0x36   :  { %664 = vmatprep.subr.bf16.mxu0 %v5792_v0  ;;  %v84_v14 = vpack.c.bf16 %v61_v13, %v60_v12 }
  0x37   :  { %2887 = vmatpush1.bf16.msra.mxu1 %v3090_v37 }
  0x38   :  { %2872 = vmatprep.subr.bf16.mxu1 %v5792_v0 }
  0x39   :  { %665 = vmatpush1.bf16.msra.mxu0 %v3083_v15  ;;  %v62_v15 = vld [vmem:[#allocation2 + $0xf0] sm:$0xff] }
  0x3a   :  { %666 = vmatprep.subr.bf16.mxu0 %v5792_v0  ;;  %v85_v17 = vpack.c.bf16 %v63_v16, %v62_v15 }
  0x3b   :  { %2888 = vmatpush1.bf16.msra.mxu1 %v3091_v38 }
  0x3c   :  { %240 = vmatmul.mubr.bf16.gmra.mrb[4].mxu0 %v71_v27  ;;  %2873 = vmatprep.subr.bf16.mxu1 %v5792_v0  ;;  %v107_v27 = vlaneseq }
  0x3d   :  { %249 = vmatprep.mubr.bf16.mxu0 %v5792_v0  ;;  %667 = vmatpush1.bf16.msra.mxu0 %v3084_v18  ;;  %v64_v18 = vld [vmem:[#allocation2 + $0x100] sm:$0xff] }
  0x3e   :  { %668 = vmatprep.subr.bf16.mxu0 %v5792_v0  ;;  %v86_v20 = vpack.c.bf16 %v65_v19, %v64_v18 }
  0x3f   :  { %2889 = vmatpush1.bf16.msra.mxu1 %v3092_v42 }
  0x40   :  { %2874 = vmatprep.subr.bf16.mxu1 %v5792_v0 }
  0x41   :  { %669 = vmatpush1.bf16.msra.mxu0 %v3085_v22  ;;  %v67_v22 = vld [vmem:[#allocation2 + $0x118] sm:$0xff] }
  0x42   :  { %670 = vmatprep.subr.bf16.mxu0 %v5792_v0  ;;  %v87_v23 = vpack.c.bf16 %v67_v22, %v66_v21 }
  0x43   :  { %2890 = vmatpush1.bf16.msra.mxu1 %v3093_v43 }
  0x44   :  { %250 = vmatmul.mubr.bf16.gmra.mrb[8].mxu0 %v72_v32  ;;  %2875 = vmatprep.subr.bf16.mxu1 %v5792_v0 }
  0x45   :  { %259 = vmatprep.mubr.bf16.mxu0 %v5792_v0  ;;  %671 = vmatpush1.bf16.msra.mxu0 %v3086_v24  ;;  %v68_v24 = vld [vmem:[#allocation2 + $0x120] sm:$0xff] }
  0x46   :  { %672 = vmatprep.subr.bf16.mxu0 %v5792_v0  ;;  %v88_v26 = vpack.c.bf16 %v69_v25, %v68_v24 }
  0x47   :  { %2891 = vmatpush1.bf16.msra.mxu1 %v3094_v47 }
  0x48   :  { %2876 = vmatprep.subr.bf16.mxu1 %v5792_v0 }
  0x49   :  { %673 = vmatpush1.bf16.msra.mxu0 %v3087_v28  ;;  %v108_v28 = vshrl.u32 %v107_v27, 7 }
  0x4a   :  { %674 = vmatprep.subr.bf16.mxu0 %v5792_v0 }
  0x4b   :  { %2892 = vmatpush1.bf16.msra.mxu1 %v3095_v48  ;;  %v113_v31 = vsub.s32 1, %v108_v28 }
  0x4c   :  { %260 = vmatmul.mubr.bf16.gmra.mrb[12].mxu0 %v73_v36  ;;  %2877 = vmatprep.subr.bf16.mxu1 %v5792_v0 }
  0x4d   :  { %269 = vmatprep.mubr.bf16.mxu0 %v5792_v0  ;;  %675 = vmatpush1.bf16.msra.mxu0 %v3088_v29  ;;  %v109_v29 = vsub.s32 0, %v108_v28 }
  0x4e   :  { %676 = vmatprep.subr.bf16.mxu0 %v5792_v0 }
  0x4f   :  { %2893 = vmatpush1.bf16.msra.mxu1 %v3096_v4  ;;  %v3510_v32 = vrot.slane %v105_v30, %v109_v29 }
  0x50   :  { %2878 = vmatprep.subr.bf16.mxu1 %v5792_v0 }
  0x51   :  { %677 = vmatpush1.bf16.msra.mxu0 %v3089_v33  ;;  %v3512_v33 = vrot.slane %v105_v30, %v113_v31 }
  0x52   :  { %678 = vmatprep.subr.bf16.mxu0 %v5792_v0 }
  0x53   :  { %2894 = vmatpush1.bf16.msra.mxu1 %v3097_v7 }
  0x54   :  { %270 = vmatmul.mubr.bf16.gmra.mrb[16].mxu0 %v74_v41 }
  0x55   :  { %279 = vmatprep.mubr.bf16.mxu0 %v5792_v0  ;;  %679 = vmatpush1.bf16.msra.mxu0 %v3090_v37 }
  0x56   :  { %680 = vmatprep.subr.bf16.mxu0 %v5792_v0 }
  0x59   :  { %681 = vmatpush1.bf16.msra.mxu0 %v3091_v38 }
  0x5a   :  { %682 = vmatprep.subr.bf16.mxu0 %v5792_v0 }
  0x5c   :  { %280 = vmatmul.mubr.bf16.gmra.mrb[20].mxu0 %v75_v46 }
  0x5d   :  { %289 = vmatprep.mubr.bf16.mxu0 %v5792_v0  ;;  %683 = vmatpush1.bf16.msra.mxu0 %v3092_v42 }
  0x5e   :  { %684 = vmatprep.subr.bf16.mxu0 %v5792_v0 }
  0x61   :  { %685 = vmatpush1.bf16.msra.mxu0 %v3093_v43 }
  0x62   :  { %686 = vmatprep.subr.bf16.mxu0 %v5792_v0 }
  0x64   :  { %290 = vmatmul.mubr.bf16.gmra.mrb[24].mxu0 %v76_v51 }
  0x65   :  { %299 = vmatprep.mubr.bf16.mxu0 %v5792_v0  ;;  %687 = vmatpush1.bf16.msra.mxu0 %v3094_v47 }
  0x66   :  { %688 = vmatprep.subr.bf16.mxu0 %v5792_v0 }
  0x69   :  { %689 = vmatpush1.bf16.msra.mxu0 %v3095_v48 }
  0x6a   :  { %690 = vmatprep.subr.bf16.mxu0 %v5792_v0 }
  0x6c   :  { %300 = vmatmul.mubr.bf16.gmra.mrb[28].mxu0 %v77_v54 }
  0x6d   :  { %309 = vmatprep.mubr.bf16.mxu0 %v5792_v0  ;;  %691 = vmatpush1.bf16.msra.mxu0 %v3096_v4 }
  0x6e   :  { %692 = vmatprep.subr.bf16.mxu0 %v5792_v0 }
  0x71   :  { %693 = vmatpush1.bf16.msra.mxu0 %v3097_v7 }
  0x74   :  { %310 = vmatmul.mubr.bf16.gmra.mrb[32].mxu0 %v78_v57 }
  0x75   :  { %319 = vmatprep.mubr.bf16.mxu0 %v5792_v0 }
  0x7c   :  { %320 = vmatmul.mubr.bf16.gmra.mrb[36].mxu0 %v79_v60 }
  0x7d   :  { %329 = vmatprep.mubr.bf16.mxu0 %v5792_v0 }
  0x84   :  { %330 = vmatmul.mubr.bf16.gmra.mrb[40].mxu0 %v80_v63 }
  0x85   :  { %339 = vmatprep.mubr.bf16.mxu0 %v5792_v0 }
  0x8c   :  { %340 = vmatmul.mubr.bf16.gmra.mrb[44].mxu0 %v81_v3 }
  0x8d   :  { %349 = vmatprep.mubr.bf16.mxu0 %v5792_v0 }
  0x94   :  { %350 = vmatmul.mubr.bf16.gmra.mrb[48].mxu0 %v82_v8 }
  0x95   :  { %359 = vmatprep.mubr.bf16.mxu0 %v5792_v0 }
  0x9c   :  { %360 = vmatmul.mubr.bf16.gmra.mrb[52].mxu0 %v83_v11 }
  0x9d   :  { %369 = vmatprep.mubr.bf16.mxu0 %v5792_v0 }
  0xa4   :  { %370 = vmatmul.mubr.bf16.gmra.mrb[56].mxu0 %v84_v14 }
  0xa5   :  { %379 = vmatprep.mubr.bf16.mxu0 %v5792_v0 }
  0xac   :  { %380 = vmatmul.mubr.bf16.gmra.mrb[60].mxu0 %v85_v17 }
  0xad   :  { %389 = vmatprep.mubr.bf16.mxu0 %v5792_v0 }
  0xb4   :  { %390 = vmatmul.mubr.bf16.gmra.mrb[64].mxu0 %v86_v20 }
  0xb5   :  { %399 = vmatprep.mubr.bf16.mxu0 %v5792_v0 }
  0xbc   :  { %400 = vmatmul.mubr.bf16.gmra.mrb[68].mxu0 %v87_v23 }
  0xbd   :  { %409 = vmatprep.mubr.bf16.mxu0 %v5792_v0 }
  0xc4   :  { %410 = vmatmul.mubr.bf16.gmra.mrb[72].mxu0 %v88_v26 }
 0x107   :  { %v231_v34 = vpop.f32.mrb[0].mxu0 }
 0x108   :  { %v232_v35 = vadd.f32 %v231_v34, %v3510_v32  ;;  %v233_v36 = vpop.f32.mrb[1].mxu0 }
 0x109   :  { %v234_v37 = vadd.f32 %v233_v36, %v3512_v33  ;;  %v235_v38 = vpop.f32.mrb[2].mxu0 }
 0x10a   :  { %v236_v39 = vadd.f32 %v235_v38, %v3510_v32  ;;  %v237_v40 = vpop.f32.mrb[3].mxu0  ;;  %v420_v42 = vmax.f32 %v232_v35, 0.0 }
 0x10b   :  { %v238_v41 = vadd.f32 %v237_v40, %v3512_v33  ;;  %v421_v44 = vmax.f32 %v234_v37, 0.0 }
 0x10c   :  { %v422_v43 = vmax.f32 %v236_v39, 0.0 }
 0x10d   :  { %v423_v45 = vmax.f32 %v238_v41, 0.0 }
 0x10e   :  { %v496_v46 = vpack.c.bf16 %v422_v43, %v420_v42 }
 0x10f   :  { %v497_v47 = vpack.c.bf16 %v423_v45, %v421_v44  ;;  %v241_v48 = vpop.f32.mrb[4].mxu0 }
 0x110   :  { %v242_v49 = vadd.f32 %v241_v48, %v3510_v32  ;;  %v243_v50 = vpop.f32.mrb[5].mxu0 }
 0x111   :  { %v244_v51 = vadd.f32 %v243_v50, %v3512_v33  ;;  %v245_v52 = vpop.f32.mrb[6].mxu0  ;;  %694 = vmatprep.mubr.bf16.mxu0 %v497_v47 }
 0x112   :  { %v246_v53 = vadd.f32 %v245_v52, %v3510_v32  ;;  %v247_v54 = vpop.f32.mrb[7].mxu0  ;;  %695 = vmatmul.mubr.bf16.vlgmr.msra.gmra.mrb[76].mxu0 %v496_v46  ;;  %v424_v56 = vmax.f32 %v242_v49, 0.0 }
 0x113   :  { %v248_v55 = vadd.f32 %v247_v54, %v3512_v33  ;;  %v425_v58 = vmax.f32 %v244_v51, 0.0 }
 0x114   :  { %v426_v57 = vmax.f32 %v246_v53, 0.0 }
 0x115   :  { %v427_v59 = vmax.f32 %v248_v55, 0.0 }
 0x116   :  { %v498_v60 = vpack.c.bf16 %v426_v57, %v424_v56 }
 0x117   :  { %v499_v61 = vpack.c.bf16 %v427_v59, %v425_v58  ;;  %v251_v62 = vpop.f32.mrb[8].mxu0 }
 0x118   :  { %v252_v63 = vadd.f32 %v251_v62, %v3510_v32  ;;  %v253_v1 = vpop.f32.mrb[9].mxu0 }
 0x119   :  { %v254_v2 = vadd.f32 %v253_v1, %v3512_v33  ;;  %v255_v3 = vpop.f32.mrb[10].mxu0  ;;  %702 = vmatprep.mubr.bf16.mxu0 %v499_v61 }
 0x11a   :  { %v256_v4 = vadd.f32 %v255_v3, %v3510_v32  ;;  %v257_v5 = vpop.f32.mrb[11].mxu0  ;;  %703 = vmatmul.mubr.bf16.gmra.mrb[80].mxu0 %v498_v60  ;;  %v428_v7 = vmax.f32 %v252_v63, 0.0 }
 0x11b   :  { %v258_v6 = vadd.f32 %v257_v5, %v3512_v33  ;;  %v429_v9 = vmax.f32 %v254_v2, 0.0 }
 0x11c   :  { %v430_v8 = vmax.f32 %v256_v4, 0.0 }
 0x11d   :  { %v431_v10 = vmax.f32 %v258_v6, 0.0 }
 0x11e   :  { %v500_v11 = vpack.c.bf16 %v430_v8, %v428_v7 }
 0x11f   :  { %v261_v12 = vpop.f32.mrb[12].mxu0  ;;  %v501_v13 = vpack.c.bf16 %v431_v10, %v429_v9 }
 0x120   :  { %v262_v14 = vadd.f32 %v261_v12, %v3510_v32  ;;  %v263_v15 = vpop.f32.mrb[13].mxu0 }
 0x121   :  { %v264_v16 = vadd.f32 %v263_v15, %v3512_v33  ;;  %v265_v17 = vpop.f32.mrb[14].mxu0  ;;  %710 = vmatprep.mubr.bf16.mxu1 %v501_v13 }
 0x122   :  { %v266_v18 = vadd.f32 %v265_v17, %v3510_v32  ;;  %v267_v19 = vpop.f32.mrb[15].mxu0  ;;  %711 = vmatmul.mubr.bf16.vlgmr.msra.gmra.mrb[0].mxu1 %v500_v11  ;;  %v432_v21 = vmax.f32 %v262_v14, 0.0 }
 0x123   :  { %v268_v20 = vadd.f32 %v267_v19, %v3512_v33  ;;  %v433_v23 = vmax.f32 %v264_v16, 0.0 }
 0x124   :  { %v434_v22 = vmax.f32 %v266_v18, 0.0 }
 0x125   :  { %v435_v24 = vmax.f32 %v268_v20, 0.0 }
 0x126   :  { %v502_v25 = vpack.c.bf16 %v434_v22, %v432_v21 }
 0x127   :  { %v503_v26 = vpack.c.bf16 %v435_v24, %v433_v23  ;;  %v271_v27 = vpop.f32.mrb[16].mxu0 }
 0x128   :  { %v272_v28 = vadd.f32 %v271_v27, %v3510_v32  ;;  %v273_v29 = vpop.f32.mrb[17].mxu0 }
 0x129   :  { %v274_v30 = vadd.f32 %v273_v29, %v3512_v33  ;;  %v275_v31 = vpop.f32.mrb[18].mxu0  ;;  %718 = vmatprep.mubr.bf16.mxu1 %v503_v26 }
 0x12a   :  { %v276_v34 = vadd.f32 %v275_v31, %v3510_v32  ;;  %v277_v35 = vpop.f32.mrb[19].mxu0  ;;  %719 = vmatmul.mubr.bf16.gmra.mrb[4].mxu1 %v502_v25  ;;  %v436_v37 = vmax.f32 %v272_v28, 0.0 }
 0x12b   :  { %v278_v36 = vadd.f32 %v277_v35, %v3512_v33  ;;  %v437_v39 = vmax.f32 %v274_v30, 0.0 }
 0x12c   :  { %v438_v38 = vmax.f32 %v276_v34, 0.0 }
 0x12d   :  { %v439_v40 = vmax.f32 %v278_v36, 0.0 }
 0x12e   :  { %v504_v41 = vpack.c.bf16 %v438_v38, %v436_v37 }
 0x12f   :  { %v505_v42 = vpack.c.bf16 %v439_v40, %v437_v39  ;;  %v281_v43 = vpop.f32.mrb[20].mxu0 }
 0x130   :  { %v282_v44 = vadd.f32 %v281_v43, %v3510_v32  ;;  %v283_v45 = vpop.f32.mrb[21].mxu0 }
 0x131   :  { %v284_v46 = vadd.f32 %v283_v45, %v3512_v33  ;;  %v285_v47 = vpop.f32.mrb[22].mxu0  ;;  %726 = vmatprep.mubr.bf16.mxu1 %v505_v42 }
 0x132   :  { %v286_v48 = vadd.f32 %v285_v47, %v3510_v32  ;;  %v287_v49 = vpop.f32.mrb[23].mxu0  ;;  %727 = vmatmul.mubr.bf16.gmra.mrb[8].mxu1 %v504_v41  ;;  %v440_v51 = vmax.f32 %v282_v44, 0.0 }
 0x133   :  { %v288_v50 = vadd.f32 %v287_v49, %v3512_v33  ;;  %v441_v53 = vmax.f32 %v284_v46, 0.0 }
 0x134   :  { %v442_v52 = vmax.f32 %v286_v48, 0.0 }
 0x135   :  { %v443_v54 = vmax.f32 %v288_v50, 0.0 }
 0x136   :  { %v506_v55 = vpack.c.bf16 %v442_v52, %v440_v51 }
 0x137   :  { %v507_v56 = vpack.c.bf16 %v443_v54, %v441_v53  ;;  %v291_v57 = vpop.f32.mrb[24].mxu0 }
 0x138   :  { %v292_v58 = vadd.f32 %v291_v57, %v3510_v32  ;;  %v293_v59 = vpop.f32.mrb[25].mxu0 }
 0x139   :  { %v294_v60 = vadd.f32 %v293_v59, %v3512_v33  ;;  %v295_v61 = vpop.f32.mrb[26].mxu0  ;;  %734 = vmatprep.mubr.bf16.mxu1 %v507_v56 }
 0x13a   :  { %v296_v62 = vadd.f32 %v295_v61, %v3510_v32  ;;  %v297_v63 = vpop.f32.mrb[27].mxu0  ;;  %735 = vmatmul.mubr.bf16.gmra.mrb[12].mxu1 %v506_v55  ;;  %v444_v2 = vmax.f32 %v292_v58, 0.0 }
 0x13b   :  { %v298_v1 = vadd.f32 %v297_v63, %v3512_v33  ;;  %v445_v4 = vmax.f32 %v294_v60, 0.0 }
 0x13c   :  { %v446_v3 = vmax.f32 %v296_v62, 0.0 }
 0x13d   :  { %v447_v5 = vmax.f32 %v298_v1, 0.0 }
 0x13e   :  { %v508_v6 = vpack.c.bf16 %v446_v3, %v444_v2 }
 0x13f   :  { %v509_v7 = vpack.c.bf16 %v447_v5, %v445_v4  ;;  %v301_v8 = vpop.f32.mrb[28].mxu0 }
 0x140   :  { %v302_v9 = vadd.f32 %v301_v8, %v3510_v32  ;;  %v303_v10 = vpop.f32.mrb[29].mxu0 }
 0x141   :  { %v304_v11 = vadd.f32 %v303_v10, %v3512_v33  ;;  %v305_v12 = vpop.f32.mrb[30].mxu0  ;;  %742 = vmatprep.mubr.bf16.mxu1 %v509_v7 }
 0x142   :  { %v306_v13 = vadd.f32 %v305_v12, %v3510_v32  ;;  %v307_v14 = vpop.f32.mrb[31].mxu0  ;;  %743 = vmatmul.mubr.bf16.gmra.mrb[16].mxu1 %v508_v6  ;;  %v448_v16 = vmax.f32 %v302_v9, 0.0 }
 0x143   :  { %v308_v15 = vadd.f32 %v307_v14, %v3512_v33  ;;  %v449_v18 = vmax.f32 %v304_v11, 0.0 }
 0x144   :  { %v450_v17 = vmax.f32 %v306_v13, 0.0 }
 0x145   :  { %v451_v19 = vmax.f32 %v308_v15, 0.0 }
 0x146   :  { %v510_v20 = vpack.c.bf16 %v450_v17, %v448_v16 }
 0x147   :  { %v511_v21 = vpack.c.bf16 %v451_v19, %v449_v18  ;;  %v311_v22 = vpop.f32.mrb[32].mxu0 }
 0x148   :  { %v312_v23 = vadd.f32 %v311_v22, %v3510_v32  ;;  %v313_v24 = vpop.f32.mrb[33].mxu0 }
 0x149   :  { %v314_v25 = vadd.f32 %v313_v24, %v3512_v33  ;;  %v315_v26 = vpop.f32.mrb[34].mxu0  ;;  %750 = vmatprep.mubr.bf16.mxu1 %v511_v21 }
 0x14a   :  { %v316_v27 = vadd.f32 %v315_v26, %v3510_v32  ;;  %v317_v28 = vpop.f32.mrb[35].mxu0  ;;  %751 = vmatmul.mubr.bf16.gmra.mrb[20].mxu1 %v510_v20  ;;  %v452_v30 = vmax.f32 %v312_v23, 0.0 }
 0x14b   :  { %v318_v29 = vadd.f32 %v317_v28, %v3512_v33  ;;  %v453_v34 = vmax.f32 %v314_v25, 0.0 }
 0x14c   :  { %v454_v31 = vmax.f32 %v316_v27, 0.0 }
 0x14d   :  { %v455_v35 = vmax.f32 %v318_v29, 0.0 }
 0x14e   :  { %v512_v36 = vpack.c.bf16 %v454_v31, %v452_v30 }
 0x14f   :  { %v513_v37 = vpack.c.bf16 %v455_v35, %v453_v34  ;;  %v321_v38 = vpop.f32.mrb[36].mxu0 }
 0x150   :  { %v322_v39 = vadd.f32 %v321_v38, %v3510_v32  ;;  %v323_v40 = vpop.f32.mrb[37].mxu0 }
 0x151   :  { %v324_v41 = vadd.f32 %v323_v40, %v3512_v33  ;;  %v325_v42 = vpop.f32.mrb[38].mxu0  ;;  %758 = vmatprep.mubr.bf16.mxu1 %v513_v37 }
 0x152   :  { %v326_v43 = vadd.f32 %v325_v42, %v3510_v32  ;;  %v327_v44 = vpop.f32.mrb[39].mxu0  ;;  %759 = vmatmul.mubr.bf16.gmra.mrb[24].mxu1 %v512_v36  ;;  %v456_v46 = vmax.f32 %v322_v39, 0.0 }
 0x153   :  { %v328_v45 = vadd.f32 %v327_v44, %v3512_v33  ;;  %v457_v48 = vmax.f32 %v324_v41, 0.0 }
 0x154   :  { %v458_v47 = vmax.f32 %v326_v43, 0.0 }
 0x155   :  { %v459_v49 = vmax.f32 %v328_v45, 0.0 }
 0x156   :  { %v514_v50 = vpack.c.bf16 %v458_v47, %v456_v46 }
 0x157   :  { %v515_v51 = vpack.c.bf16 %v459_v49, %v457_v48  ;;  %v331_v52 = vpop.f32.mrb[40].mxu0 }
 0x158   :  { %v332_v53 = vadd.f32 %v331_v52, %v3510_v32  ;;  %v333_v54 = vpop.f32.mrb[41].mxu0 }
 0x159   :  { %v334_v55 = vadd.f32 %v333_v54, %v3512_v33  ;;  %v335_v56 = vpop.f32.mrb[42].mxu0  ;;  %766 = vmatprep.mubr.bf16.mxu1 %v515_v51 }
 0x15a   :  { %v336_v57 = vadd.f32 %v335_v56, %v3510_v32  ;;  %v337_v58 = vpop.f32.mrb[43].mxu0  ;;  %767 = vmatmul.mubr.bf16.gmra.mrb[28].mxu1 %v514_v50  ;;  %v460_v60 = vmax.f32 %v332_v53, 0.0 }
 0x15b   :  { %v338_v59 = vadd.f32 %v337_v58, %v3512_v33  ;;  %v461_v62 = vmax.f32 %v334_v55, 0.0 }
 0x15c   :  { %v462_v61 = vmax.f32 %v336_v57, 0.0 }
 0x15d   :  { %v463_v63 = vmax.f32 %v338_v59, 0.0 }
 0x15e   :  { %v516_v1 = vpack.c.bf16 %v462_v61, %v460_v60 }
 0x15f   :  { %v517_v2 = vpack.c.bf16 %v463_v63, %v461_v62  ;;  %v341_v3 = vpop.f32.mrb[44].mxu0 }
 0x160   :  { %v342_v4 = vadd.f32 %v341_v3, %v3510_v32  ;;  %v343_v5 = vpop.f32.mrb[45].mxu0 }
 0x161   :  { %v344_v6 = vadd.f32 %v343_v5, %v3512_v33  ;;  %v345_v7 = vpop.f32.mrb[46].mxu0  ;;  %774 = vmatprep.mubr.bf16.mxu1 %v517_v2 }
 0x162   :  { %v346_v8 = vadd.f32 %v345_v7, %v3510_v32  ;;  %v347_v9 = vpop.f32.mrb[47].mxu0  ;;  %775 = vmatmul.mubr.bf16.gmra.mrb[32].mxu1 %v516_v1  ;;  %v464_v11 = vmax.f32 %v342_v4, 0.0 }
 0x163   :  { %v348_v10 = vadd.f32 %v347_v9, %v3512_v33  ;;  %v465_v13 = vmax.f32 %v344_v6, 0.0 }
 0x164   :  { %v466_v12 = vmax.f32 %v346_v8, 0.0 }
 0x165   :  { %v467_v14 = vmax.f32 %v348_v10, 0.0 }
 0x166   :  { %v518_v15 = vpack.c.bf16 %v466_v12, %v464_v11 }
 0x167   :  { %v519_v16 = vpack.c.bf16 %v467_v14, %v465_v13  ;;  %v351_v17 = vpop.f32.mrb[48].mxu0 }
 0x168   :  { %v352_v18 = vadd.f32 %v351_v17, %v3510_v32  ;;  %v353_v19 = vpop.f32.mrb[49].mxu0 }
 0x169   :  { %v354_v20 = vadd.f32 %v353_v19, %v3512_v33  ;;  %v355_v21 = vpop.f32.mrb[50].mxu0  ;;  %782 = vmatprep.mubr.bf16.mxu1 %v519_v16 }
 0x16a   :  { %v356_v22 = vadd.f32 %v355_v21, %v3510_v32  ;;  %v357_v23 = vpop.f32.mrb[51].mxu0  ;;  %783 = vmatmul.mubr.bf16.gmra.mrb[36].mxu1 %v518_v15  ;;  %v468_v25 = vmax.f32 %v352_v18, 0.0 }
 0x16b   :  { %v358_v24 = vadd.f32 %v357_v23, %v3512_v33  ;;  %v469_v27 = vmax.f32 %v354_v20, 0.0 }
 0x16c   :  { %v470_v26 = vmax.f32 %v356_v22, 0.0 }
 0x16d   :  { %v471_v28 = vmax.f32 %v358_v24, 0.0 }
 0x16e   :  { %v520_v29 = vpack.c.bf16 %v470_v26, %v468_v25 }
 0x16f   :  { %v521_v30 = vpack.c.bf16 %v471_v28, %v469_v27  ;;  %v361_v31 = vpop.f32.mrb[52].mxu0 }
 0x170   :  { %v362_v34 = vadd.f32 %v361_v31, %v3510_v32  ;;  %v363_v35 = vpop.f32.mrb[53].mxu0 }
 0x171   :  { %v364_v36 = vadd.f32 %v363_v35, %v3512_v33  ;;  %v365_v37 = vpop.f32.mrb[54].mxu0  ;;  %790 = vmatprep.mubr.bf16.mxu1 %v521_v30 }
 0x172   :  { %v366_v38 = vadd.f32 %v365_v37, %v3510_v32  ;;  %v367_v39 = vpop.f32.mrb[55].mxu0  ;;  %791 = vmatmul.mubr.bf16.gmra.mrb[40].mxu1 %v520_v29  ;;  %v472_v41 = vmax.f32 %v362_v34, 0.0 }
 0x173   :  { %v368_v40 = vadd.f32 %v367_v39, %v3512_v33  ;;  %v473_v43 = vmax.f32 %v364_v36, 0.0 }
 0x174   :  { %v474_v42 = vmax.f32 %v366_v38, 0.0 }
 0x175   :  { %v475_v44 = vmax.f32 %v368_v40, 0.0 }
 0x176   :  { %v522_v45 = vpack.c.bf16 %v474_v42, %v472_v41 }
 0x177   :  { %v523_v46 = vpack.c.bf16 %v475_v44, %v473_v43  ;;  %v371_v47 = vpop.f32.mrb[56].mxu0 }
 0x178   :  { %v372_v48 = vadd.f32 %v371_v47, %v3510_v32  ;;  %v373_v49 = vpop.f32.mrb[57].mxu0 }
 0x179   :  { %v374_v50 = vadd.f32 %v373_v49, %v3512_v33  ;;  %v375_v51 = vpop.f32.mrb[58].mxu0  ;;  %798 = vmatprep.mubr.bf16.mxu1 %v523_v46 }
 0x17a   :  { %v376_v52 = vadd.f32 %v375_v51, %v3510_v32  ;;  %v377_v53 = vpop.f32.mrb[59].mxu0  ;;  %799 = vmatmul.mubr.bf16.gmra.mrb[44].mxu1 %v522_v45  ;;  %v476_v55 = vmax.f32 %v372_v48, 0.0 }
 0x17b   :  { %v378_v54 = vadd.f32 %v377_v53, %v3512_v33  ;;  %v477_v57 = vmax.f32 %v374_v50, 0.0 }
 0x17c   :  { %v478_v56 = vmax.f32 %v376_v52, 0.0 }
 0x17d   :  { %v479_v58 = vmax.f32 %v378_v54, 0.0 }
 0x17e   :  { %v524_v59 = vpack.c.bf16 %v478_v56, %v476_v55 }
 0x17f   :  { %v525_v60 = vpack.c.bf16 %v479_v58, %v477_v57  ;;  %v381_v61 = vpop.f32.mrb[60].mxu0 }
 0x180   :  { %v382_v62 = vadd.f32 %v381_v61, %v3510_v32  ;;  %v383_v63 = vpop.f32.mrb[61].mxu0 }
 0x181   :  { %v384_v1 = vadd.f32 %v383_v63, %v3512_v33  ;;  %v385_v2 = vpop.f32.mrb[62].mxu0  ;;  %806 = vmatprep.mubr.bf16.mxu1 %v525_v60 }
 0x182   :  { %v386_v3 = vadd.f32 %v385_v2, %v3510_v32  ;;  %v387_v4 = vpop.f32.mrb[63].mxu0  ;;  %807 = vmatmul.mubr.bf16.gmra.mrb[48].mxu1 %v524_v59  ;;  %v480_v6 = vmax.f32 %v382_v62, 0.0 }
 0x183   :  { %v388_v5 = vadd.f32 %v387_v4, %v3512_v33  ;;  %v481_v8 = vmax.f32 %v384_v1, 0.0 }
 0x184   :  { %v482_v7 = vmax.f32 %v386_v3, 0.0 }
 0x185   :  { %v483_v9 = vmax.f32 %v388_v5, 0.0 }
 0x186   :  { %v526_v10 = vpack.c.bf16 %v482_v7, %v480_v6 }
 0x187   :  { %v527_v11 = vpack.c.bf16 %v483_v9, %v481_v8  ;;  %v391_v12 = vpop.f32.mrb[64].mxu0 }
 0x188   :  { %v392_v13 = vadd.f32 %v391_v12, %v3510_v32  ;;  %v393_v14 = vpop.f32.mrb[65].mxu0 }
 0x189   :  { %v394_v15 = vadd.f32 %v393_v14, %v3512_v33  ;;  %v395_v16 = vpop.f32.mrb[66].mxu0  ;;  %814 = vmatprep.mubr.bf16.mxu1 %v527_v11 }
 0x18a   :  { %v396_v17 = vadd.f32 %v395_v16, %v3510_v32  ;;  %v397_v18 = vpop.f32.mrb[67].mxu0  ;;  %815 = vmatmul.mubr.bf16.gmra.mrb[52].mxu1 %v526_v10  ;;  %v484_v20 = vmax.f32 %v392_v13, 0.0 }
 0x18b   :  { %v398_v19 = vadd.f32 %v397_v18, %v3512_v33  ;;  %v485_v22 = vmax.f32 %v394_v15, 0.0 }
 0x18c   :  { %v486_v21 = vmax.f32 %v396_v17, 0.0 }
 0x18d   :  { %v487_v23 = vmax.f32 %v398_v19, 0.0 }
 0x18e   :  { %v528_v24 = vpack.c.bf16 %v486_v21, %v484_v20 }
 0x18f   :  { %v529_v25 = vpack.c.bf16 %v487_v23, %v485_v22  ;;  %v401_v26 = vpop.f32.mrb[68].mxu0 }
 0x190   :  { %v402_v27 = vadd.f32 %v401_v26, %v3510_v32  ;;  %v403_v28 = vpop.f32.mrb[69].mxu0 }
 0x191   :  { %v404_v29 = vadd.f32 %v403_v28, %v3512_v33  ;;  %v405_v30 = vpop.f32.mrb[70].mxu0  ;;  %822 = vmatprep.mubr.bf16.mxu1 %v529_v25 }
 0x192   :  { %v406_v31 = vadd.f32 %v405_v30, %v3510_v32  ;;  %v407_v34 = vpop.f32.mrb[71].mxu0  ;;  %823 = vmatmul.mubr.bf16.gmra.mrb[56].mxu1 %v528_v24  ;;  %v488_v36 = vmax.f32 %v402_v27, 0.0 }
 0x193   :  { %v408_v35 = vadd.f32 %v407_v34, %v3512_v33  ;;  %v489_v38 = vmax.f32 %v404_v29, 0.0 }
 0x194   :  { %v490_v37 = vmax.f32 %v406_v31, 0.0 }
 0x195   :  { %v491_v39 = vmax.f32 %v408_v35, 0.0 }
 0x196   :  { %v530_v40 = vpack.c.bf16 %v490_v37, %v488_v36 }
 0x197   :  { %v531_v41 = vpack.c.bf16 %v491_v39, %v489_v38  ;;  %v411_v42 = vpop.f32.mrb[72].mxu0 }
 0x198   :  { %v412_v43 = vadd.f32 %v411_v42, %v3510_v32  ;;  %v413_v44 = vpop.f32.mrb[73].mxu0 }
 0x199   :  { %v414_v45 = vadd.f32 %v413_v44, %v3512_v33  ;;  %v415_v46 = vpop.f32.mrb[74].mxu0  ;;  %830 = vmatprep.mubr.bf16.mxu1 %v531_v41 }
 0x19a   :  { %v416_v47 = vadd.f32 %v415_v46, %v3510_v32  ;;  %v417_v48 = vpop.f32.mrb[75].mxu0  ;;  %831 = vmatmul.mubr.bf16.gmra.mrb[60].mxu1 %v530_v40  ;;  %v492_v50 = vmax.f32 %v412_v43, 0.0 }
 0x19b   :  { %v418_v49 = vadd.f32 %v417_v48, %v3512_v33  ;;  %v493_v52 = vmax.f32 %v414_v45, 0.0 }
 0x19c   :  { %v494_v51 = vmax.f32 %v416_v47, 0.0 }
 0x19d   :  { %v495_v53 = vmax.f32 %v418_v49, 0.0 }
 0x19e   :  { %v532_v54 = vpack.c.bf16 %v494_v51, %v492_v50 }
 0x19f   :  { %v533_v55 = vpack.c.bf16 %v495_v53, %v493_v52 }
 0x1a1   :  { %838 = vmatprep.mubr.bf16.mxu1 %v533_v55 }
 0x1a2   :  { %839 = vmatmul.mubr.bf16.gmra.mrb[64].mxu1 %v532_v54 }
 0x1e5   :  { %v3590_v56 = vpop.f32.mrb[76].mxu0 }
 0x1e6   :  { %v698_v57 = vpop.f32.mrb[77].mxu0  ;;  %v848_v58 = vsel %vm847_vm0, %v3590_v56, -inf }
 0x1e7   :  { %849 = vmax.xlane.f32.xlu0 %v848_v58  ;;  %v3594_v32 = vpop.f32.mrb[78].mxu0 }
 0x1e8   :  { %v701_v59 = vpop.f32.mrb[79].mxu0  ;;  %v851_v33 = vsel %vm847_vm0, %v3594_v32, -inf }
 0x1eb   :  { %852 = vmax.xlane.f32.xlu0 %v851_v33 }
 0x1ed   :  { %v3598_v60 = vpop.f32.mrb[80].mxu0 }
 0x1ee   :  { %v706_v61 = vpop.f32.mrb[81].mxu0  ;;  %v854_v62 = vsel %vm847_vm0, %v3598_v60, -inf }
 0x1ef   :  { %855 = vmax.xlane.f32.xlu1 %v854_v62  ;;  %v3602_v63 = vpop.f32.mrb[82].mxu0 }
 0x1f0   :  { %v709_v1 = vpop.f32.mrb[83].mxu0  ;;  %v857_v2 = vsel %vm847_vm0, %v3602_v63, -inf }
 0x1f3   :  { %858 = vmax.xlane.f32.xlu1 %v857_v2 }
 0x1f5   :  { %v3606_v3 = vpop.f32.mrb[0].mxu1 }
 0x1f6   :  { %v714_v4 = vpop.f32.mrb[1].mxu1  ;;  %v860_v5 = vsel %vm847_vm0, %v3606_v3, -inf }
 0x1f7   :  { %v3610_v6 = vpop.f32.mrb[2].mxu1  ;;  %861 = vmax.xlane.f32.xlu0 %v860_v5 }
 0x1f8   :  { %v717_v7 = vpop.f32.mrb[3].mxu1  ;;  %v863_v8 = vsel %vm847_vm0, %v3610_v6, -inf }
 0x1f9   :  { %864 = vmax.xlane.f32.xlu1 %v863_v8 }
 0x1fd   :  { %v3614_v9 = vpop.f32.mrb[4].mxu1 }
 0x1fe   :  { %v722_v10 = vpop.f32.mrb[5].mxu1  ;;  %v866_v11 = vsel %vm847_vm0, %v3614_v9, -inf }
 0x1ff   :  { %v3618_v12 = vpop.f32.mrb[6].mxu1  ;;  %867 = vmax.xlane.f32.xlu0 %v866_v11 }
 0x200   :  { %v725_v13 = vpop.f32.mrb[7].mxu1  ;;  %v869_v14 = vsel %vm847_vm0, %v3618_v12, -inf }
 0x201   :  { %870 = vmax.xlane.f32.xlu1 %v869_v14 }
 0x205   :  { %v3622_v15 = vpop.f32.mrb[8].mxu1 }
 0x206   :  { %v730_v16 = vpop.f32.mrb[9].mxu1  ;;  %v872_v17 = vsel %vm847_vm0, %v3622_v15, -inf }
 0x207   :  { %v3626_v18 = vpop.f32.mrb[10].mxu1  ;;  %873 = vmax.xlane.f32.xlu0 %v872_v17 }
 0x208   :  { %v733_v19 = vpop.f32.mrb[11].mxu1  ;;  %v875_v20 = vsel %vm847_vm0, %v3626_v18, -inf }
 0x209   :  { %876 = vmax.xlane.f32.xlu1 %v875_v20 }
 0x20d   :  { %v3630_v21 = vpop.f32.mrb[12].mxu1 }
 0x20e   :  { %v738_v22 = vpop.f32.mrb[13].mxu1  ;;  %v878_v23 = vsel %vm847_vm0, %v3630_v21, -inf }
 0x20f   :  { %v3634_v24 = vpop.f32.mrb[14].mxu1  ;;  %879 = vmax.xlane.f32.xlu0 %v878_v23 }
 0x210   :  { %v741_v25 = vpop.f32.mrb[15].mxu1  ;;  %v881_v26 = vsel %vm847_vm0, %v3634_v24, -inf }
 0x211   :  { %882 = vmax.xlane.f32.xlu1 %v881_v26 }
 0x215   :  { %v3638_v27 = vpop.f32.mrb[16].mxu1 }
 0x216   :  { %v746_v28 = vpop.f32.mrb[17].mxu1  ;;  %v884_v29 = vsel %vm847_vm0, %v3638_v27, -inf }
 0x217   :  { %v3642_v30 = vpop.f32.mrb[18].mxu1  ;;  %885 = vmax.xlane.f32.xlu0 %v884_v29 }
 0x218   :  { %v749_v31 = vpop.f32.mrb[19].mxu1  ;;  %v887_v34 = vsel %vm847_vm0, %v3642_v30, -inf }
 0x219   :  { %888 = vmax.xlane.f32.xlu1 %v887_v34 }
 0x21d   :  { %v3646_v35 = vpop.f32.mrb[20].mxu1 }
 0x21e   :  { %v754_v36 = vpop.f32.mrb[21].mxu1  ;;  %v890_v37 = vsel %vm847_vm0, %v3646_v35, -inf }
 0x21f   :  { %v3650_v38 = vpop.f32.mrb[22].mxu1  ;;  %891 = vmax.xlane.f32.xlu0 %v890_v37 }
 0x220   :  { %v757_v39 = vpop.f32.mrb[23].mxu1  ;;  %v893_v40 = vsel %vm847_vm0, %v3650_v38, -inf }
 0x221   :  { %894 = vmax.xlane.f32.xlu1 %v893_v40 }
 0x225   :  { %v3654_v41 = vpop.f32.mrb[24].mxu1 }
 0x226   :  { %v762_v42 = vpop.f32.mrb[25].mxu1  ;;  %v896_v43 = vsel %vm847_vm0, %v3654_v41, -inf }
 0x227   :  { %v3658_v44 = vpop.f32.mrb[26].mxu1  ;;  %897 = vmax.xlane.f32.xlu0 %v896_v43 }
 0x228   :  { %v765_v45 = vpop.f32.mrb[27].mxu1  ;;  %v899_v46 = vsel %vm847_vm0, %v3658_v44, -inf }
 0x229   :  { %900 = vmax.xlane.f32.xlu1 %v899_v46 }
 0x22d   :  { %v3662_v47 = vpop.f32.mrb[28].mxu1 }
 0x22e   :  { %v770_v48 = vpop.f32.mrb[29].mxu1  ;;  %v902_v49 = vsel %vm847_vm0, %v3662_v47, -inf }
 0x22f   :  { %v3666_v50 = vpop.f32.mrb[30].mxu1  ;;  %903 = vmax.xlane.f32.xlu0 %v902_v49 }
 0x230   :  { %v773_v51 = vpop.f32.mrb[31].mxu1  ;;  %v905_v52 = vsel %vm847_vm0, %v3666_v50, -inf }
 0x231   :  { %906 = vmax.xlane.f32.xlu1 %v905_v52 }
 0x235   :  { %v3670_v53 = vpop.f32.mrb[32].mxu1 }
 0x236   :  { %v778_v54 = vpop.f32.mrb[33].mxu1  ;;  %v908_v55 = vsel %vm847_vm0, %v3670_v53, -inf }
 0x237   :  { %v3674_v57 = vpop.f32.mrb[34].mxu1  ;;  %909 = vmax.xlane.f32.xlu0 %v908_v55 }
 0x238   :  { %v781_v58 = vpop.f32.mrb[35].mxu1  ;;  %v911_v59 = vsel %vm847_vm0, %v3674_v57, -inf }
 0x239   :  { %912 = vmax.xlane.f32.xlu1 %v911_v59 }
 0x23d   :  { %v3678_v33 = vpop.f32.mrb[36].mxu1 }
 0x23e   :  { %v786_v61 = vpop.f32.mrb[37].mxu1  ;;  %v914_v62 = vsel %vm847_vm0, %v3678_v33, -inf }
 0x23f   :  { %v3682_v1 = vpop.f32.mrb[38].mxu1  ;;  %915 = vmax.xlane.f32.xlu0 %v914_v62 }
 0x240   :  { %v789_v2 = vpop.f32.mrb[39].mxu1  ;;  %v917_v4 = vsel %vm847_vm0, %v3682_v1, -inf }
 0x241   :  { %918 = vmax.xlane.f32.xlu1 %v917_v4 }
 0x245   :  { %v3686_v5 = vpop.f32.mrb[40].mxu1 }
 0x246   :  { %v794_v7 = vpop.f32.mrb[41].mxu1  ;;  %v920_v8 = vsel %vm847_vm0, %v3686_v5, -inf }
 0x247   :  { %v3690_v10 = vpop.f32.mrb[42].mxu1  ;;  %921 = vmax.xlane.f32.xlu0 %v920_v8 }
 0x248   :  { %v797_v11 = vpop.f32.mrb[43].mxu1  ;;  %v923_v13 = vsel %vm847_vm0, %v3690_v10, -inf }
 0x249   :  { %924 = vmax.xlane.f32.xlu1 %v923_v13 }
 0x24d   :  { %v3694_v14 = vpop.f32.mrb[44].mxu1 }
 0x24e   :  { %v802_v16 = vpop.f32.mrb[45].mxu1  ;;  %v926_v17 = vsel %vm847_vm0, %v3694_v14, -inf }
 0x24f   :  { %v3698_v19 = vpop.f32.mrb[46].mxu1  ;;  %927 = vmax.xlane.f32.xlu0 %v926_v17 }
 0x250   :  { %v805_v20 = vpop.f32.mrb[47].mxu1  ;;  %v929_v22 = vsel %vm847_vm0, %v3698_v19, -inf }
 0x251   :  { %930 = vmax.xlane.f32.xlu1 %v929_v22 }
 0x255   :  { %v3702_v23 = vpop.f32.mrb[48].mxu1 }
 0x256   :  { %v810_v25 = vpop.f32.mrb[49].mxu1  ;;  %v932_v26 = vsel %vm847_vm0, %v3702_v23, -inf }
 0x257   :  { %v3706_v28 = vpop.f32.mrb[50].mxu1  ;;  %933 = vmax.xlane.f32.xlu0 %v932_v26 }
 0x258   :  { %v813_v29 = vpop.f32.mrb[51].mxu1  ;;  %v935_v31 = vsel %vm847_vm0, %v3706_v28, -inf }
 0x259   :  { %936 = vmax.xlane.f32.xlu1 %v935_v31 }
 0x25d   :  { %v3710_v34 = vpop.f32.mrb[52].mxu1 }
 0x25e   :  { %v818_v36 = vpop.f32.mrb[53].mxu1  ;;  %v938_v37 = vsel %vm847_vm0, %v3710_v34, -inf }
 0x25f   :  { %v3714_v39 = vpop.f32.mrb[54].mxu1  ;;  %939 = vmax.xlane.f32.xlu0 %v938_v37 }
 0x260   :  { %v821_v40 = vpop.f32.mrb[55].mxu1  ;;  %v941_v42 = vsel %vm847_vm0, %v3714_v39, -inf }
 0x261   :  { %942 = vmax.xlane.f32.xlu1 %v941_v42 }
 0x265   :  { %v3718_v43 = vpop.f32.mrb[56].mxu1 }
 0x266   :  { %v826_v45 = vpop.f32.mrb[57].mxu1  ;;  %v944_v46 = vsel %vm847_vm0, %v3718_v43, -inf }
 0x267   :  { %v3722_v48 = vpop.f32.mrb[58].mxu1  ;;  %945 = vmax.xlane.f32.xlu0 %v944_v46 }
 0x268   :  { %v829_v49 = vpop.f32.mrb[59].mxu1  ;;  %v947_v51 = vsel %vm847_vm0, %v3722_v48, -inf }
 0x269   :  { %948 = vmax.xlane.f32.xlu1 %v947_v51 }
 0x26d   :  { %v3726_v52 = vpop.f32.mrb[60].mxu1 }
 0x26e   :  { %v834_v54 = vpop.f32.mrb[61].mxu1  ;;  %v950_v55 = vsel %vm847_vm0, %v3726_v52, -inf }
 0x26f   :  { %v3730_v58 = vpop.f32.mrb[62].mxu1  ;;  %951 = vmax.xlane.f32.xlu0 %v950_v55 }
 0x270   :  { %v837_v59 = vpop.f32.mrb[63].mxu1  ;;  %v953_v61 = vsel %vm847_vm0, %v3730_v58, -inf }
 0x271   :  { %954 = vmax.xlane.f32.xlu1 %v953_v61 }
 0x274   :  { %v850_v62 = vpop.xlane.xlu0 %849 }
 0x275   :  { %v962_v2 = vsub.f32 %v3590_v56, %v850_v62  ;;  %v3735_v4 = vpop.f32.mrb[64].mxu1 }
 0x276   :  { %v842_v7 = vpop.f32.mrb[65].mxu1  ;;  %v956_v8 = vsel %vm847_vm0, %v3735_v4, -inf }
 0x277   :  { %v1000_v11 = vmul.f32 1.442695, %v962_v2  ;;  %v3739_v13 = vpop.f32.mrb[66].mxu1  ;;  %957 = vmax.xlane.f32.xlu0 %v956_v8 }
 0x278   :  { %v845_v16 = vpop.f32.mrb[67].mxu1  ;;  %v853_v17 = vpop.xlane.xlu0 %852  ;;  %v959_v20 = vsel %vm847_vm0, %v3739_v13, -inf }
 0x279   :  { %3098 = vpow2.f32 %v1000_v11  ;;  %v963_v22 = vsub.f32 %v3594_v32, %v853_v17  ;;  %960 = vmax.xlane.f32.xlu1 %v959_v20 }
 0x27b   :  { %v1002_v56 = vmul.f32 1.442695, %v963_v22 }
 0x27c   :  { %v856_v25 = vpop.xlane.xlu1 %855 }
 0x27d   :  { %3100 = vpow2.f32 %v1002_v56  ;;  %v964_v26 = vsub.f32 %v3598_v60, %v856_v25 }
 0x27f   :  { %v1004_v29 = vmul.f32 1.442695, %v964_v26 }
 0x280   :  { %v859_v31 = vpop.xlane.xlu1 %858 }
 0x281   :  { %3102 = vpow2.f32 %v1004_v29  ;;  %v965_v36 = vsub.f32 %v3602_v63, %v859_v31 }
 0x283   :  { %v3746_v37 = vpop.eup %3098  ;;  %v1006_v40 = vmul.f32 1.442695, %v965_v36 }
 0x284   :  { %v862_v42 = vpop.xlane.xlu0 %861  ;;  %v1076_v45 = vsel %vm847_vm0, %v3746_v37, 0.0 }
 0x285   :  { %3104 = vpow2.f32 %v1006_v40  ;;  %v966_v32 = vsub.f32 %v3606_v3, %v862_v42  ;;  %1077 = vadd.xlane.f32.xlu0 %v1076_v45 }
 0x286   :  { %v865_v46 = vpop.xlane.xlu1 %864 }
 0x287   :  { %v3751_v49 = vpop.eup %3100  ;;  %v1008_v60 = vmul.f32 1.442695, %v966_v32  ;;  %v967_v51 = vsub.f32 %v3610_v6, %v865_v46 }
 0x288   :  { %v1079_v63 = vsel %vm847_vm0, %v3751_v49, 0.0 }
 0x289   :  { %3106 = vpow2.f32 %v1008_v60  ;;  %v1010_v54 = vmul.f32 1.442695, %v967_v51  ;;  %1080 = vadd.xlane.f32.xlu1 %v1079_v63 }
 0x28b   :  { %v3756_v55 = vpop.eup %3102  ;;  %3108 = vpow2.f32 %v1010_v54 }
 0x28c   :  { %v868_v59 = vpop.xlane.xlu0 %867  ;;  %v1082_v3 = vsel %vm847_vm0, %v3756_v55, 0.0 }
 0x28d   :  { %v968_v61 = vsub.f32 %v3614_v9, %v868_v59  ;;  %1083 = vadd.xlane.f32.xlu0 %v1082_v3 }
 0x28e   :  { %v871_v62 = vpop.xlane.xlu1 %870 }
 0x28f   :  { %v3761_v2 = vpop.eup %3104  ;;  %v1012_v6 = vmul.f32 1.442695, %v968_v61  ;;  %v969_v7 = vsub.f32 %v3618_v12, %v871_v62 }
 0x290   :  { %v1085_v8 = vsel %vm847_vm0, %v3761_v2, 0.0 }
 0x291   :  { %3110 = vpow2.f32 %v1012_v6  ;;  %v1014_v11 = vmul.f32 1.442695, %v969_v7  ;;  %1086 = vadd.xlane.f32.xlu1 %v1085_v8 }
 0x293   :  { %v3766_v16 = vpop.eup %3106  ;;  %3112 = vpow2.f32 %v1014_v11 }
 0x294   :  { %v874_v17 = vpop.xlane.xlu0 %873  ;;  %v1088_v9 = vsel %vm847_vm0, %v3766_v16, 0.0 }
 0x295   :  { %v3770_v20 = vpop.eup %3108  ;;  %v970_v22 = vsub.f32 %v3622_v15, %v874_v17  ;;  %1089 = vadd.xlane.f32.xlu0 %v1088_v9 }
 0x296   :  { %v877_v56 = vpop.xlane.xlu1 %876  ;;  %v1091_v12 = vsel %vm847_vm0, %v3770_v20, 0.0 }
 0x297   :  { %v1016_v25 = vmul.f32 1.442695, %v970_v22  ;;  %v971_v26 = vsub.f32 %v3626_v18, %v877_v56  ;;  %1092 = vadd.xlane.f32.xlu1 %v1091_v12 }
 0x299   :  { %3114 = vpow2.f32 %v1016_v25  ;;  %v1018_v29 = vmul.f32 1.442695, %v971_v26 }
 0x29b   :  { %v3776_v31 = vpop.eup %3110  ;;  %3116 = vpow2.f32 %v1018_v29 }
 0x29c   :  { %v880_v36 = vpop.xlane.xlu0 %879  ;;  %v1094_v40 = vsel %vm847_vm0, %v3776_v31, 0.0 }
 0x29d   :  { %v3780_v42 = vpop.eup %3112  ;;  %v972_v15 = vsub.f32 %v3630_v21, %v880_v36  ;;  %1095 = vadd.xlane.f32.xlu0 %v1094_v40 }
 0x29e   :  { %v883_v45 = vpop.xlane.xlu1 %882  ;;  %v1097_v32 = vsel %vm847_vm0, %v3780_v42, 0.0 }
 0x29f   :  { %v1020_v18 = vmul.f32 1.442695, %v972_v15  ;;  %v973_v46 = vsub.f32 %v3634_v24, %v883_v45  ;;  %1098 = vadd.xlane.f32.xlu1 %v1097_v32  ;;  %v5796_v24 = vmov 1  }
 0x2a0   :  { %2906 = vset.pattern.permute.xlu1 %v5796_v24 }
 0x2a1   :  { %3118 = vpow2.f32 %v1020_v18  ;;  %v1022_v60 = vmul.f32 1.442695, %v973_v46 }
 0x2a3   :  { %v3786_v51 = vpop.eup %3114  ;;  %3120 = vpow2.f32 %v1022_v60 }
 0x2a4   :  { %v886_v63 = vpop.xlane.xlu0 %885  ;;  %v1100_v54 = vsel %vm847_vm0, %v3786_v51, 0.0 }
 0x2a5   :  { %v3790_v59 = vpop.eup %3116  ;;  %v974_v21 = vsub.f32 %v3638_v27, %v886_v63  ;;  %1101 = vadd.xlane.f32.xlu0 %v1100_v54 }
 0x2a6   :  { %v889_v3 = vpop.xlane.xlu1 %888  ;;  %v1103_v61 = vsel %vm847_vm0, %v3790_v59, 0.0 }
 0x2a7   :  { %v1024_v62 = vmul.f32 1.442695, %v974_v21  ;;  %v975_v6 = vsub.f32 %v3642_v30, %v889_v3  ;;  %1104 = vadd.xlane.f32.xlu1 %v1103_v61 }
 0x2a9   :  { %3122 = vpow2.f32 %v1024_v62  ;;  %v1026_v7 = vmul.f32 1.442695, %v975_v6 }
 0x2ab   :  { %v3797_v8 = vpop.eup %3118  ;;  %3124 = vpow2.f32 %v1026_v7 }
 0x2ac   :  { %v892_v11 = vpop.xlane.xlu0 %891  ;;  %v1106_v27 = vsel %vm847_vm0, %v3797_v8, 0.0 }
 0x2ad   :  { %v3801_v17 = vpop.eup %3120  ;;  %v976_v9 = vsub.f32 %v3646_v35, %v892_v11  ;;  %1107 = vadd.xlane.f32.xlu0 %v1106_v27 }
 0x2ae   :  { %v895_v22 = vpop.xlane.xlu1 %894  ;;  %v1109_v56 = vsel %vm847_vm0, %v3801_v17, 0.0 }
 0x2af   :  { %v1028_v30 = vmul.f32 1.442695, %v976_v9  ;;  %v977_v12 = vsub.f32 %v3650_v38, %v895_v22  ;;  %1110 = vadd.xlane.f32.xlu1 %v1109_v56 }
 0x2b1   :  { %3126 = vpow2.f32 %v1028_v30  ;;  %v1030_v25 = vmul.f32 1.442695, %v977_v12 }
 0x2b3   :  { %v3807_v26 = vpop.eup %3122  ;;  %3128 = vpow2.f32 %v1030_v25 }
 0x2b4   :  { %v898_v29 = vpop.xlane.xlu0 %897  ;;  %v1112_v36 = vsel %vm847_vm0, %v3807_v26, 0.0 }
 0x2b5   :  { %v3811_v40 = vpop.eup %3124  ;;  %v978_v35 = vsub.f32 %v3654_v41, %v898_v29  ;;  %1113 = vadd.xlane.f32.xlu0 %v1112_v36 }
 0x2b6   :  { %v901_v15 = vpop.xlane.xlu1 %900  ;;  %v1115_v45 = vsel %vm847_vm0, %v3811_v40, 0.0 }
 0x2b7   :  { %v1032_v38 = vmul.f32 1.442695, %v978_v35  ;;  %v979_v32 = vsub.f32 %v3658_v44, %v901_v15  ;;  %1116 = vadd.xlane.f32.xlu1 %v1115_v45 }
 0x2b9   :  { %3130 = vpow2.f32 %v1032_v38  ;;  %v1034_v18 = vmul.f32 1.442695, %v979_v32 }
 0x2bb   :  { %v3817_v46 = vpop.eup %3126  ;;  %3132 = vpow2.f32 %v1034_v18 }
 0x2bc   :  { %v904_v60 = vpop.xlane.xlu0 %903  ;;  %v1118_v63 = vsel %vm847_vm0, %v3817_v46, 0.0 }
 0x2bd   :  { %v3821_v54 = vpop.eup %3128  ;;  %v980_v41 = vsub.f32 %v3662_v47, %v904_v60  ;;  %1119 = vadd.xlane.f32.xlu0 %v1118_v63 }
 0x2be   :  { %v907_v21 = vpop.xlane.xlu1 %906  ;;  %v1121_v3 = vsel %vm847_vm0, %v3821_v54, 0.0 }
 0x2bf   :  { %v1036_v44 = vmul.f32 1.442695, %v980_v41  ;;  %v981_v61 = vsub.f32 %v3666_v50, %v907_v21  ;;  %1122 = vadd.xlane.f32.xlu1 %v1121_v3 }
 0x2c1   :  { %3134 = vpow2.f32 %v1036_v44  ;;  %v1038_v62 = vmul.f32 1.442695, %v981_v61 }
 0x2c3   :  { %v3827_v6 = vpop.eup %3130  ;;  %3136 = vpow2.f32 %v1038_v62 }
 0x2c4   :  { %v910_v7 = vpop.xlane.xlu0 %909  ;;  %v1124_v11 = vsel %vm847_vm0, %v3827_v6, 0.0 }
 0x2c5   :  { %v3831_v27 = vpop.eup %3132  ;;  %v982_v47 = vsub.f32 %v3670_v53, %v910_v7  ;;  %1125 = vadd.xlane.f32.xlu0 %v1124_v11 }
 0x2c6   :  { %v913_v9 = vpop.xlane.xlu1 %912  ;;  %v1127_v22 = vsel %vm847_vm0, %v3831_v27, 0.0 }
 0x2c7   :  { %v1040_v50 = vmul.f32 1.442695, %v982_v47  ;;  %v983_v56 = vsub.f32 %v3674_v57, %v913_v9  ;;  %1128 = vadd.xlane.f32.xlu1 %v1127_v22 }
 0x2c9   :  { %3138 = vpow2.f32 %v1040_v50  ;;  %v1042_v30 = vmul.f32 1.442695, %v983_v56 }
 0x2cb   :  { %v3837_v12 = vpop.eup %3134  ;;  %3140 = vpow2.f32 %v1042_v30 }
 0x2cc   :  { %v916_v25 = vpop.xlane.xlu0 %915  ;;  %v1130_v29 = vsel %vm847_vm0, %v3837_v12, 0.0 }
 0x2cd   :  { %v3841_v36 = vpop.eup %3136  ;;  %v984_v53 = vsub.f32 %v3678_v33, %v916_v25  ;;  %1131 = vadd.xlane.f32.xlu0 %v1130_v29 }
 0x2ce   :  { %v919_v35 = vpop.xlane.xlu1 %918  ;;  %v1133_v15 = vsel %vm847_vm0, %v3841_v36, 0.0 }
 0x2cf   :  { %v1044_v57 = vmul.f32 1.442695, %v984_v53  ;;  %v985_v45 = vsub.f32 %v3682_v1, %v919_v35  ;;  %1134 = vadd.xlane.f32.xlu1 %v1133_v15 }
 0x2d1   :  { %3142 = vpow2.f32 %v1044_v57  ;;  %v1046_v38 = vmul.f32 1.442695, %v985_v45 }
 0x2d3   :  { %v3847_v32 = vpop.eup %3138  ;;  %3144 = vpow2.f32 %v1046_v38 }
 0x2d4   :  { %v922_v18 = vpop.xlane.xlu0 %921  ;;  %v1136_v60 = vsel %vm847_vm0, %v3847_v32, 0.0 }
 0x2d5   :  { %v3851_v63 = vpop.eup %3140  ;;  %v986_v33 = vsub.f32 %v3686_v5, %v922_v18  ;;  %1137 = vadd.xlane.f32.xlu0 %v1136_v60 }
 0x2d6   :  { %v925_v41 = vpop.xlane.xlu1 %924  ;;  %v1139_v21 = vsel %vm847_vm0, %v3851_v63, 0.0 }
 0x2d7   :  { %v1048_v1 = vmul.f32 1.442695, %v986_v33  ;;  %v987_v3 = vsub.f32 %v3690_v10, %v925_v41  ;;  %1140 = vadd.xlane.f32.xlu1 %v1139_v21 }
 0x2d9   :  { %3146 = vpow2.f32 %v1048_v1  ;;  %v1050_v44 = vmul.f32 1.442695, %v987_v3 }
 0x2db   :  { %v3857_v61 = vpop.eup %3142  ;;  %3148 = vpow2.f32 %v1050_v44 }
 0x2dc   :  { %v928_v62 = vpop.xlane.xlu0 %927  ;;  %v1142_v7 = vsel %vm847_vm0, %v3857_v61, 0.0 }
 0x2dd   :  { %v3861_v11 = vpop.eup %3144  ;;  %v988_v5 = vsub.f32 %v3694_v14, %v928_v62  ;;  %1143 = vadd.xlane.f32.xlu0 %v1142_v7 }
 0x2de   :  { %v931_v47 = vpop.xlane.xlu1 %930  ;;  %v1145_v9 = vsel %vm847_vm0, %v3861_v11, 0.0 }
 0x2df   :  { %v1052_v10 = vmul.f32 1.442695, %v988_v5  ;;  %v989_v22 = vsub.f32 %v3698_v19, %v931_v47  ;;  %1146 = vadd.xlane.f32.xlu1 %v1145_v9 }
 0x2e1   :  { %3150 = vpow2.f32 %v1052_v10  ;;  %v1054_v50 = vmul.f32 1.442695, %v989_v22 }
 0x2e3   :  { %v3867_v56 = vpop.eup %3146  ;;  %3152 = vpow2.f32 %v1054_v50 }
 0x2e4   :  { %v934_v30 = vpop.xlane.xlu0 %933  ;;  %v1148_v25 = vsel %vm847_vm0, %v3867_v56, 0.0 }
 0x2e5   :  { %v3871_v29 = vpop.eup %3148  ;;  %v990_v14 = vsub.f32 %v3702_v23, %v934_v30  ;;  %1149 = vadd.xlane.f32.xlu0 %v1148_v25 }
 0x2e6   :  { %v937_v53 = vpop.xlane.xlu1 %936  ;;  %v1151_v35 = vsel %vm847_vm0, %v3871_v29, 0.0 }
 0x2e7   :  { %v1056_v19 = vmul.f32 1.442695, %v990_v14  ;;  %v991_v15 = vsub.f32 %v3706_v28, %v937_v53  ;;  %1152 = vadd.xlane.f32.xlu1 %v1151_v35 }
 0x2e9   :  { %3154 = vpow2.f32 %v1056_v19  ;;  %v1058_v57 = vmul.f32 1.442695, %v991_v15 }
 0x2eb   :  { %v3877_v45 = vpop.eup %3150  ;;  %3156 = vpow2.f32 %v1058_v57 }
 0x2ec   :  { %v940_v38 = vpop.xlane.xlu0 %939  ;;  %v1154_v18 = vsel %vm847_vm0, %v3877_v45, 0.0 }
 0x2ed   :  { %v3881_v60 = vpop.eup %3152  ;;  %v992_v23 = vsub.f32 %v3710_v34, %v940_v38  ;;  %1155 = vadd.xlane.f32.xlu0 %v1154_v18 }
 0x2ee   :  { %v943_v33 = vpop.xlane.xlu1 %942  ;;  %v1157_v41 = vsel %vm847_vm0, %v3881_v60, 0.0 }
 0x2ef   :  { %v1060_v28 = vmul.f32 1.442695, %v992_v23  ;;  %v993_v21 = vsub.f32 %v3714_v39, %v943_v33  ;;  %1158 = vadd.xlane.f32.xlu1 %v1157_v41 }
 0x2f1   :  { %3158 = vpow2.f32 %v1060_v28  ;;  %v1062_v1 = vmul.f32 1.442695, %v993_v21 }
 0x2f3   :  { %v3887_v3 = vpop.eup %3154  ;;  %3160 = vpow2.f32 %v1062_v1 }
 0x2f4   :  { %v946_v44 = vpop.xlane.xlu0 %945  ;;  %v1160_v62 = vsel %vm847_vm0, %v3887_v3, 0.0 }
 0x2f5   :  { %v3891_v7 = vpop.eup %3156  ;;  %v994_v34 = vsub.f32 %v3718_v43, %v946_v44  ;;  %1161 = vadd.xlane.f32.xlu0 %v1160_v62 }
 0x2f6   :  { %v949_v5 = vpop.xlane.xlu1 %948  ;;  %v1163_v47 = vsel %vm847_vm0, %v3891_v7, 0.0 }
 0x2f7   :  { %v1064_v39 = vmul.f32 1.442695, %v994_v34  ;;  %v995_v9 = vsub.f32 %v3722_v48, %v949_v5  ;;  %1164 = vadd.xlane.f32.xlu1 %v1163_v47 }
 0x2f9   :  { %3162 = vpow2.f32 %v1064_v39  ;;  %v1066_v10 = vmul.f32 1.442695, %v995_v9 }
 0x2fb   :  { %v3897_v22 = vpop.eup %3158  ;;  %3164 = vpow2.f32 %v1066_v10 }
 0x2fc   :  { %v952_v50 = vpop.xlane.xlu0 %951  ;;  %v1166_v30 = vsel %vm847_vm0, %v3897_v22, 0.0 }
 0x2fd   :  { %v3901_v25 = vpop.eup %3160  ;;  %v996_v43 = vsub.f32 %v3726_v52, %v952_v50  ;;  %1167 = vadd.xlane.f32.xlu0 %v1166_v30  ;;  %v5794_v50 = vmov 3  }
 0x2fe   :  { %v955_v14 = vpop.xlane.xlu1 %954  ;;  %v1169_v53 = vsel %vm847_vm0, %v3901_v25, 0.0 }
 0x2ff   :  { %v1068_v48 = vmul.f32 1.442695, %v996_v43  ;;  %v997_v35 = vsub.f32 %v3730_v58, %v955_v14  ;;  %1170 = vadd.xlane.f32.xlu1 %v1169_v53  ;;  %v5790_v14 = vmov 2  }
 0x301   :  { %3166 = vpow2.f32 %v1068_v48  ;;  %v1070_v19 = vmul.f32 1.442695, %v997_v35 }
 0x303   :  { %v3907_v15 = vpop.eup %3162  ;;  %3168 = vpow2.f32 %v1070_v19 }
 0x304   :  { %v958_v57 = vpop.xlane.xlu0 %957  ;;  %v1172_v38 = vsel %vm847_vm0, %v3907_v15, 0.0 }
 0x305   :  { %v3911_v18 = vpop.eup %3164  ;;  %v998_v52 = vsub.f32 %v3735_v4, %v958_v57  ;;  %1173 = vadd.xlane.f32.xlu0 %v1172_v38 }
 0x306   :  { %v961_v23 = vpop.xlane.xlu1 %960  ;;  %v1175_v33 = vsel %vm847_vm0, %v3911_v18, 0.0 }
 0x307   :  { %v1072_v58 = vmul.f32 1.442695, %v998_v52  ;;  %v999_v41 = vsub.f32 %v3739_v13, %v961_v23  ;;  %1176 = vadd.xlane.f32.xlu1 %v1175_v33 }
 0x309   :  { %3170 = vpow2.f32 %v1072_v58  ;;  %v1074_v28 = vmul.f32 1.442695, %v999_v41 }
 0x30b   :  { %v3917_v21 = vpop.eup %3166  ;;  %3172 = vpow2.f32 %v1074_v28 }
 0x30c   :  { %v1178_v1 = vsel %vm847_vm0, %v3917_v21, 0.0 }
 0x30d   :  { %v3921_v44 = vpop.eup %3168  ;;  %1179 = vadd.xlane.f32.xlu0 %v1178_v1 }
 0x30e   :  { %v1181_v4 = vsel %vm847_vm0, %v3921_v44, 0.0 }
 0x30f   :  { %1182 = vadd.xlane.f32.xlu1 %v1181_v4 }
 0x312   :  { %v1078_v5 = vpop.xlane.xlu0 %1077 }
 0x313   :  { %v3925_v62 = vpop.eup %3170  ;;  %3174 = vrcp.f32 %v1078_v5 }
 0x314   :  { %v1184_v13 = vsel %vm847_vm0, %v3925_v62, 0.0 }
 0x315   :  { %v3929_v34 = vpop.eup %3172  ;;  %1185 = vadd.xlane.f32.xlu0 %v1184_v13 }
 0x316   :  { %v1187_v47 = vsel %vm847_vm0, %v3929_v34, 0.0  ;;  %v1081_v39 = vpop.xlane.xlu1 %1080 }
 0x317   :  { %1188 = vadd.xlane.f32.xlu1 %v1187_v47  ;;  %3176 = vrcp.f32 %v1081_v39 }
 0x31a   :  { %v1084_v43 = vpop.xlane.xlu0 %1083 }
 0x31b   :  { %3178 = vrcp.f32 %v1084_v43 }
 0x31d   :  { %v3175_v9 = vpop.eup %3174 }
 0x31e   :  { %v1191_v10 = vmul.f32 %v3175_v9, %v3746_v37  ;;  %v1087_v48 = vpop.xlane.xlu1 %1086 }
 0x31f   :  { %3180 = vrcp.f32 %v1087_v48 }
 0x321   :  { %v3177_v30 = vpop.eup %3176 }
 0x322   :  { %v1193_v53 = vmul.f32 %v3177_v30, %v3751_v49  ;;  %v1090_v37 = vpop.xlane.xlu0 %1089 }
 0x323   :  { %3182 = vrcp.f32 %v1090_v37 }
 0x324   :  { %v1093_v52 = vpop.xlane.xlu1 %1092 }
 0x325   :  { %v3179_v35 = vpop.eup %3178  ;;  %3184 = vrcp.f32 %v1093_v52 }
 0x326   :  { %v1195_v49 = vmul.f32 %v3179_v35, %v3756_v55 }
 0x328   :  { %1495 = vperm.xlu1 %2906, %v1191_v10  }
 0x329   :  { %v3181_v19 = vpop.eup %3180 }
 0x32a   :  { %v1197_v57 = vmul.f32 %v3181_v19, %v3761_v2  ;;  %v1096_v55 = vpop.xlane.xlu0 %1095 }
 0x32b   :  { %1268 = vperm.xlu0 %2905, %v1191_v10   ;;  %3186 = vrcp.f32 %v1096_v55 }
 0x32c   :  { %2908 = vset.pattern.permute.xlu1 %v5794_v50  ;;  %v1099_v58 = vpop.xlane.xlu1 %1098 }
 0x32d   :  { %2255 = vperm.xlu1 %2908, %v1191_v10   ;;  %v3183_v38 = vpop.eup %3182  ;;  %3188 = vrcp.f32 %v1099_v58 }
 0x32e   :  { %v1199_v23 = vmul.f32 %v3183_v38, %v3766_v16 }
 0x32f   :  { %2907 = vset.pattern.permute.xlu0 %v5790_v14  ;;  %v3185_v2 = vpop.eup %3184 }
 0x330   :  { %1875 = vperm.xlu0 %2907, %v1191_v10   ;;  %v1201_v16 = vmul.f32 %v3185_v2, %v3770_v20 }
 0x331   :  { %2909 = vset.pattern.permute.xlu1 %v5792_v0 }
 0x332   :  { %1273 = vperm.xlu1 %2909, %v1193_v53   ;;  %v1102_v28 = vpop.xlane.xlu0 %1101 }
 0x333   :  { %3190 = vrcp.f32 %v1102_v28 }
 0x334   :  { %2673 = vrot.lane.b32.xlu0 %v1191_v10, %s3319_s2  ;;  %v1105_v4 = vpop.xlane.xlu1 %1104 }
 0x335   :  { %2910 = vset.pattern.permute.xlu0 %v5796_v24  ;;  %v3187_v33 = vpop.eup %3186  ;;  %3192 = vrcp.f32 %v1105_v4 }
 0x336   :  { %2911 = vset.pattern.permute.xlu1 %v5790_v14  ;;  %v1203_v41 = vmul.f32 %v3187_v33, %v3776_v31 }
 0x337   :  { %1879 = vperm.xlu1 %2911, %v1193_v53   ;;  %v3189_v20 = vpop.eup %3188 }
 0x338   :  { %1499 = vperm.xlu0 %2910, %v1193_v53   ;;  %v3968_v31 = vmul.f32 %v3189_v20, %v3780_v42 }
 0x33a   :  { %v1108_v5 = vpop.xlane.xlu0 %1107 }
 0x33b   :  { %2675 = vrot.lane.b32.xlu1 %v1193_v53, %s3319_s2  ;;  %3194 = vrcp.f32 %v1108_v5 }
 0x33c   :  { %2912 = vset.pattern.permute.xlu0 %v5794_v50  ;;  %2913 = vset.pattern.permute.xlu1 %v5792_v0  ;;  %v1111_v42 = vpop.xlane.xlu1 %1110 }
 0x33d   :  { %2259 = vperm.xlu0 %2912, %v1193_v53   ;;  %v3191_v1 = vpop.eup %3190  ;;  %3196 = vrcp.f32 %v1111_v42 }
 0x33e   :  { %v3973_v13 = vmul.f32 %v3191_v1, %v3786_v51 }
 0x33f   :  { %1278 = vperm.xlu1 %2913, %v1195_v49   ;;  %v3193_v39 = vpop.eup %3192 }
 0x340   :  { %v3988_v10 = vmul.f32 %v3193_v39, %v3790_v59 }
 0x341   :  { %2677 = vrot.lane.b32.xlu0 %v1195_v49, %s3319_s2 }
 0x342   :  { %2919 = vset.pattern.permute.xlu0 %v5790_v14  ;;  %v1114_v51 = vpop.xlane.xlu0 %1113 }
 0x343   :  { %2914 = vset.pattern.permute.xlu1 %v5796_v24  ;;  %3198 = vrcp.f32 %v1114_v51 }
 0x344   :  { %1503 = vperm.xlu1 %2914, %v1195_v49   ;;  %v1117_v47 = vpop.xlane.xlu1 %1116 }
 0x345   :  { %1887 = vperm.xlu0 %2919, %v1197_v57   ;;  %v3195_v48 = vpop.eup %3194  ;;  %3200 = vrcp.f32 %v1117_v47 }
 0x346   :  { %v4004_v35 = vmul.f32 %v3195_v48, %v3797_v8 }
 0x347   :  { %v3197_v52 = vpop.eup %3196 }
 0x348   :  { %2915 = vset.pattern.permute.xlu1 %v5790_v14  ;;  %v4033_v2 = vmul.f32 %v3197_v52, %v3801_v17 }
 0x349   :  { %1883 = vperm.xlu1 %2915, %v1195_v49   ;;  %2922 = vset.pattern.permute.xlu0 %v5796_v24 }
 0x34a   :  { %1511 = vperm.xlu0 %2922, %v1199_v23   ;;  %v1120_v30 = vpop.xlane.xlu0 %1119 }
 0x34b   :  { %3202 = vrcp.f32 %v1120_v30 }
 0x34c   :  { %v3983_v9 = vpop.xlane.xlu1 %1122 }
 0x34d   :  { %2916 = vset.pattern.permute.xlu1 %v5794_v50  ;;  %3204 = vrcp.f32 %v3983_v9  ;;  %v5811_v9 = vmov 2  }
 0x34e   :  { %2263 = vperm.xlu1 %2916, %v1195_v49   ;;  %2924 = vset.pattern.permute.xlu0 %v5794_v50 }
 0x34f   :  { %2271 = vperm.xlu0 %2924, %v1199_v23  }
 0x352   :  { %2917 = vset.pattern.permute.xlu1 %v5792_v0  ;;  %v3994_v53 = vpop.xlane.xlu0 %1125 }
 0x353   :  { %2681 = vrot.lane.b32.xlu0 %v1199_v23, %s3319_s2  ;;  %1283 = vperm.xlu1 %2917, %v1197_v57   ;;  %3206 = vrcp.f32 %v3994_v53  ;;  %v5817_v53 = vmov 3  }
 0x354   :  { %2927 = vset.pattern.permute.xlu0 %v5790_v14  ;;  %v3991_v43 = vpop.xlane.xlu1 %1128 }
 0x355   :  { %3208 = vrcp.f32 %v3991_v43 }
 0x357   :  { %2918 = vset.pattern.permute.xlu1 %v5796_v24  ;;  %1895 = vperm.xlu0 %2927, %v1201_v16  }
 0x358   :  { %1507 = vperm.xlu1 %2918, %v1197_v57  }
 0x35a   :  { %v4001_v59 = vpop.xlane.xlu0 %1131 }
 0x35b   :  { %2930 = vset.pattern.permute.xlu0 %v5796_v24  ;;  %3210 = vrcp.f32 %v4001_v59 }
 0x35c   :  { %2920 = vset.pattern.permute.xlu1 %v5794_v50  ;;  %1519 = vperm.xlu0 %2930, %v1203_v41   ;;  %v3998_v37 = vpop.xlane.xlu1 %1134 }
 0x35d   :  { %2267 = vperm.xlu1 %2920, %v1197_v57   ;;  %3212 = vrcp.f32 %v3998_v37 }
 0x360   :  { %2932 = vset.pattern.permute.xlu0 %v5794_v50 }
 0x361   :  { %2679 = vrot.lane.b32.xlu1 %v1197_v57, %s3319_s2  ;;  %2279 = vperm.xlu0 %2932, %v1203_v41  }
 0x362   :  { %2921 = vset.pattern.permute.xlu1 %v5792_v0  ;;  %v4011_v19 = vpop.xlane.xlu0 %1137 }
 0x363   :  { %3214 = vrcp.f32 %v4011_v19 }
 0x364   :  { %v4006_v49 = vpop.xlane.xlu1 %1140 }
 0x365   :  { %1288 = vperm.xlu1 %2921, %v1199_v23   ;;  %2685 = vrot.lane.b32.xlu0 %v1203_v41, %s3319_s2  ;;  %3216 = vrcp.f32 %v4006_v49 }
 0x366   :  { %2935 = vset.pattern.permute.xlu0 %v5790_v14 }
 0x369   :  { %2923 = vset.pattern.permute.xlu1 %v5790_v14  ;;  %1903 = vperm.xlu0 %2935, %v3968_v31  }
 0x36a   :  { %1891 = vperm.xlu1 %2923, %v1199_v23   ;;  %v4016_v38 = vpop.xlane.xlu0 %1143 }
 0x36b   :  { %3218 = vrcp.f32 %v4016_v38 }
 0x36c   :  { %v4013_v57 = vpop.xlane.xlu1 %1146 }
 0x36d   :  { %2938 = vset.pattern.permute.xlu0 %v5796_v24  ;;  %3220 = vrcp.f32 %v4013_v57 }
 0x36e   :  { %2925 = vset.pattern.permute.xlu1 %v5792_v0  ;;  %1527 = vperm.xlu0 %2938, %v3973_v13  }
 0x36f   :  { %1293 = vperm.xlu1 %2925, %v1201_v16  }
 0x372   :  { %2940 = vset.pattern.permute.xlu0 %v5794_v50  ;;  %v4023_v23 = vpop.xlane.xlu0 %1149 }
 0x373   :  { %2926 = vset.pattern.permute.xlu1 %v5796_v24  ;;  %2287 = vperm.xlu0 %2940, %v3973_v13   ;;  %3222 = vrcp.f32 %v4023_v23 }
 0x374   :  { %1515 = vperm.xlu1 %2926, %v1201_v16   ;;  %v4021_v8 = vpop.xlane.xlu1 %1152 }
 0x375   :  { %3224 = vrcp.f32 %v4021_v8 }
 0x377   :  { %2689 = vrot.lane.b32.xlu0 %v3973_v13, %s3319_s2 }
 0x378   :  { %2928 = vset.pattern.permute.xlu1 %v5794_v50  ;;  %2941 = vset.pattern.permute.xlu0 %v5792_v0 }
 0x379   :  { %2275 = vperm.xlu1 %2928, %v1201_v16  }
 0x37b   :  { %1313 = vperm.xlu0 %2941, %v3988_v10  }
 0x37c   :  { %v4029_v55 = vpop.xlane.xlu1 %1158 }
 0x37d   :  { %2683 = vrot.lane.b32.xlu1 %v1201_v16, %s3319_s2  ;;  %v4035_v16 = vpop.xlane.xlu0 %1155 }
 0x37e   :  { %2929 = vset.pattern.permute.xlu1 %v5792_v0  ;;  %3226 = vrcp.f32 %v4035_v16 }
 0x37f   :  { %2943 = vset.pattern.permute.xlu0 %v5790_v14  ;;  %3228 = vrcp.f32 %v4029_v55 }
 0x380   :  { %1911 = vperm.xlu0 %2943, %v3988_v10  }
 0x381   :  { %1298 = vperm.xlu1 %2929, %v1203_v41  }
 0x382   :  { %v4042_v58 = vpop.xlane.xlu0 %1161 }
 0x384   :  { %2946 = vset.pattern.permute.xlu0 %v5796_v24  ;;  %v4038_v33 = vpop.xlane.xlu1 %1164 }
 0x385   :  { %2931 = vset.pattern.permute.xlu1 %v5790_v14  ;;  %1535 = vperm.xlu0 %2946, %v4004_v35  }
 0x386   :  { %1899 = vperm.xlu1 %2931, %v1203_v41   ;;  %v3199_v41 = vpop.eup %3198  ;;  %3230 = vrcp.f32 %v4042_v58 }
 0x387   :  { %v4054_v20 = vmul.f32 %v3199_v41, %v3807_v26 }
 0x389   :  { %2948 = vset.pattern.permute.xlu0 %v5794_v50 }
 0x38a   :  { %2933 = vset.pattern.permute.xlu1 %v5792_v0  ;;  %2295 = vperm.xlu0 %2948, %v4004_v35   ;;  %v4050_v17 = vpop.xlane.xlu0 %1167 }
 0x38b   :  { %1303 = vperm.xlu1 %2933, %v3968_v31  }
 0x38c   :  { %v4046_v28 = vpop.xlane.xlu1 %1170 }
 0x38e   :  { %2693 = vrot.lane.b32.xlu0 %v4004_v35, %s3319_s2 }
 0x38f   :  { %2934 = vset.pattern.permute.xlu1 %v5796_v24  ;;  %2949 = vset.pattern.permute.xlu0 %v5792_v0 }
 0x390   :  { %1523 = vperm.xlu1 %2934, %v3968_v31  }
 0x392   :  { %1323 = vperm.xlu0 %2949, %v4033_v2   ;;  %v4061_v4 = vpop.xlane.xlu0 %1173 }
 0x394   :  { %2936 = vset.pattern.permute.xlu1 %v5794_v50  ;;  %v4057_v1 = vpop.xlane.xlu1 %1176 }
 0x395   :  { %2283 = vperm.xlu1 %2936, %v3968_v31  }
 0x396   :  { %2951 = vset.pattern.permute.xlu0 %v5790_v14 }
 0x397   :  { %1919 = vperm.xlu0 %2951, %v4033_v2  }
 0x399   :  { %2687 = vrot.lane.b32.xlu1 %v3968_v31, %s3319_s2  ;;  %v3201_v31 = vpop.eup %3200  ;;  %3232 = vrcp.f32 %v4038_v33 }
 0x39a   :  { %2937 = vset.pattern.permute.xlu1 %v5792_v0  ;;  %v4068_v26 = vpop.xlane.xlu0 %1179  ;;  %v4081_v39 = vmul.f32 %v3201_v31, %v3811_v40  ;;  %v3203_v48 = vpop.eup %3202  ;;  %3234 = vrcp.f32 %v4050_v17 }
 0x39b   :  { %2954 = vset.pattern.permute.xlu0 %v5796_v24  ;;  %v4103_v41 = vmul.f32 %v3203_v48, %v3817_v46  ;;  %v3205_v48 = vpop.eup %3204  ;;  %3236 = vrcp.f32 %v4046_v28 }
 0x39c   :  { %1543 = vperm.xlu0 %2954, %v4054_v20   ;;  %v4063_v42 = vpop.xlane.xlu1 %1182 }
 0x39d   :  { %1308 = vperm.xlu1 %2937, %v3973_v13  }
 0x3a0   :  { %2956 = vset.pattern.permute.xlu0 %v5794_v50 }
 0x3a1   :  { %2939 = vset.pattern.permute.xlu1 %v5790_v14  ;;  %2303 = vperm.xlu0 %2956, %v4054_v20  }
 0x3a2   :  { %1907 = vperm.xlu1 %2939, %v3973_v13   ;;  %v4075_v47 = vpop.xlane.xlu0 %1185 }
 0x3a4   :  { %v4071_v5 = vpop.xlane.xlu1 %1188 }
 0x3a5   :  { %2697 = vrot.lane.b32.xlu0 %v4054_v20, %s3319_s2 }
 0x3a6   :  { %2942 = vset.pattern.permute.xlu1 %v5796_v24  ;;  %2957 = vset.pattern.permute.xlu0 %v5792_v0 }
 0x3a7   :  { %1531 = vperm.xlu1 %2942, %v3988_v10  }
 0x3a8   :  { %v4083_v51 = vpop.permute.xlu1 %1495 }
 0x3a9   :  { %1333 = vperm.xlu0 %2957, %v4081_v39  }
 0x3aa   :  { %v4086_v13 = vpop.permute.xlu0 %1268 }
 0x3ab   :  { %5808 = vst [vmem:[#allocation5_spill] sm:$0xff] %v4086_v13  ;;  %2944 = vset.pattern.permute.xlu1 %v5794_v50  ;;  %v3207_v13 = vpop.eup %3206  ;;  %3238 = vrcp.f32 %v4061_v4 }
 0x3ac   :  { %2291 = vperm.xlu1 %2944, %v3988_v10   ;;  %v4090_v30 = vpop.permute.xlu1 %2255 }
 0x3ad   :  { %2959 = vset.pattern.permute.xlu0 %v5790_v14 }
 0x3ae   :  { %1927 = vperm.xlu0 %2959, %v4081_v39  }
 0x3af   :  { %v4094_v52 = vpop.permute.xlu0 %1875 }
 0x3b0   :  { %2691 = vrot.lane.b32.xlu1 %v3988_v10, %s3319_s2 }
 0x3b1   :  { %v4099_v40 = vpop.permute.xlu1 %1273  ;;  %2945 = vset.pattern.permute.xlu1 %v5792_v0 }
 0x3b2   :  { %5809 = vst [vmem:[#allocation6_spill] sm:$0xff] %v4099_v40  ;;  %2962 = vset.pattern.permute.xlu0 %v5796_v24  ;;  %v5814_v40 = vmov 0  }
 0x3b3   :  { %v4106_v31 = vpop.permute.xlu0 %2673  ;;  %1551 = vperm.xlu0 %2962, %v4103_v41  }
 0x3b4   :  { %5810 = vst [vmem:[#allocation7_spill] sm:$0xff] %v4106_v31  ;;  %1318 = vperm.xlu1 %2945, %v4004_v35  }
 0x3b6   :  { %v4110_v14 = vpop.permute.xlu1 %1879 }
 0x3b7   :  { %v4112_v10 = vpop.permute.xlu0 %1499  ;;  %2964 = vset.pattern.permute.xlu0 %v5794_v50 }
 0x3b8   :  { %2947 = vset.pattern.permute.xlu1 %v5811_v9  ;;  %2311 = vperm.xlu0 %2964, %v4103_v41  }
 0x3b9   :  { %1915 = vperm.xlu1 %2947, %v4004_v35   ;;  %v4131_v35 = vmul.f32 %v3205_v48, %v3821_v54  ;;  %v4151_v48 = vmul.f32 %v3207_v13, %v3827_v6  ;;  %v3209_v6 = vpop.eup %3208  ;;  %3240 = vrcp.f32 %v4057_v1 }
 0x3ba   :  { %v4118_v46 = vpop.permute.xlu1 %2675 }
 0x3bb   :  { %5812 = vst [vmem:[#allocation8_spill] sm:$0xff] %v4118_v46 }
 0x3bc   :  { %v4121_v0 = vpop.permute.xlu0 %2259  ;;  %2701 = vrot.lane.b32.xlu0 %v4103_v41, %s3319_s2 }
 0x3bd   :  { %5813 = vst [vmem:[#allocation9_spill] sm:$0xff] %v4121_v0  ;;  %2950 = vset.pattern.permute.xlu1 %v5796_v24  ;;  %2965 = vset.pattern.permute.xlu0 %v5814_v40 }
 0x3be   :  { %1539 = vperm.xlu1 %2950, %v4033_v2   ;;  %v4128_v50 = vpop.permute.xlu1 %1278 }
 0x3bf   :  { %5815 = vst [vmem:[#allocation10_spill] sm:$0xff] %v4128_v50  ;;  %v5819_v50 = vmov 1  }
 0x3c0   :  { %v4133_v46 = vpop.permute.xlu0 %2677  ;;  %1343 = vperm.xlu0 %2965, %v4131_v35  }
 0x3c1   :  { %5816 = vst [vmem:[#allocation11_spill] sm:$0xff] %v4133_v46 }
 0x3c2   :  { %2952 = vset.pattern.permute.xlu1 %v5817_v53 }
 0x3c3   :  { %2299 = vperm.xlu1 %2952, %v4033_v2   ;;  %v4138_v31 = vpop.permute.xlu1 %1503 }
 0x3c4   :  { %v4140_v24 = vpop.permute.xlu0 %1887  ;;  %2967 = vset.pattern.permute.xlu0 %v5811_v9 }
 0x3c5   :  { %1935 = vperm.xlu0 %2967, %v4131_v35  }
 0x3c7   :  { %2695 = vrot.lane.b32.xlu1 %v4033_v2, %s3319_s2 }
 0x3c8   :  { %v4147_v54 = vpop.permute.xlu1 %1883  ;;  %2953 = vset.pattern.permute.xlu1 %v5814_v40 }
 0x3c9   :  { %5818 = vst [vmem:[#allocation12_spill] sm:$0xff] %v4147_v54  ;;  %v4153_v46 = vpop.permute.xlu0 %1511  ;;  %2970 = vset.pattern.permute.xlu0 %v5819_v50  ;;  %v4177_v54 = vmul.f32 %v3209_v6, %v3831_v27 }
 0x3ca   :  { %1559 = vperm.xlu0 %2970, %v4151_v48  }
 0x3cb   :  { %1328 = vperm.xlu1 %2953, %v4054_v20  }
 0x3cd   :  { %v4158_v0 = vpop.permute.xlu1 %2263 }
 0x3ce   :  { %v4160_v2 = vpop.permute.xlu0 %2271  ;;  %2972 = vset.pattern.permute.xlu0 %v5817_v53 }
 0x3cf   :  { %5820 = vst [vmem:[#allocation13_spill] sm:$0xff] %v4160_v2  ;;  %2955 = vset.pattern.permute.xlu1 %v5811_v9  ;;  %2319 = vperm.xlu0 %2972, %v4151_v48  }
 0x3d0   :  { %1923 = vperm.xlu1 %2955, %v4054_v20  }
 0x3d2   :  { %v4167_v43 = vpop.permute.xlu0 %2681  ;;  %v4169_v13 = vpop.permute.xlu1 %1283 }
 0x3d3   :  { %5821 = vst [vmem:[#allocation14_spill] sm:$0xff] %v4167_v43  ;;  %5822 = vst [vmem:[#allocation15_spill] sm:$0xff] %v4169_v13  ;;  %2705 = vrot.lane.b32.xlu0 %v4151_v48, %s3319_s2  ;;  %v3211_v13 = vpop.eup %3210  ;;  %3242 = vrcp.f32 %v4068_v26 }
 0x3d4   :  { %2958 = vset.pattern.permute.xlu1 %v5819_v50  ;;  %2973 = vset.pattern.permute.xlu0 %v5814_v40  ;;  %v4196_v27 = vmul.f32 %v3211_v13, %v3837_v12  ;;  %v3213_v37 = vpop.eup %3212  ;;  %3244 = vrcp.f32 %v4063_v42 }
 0x3d5   :  { %1547 = vperm.xlu1 %2958, %v4081_v39  }
 0x3d6   :  { %v4179_v20 = vpop.permute.xlu0 %1895 }
 0x3d7   :  { %1353 = vperm.xlu0 %2973, %v4177_v54   ;;  %v4182_v59 = vpop.permute.xlu1 %1507 }
 0x3d8   :  { %5823 = vst [vmem:[#allocation16_spill] sm:$0xff] %v4182_v59 }
 0x3d9   :  { %2960 = vset.pattern.permute.xlu1 %v5817_v53 }
 0x3da   :  { %2307 = vperm.xlu1 %2960, %v4081_v39  }
 0x3db   :  { %v4186_v43 = vpop.permute.xlu0 %1519  ;;  %2975 = vset.pattern.permute.xlu0 %v5811_v9 }
 0x3dc   :  { %1943 = vperm.xlu0 %2975, %v4177_v54   ;;  %v4190_v2 = vpop.permute.xlu1 %2267 }
 0x3dd   :  { %5824 = vst [vmem:[#allocation17_spill] sm:$0xff] %v4190_v2 }
 0x3de   :  { %2699 = vrot.lane.b32.xlu1 %v4081_v39, %s3319_s2 }
 0x3df   :  { %2961 = vset.pattern.permute.xlu1 %v5814_v40 }
 0x3e0   :  { %v4199_v6 = vpop.permute.xlu0 %2279  ;;  %2978 = vset.pattern.permute.xlu0 %v5819_v50  ;;  %v4202_v59 = vpop.permute.xlu1 %2679 }
 0x3e1   :  { %5825 = vst [vmem:[#allocation18_spill] sm:$0xff] %v4202_v59  ;;  %1567 = vperm.xlu0 %2978, %v4196_v27   ;;  %v3215_v59 = vpop.eup %3214  ;;  %3246 = vrcp.f32 %v4075_v47 }
 0x3e2   :  { %1338 = vperm.xlu1 %2961, %v4103_v41  }
 0x3e4   :  { %v4206_v2 = vpop.permute.xlu0 %2685  ;;  %v4208_v39 = vpop.permute.xlu1 %1288 }
 0x3e5   :  { %5826 = vst [vmem:[#allocation19_spill] sm:$0xff] %v4206_v2  ;;  %5827 = vst [vmem:[#allocation20_spill] sm:$0xff] %v4208_v39  ;;  %2980 = vset.pattern.permute.xlu0 %v5817_v53  ;;  %v4225_v2 = vmul.f32 %v3213_v37, %v3841_v36  ;;  %v4246_v37 = vmul.f32 %v3215_v59, %v3847_v32 }
 0x3e6   :  { %2327 = vperm.xlu0 %2980, %v4196_v27   ;;  %2963 = vset.pattern.permute.xlu1 %v5811_v9 }
 0x3e7   :  { %1931 = vperm.xlu1 %2963, %v4103_v41  }
 0x3e8   :  { %v4214_v12 = vpop.permute.xlu0 %1903 }
 0x3e9   :  { %v4217_v13 = vpop.permute.xlu1 %1891 }
 0x3ea   :  { %5828 = vst [vmem:[#allocation21_spill] sm:$0xff] %v4217_v13  ;;  %2709 = vrot.lane.b32.xlu0 %v4196_v27, %s3319_s2 }
 0x3eb   :  { %2966 = vset.pattern.permute.xlu1 %v5819_v50  ;;  %2981 = vset.pattern.permute.xlu0 %v5814_v40 }
 0x3ec   :  { %1555 = vperm.xlu1 %2966, %v4131_v35  }
 0x3ed   :  { %v4227_v41 = vpop.permute.xlu0 %1527 }
 0x3ee   :  { %1363 = vperm.xlu0 %2981, %v4225_v2   ;;  %v4230_v39 = vpop.permute.xlu1 %1293 }
 0x3ef   :  { %5829 = vst [vmem:[#allocation22_spill] sm:$0xff] %v4230_v39 }
 0x3f0   :  { %2968 = vset.pattern.permute.xlu1 %v5817_v53 }
 0x3f1   :  { %2315 = vperm.xlu1 %2968, %v4131_v35  }
 0x3f2   :  { %v4234_v19 = vpop.permute.xlu0 %2287  ;;  %2983 = vset.pattern.permute.xlu0 %v5811_v9 }
 0x3f3   :  { %1951 = vperm.xlu0 %2983, %v4225_v2   ;;  %v4238_v13 = vpop.permute.xlu1 %1515 }
 0x3f4   :  { %5830 = vst [vmem:[#allocation23_spill] sm:$0xff] %v4238_v13 }
 0x3f5   :  { %2703 = vrot.lane.b32.xlu1 %v4131_v35, %s3319_s2  ;;  %v3217_v35 = vpop.eup %3216  ;;  %3248 = vrcp.f32 %v4071_v5 }
 0x3f6   :  { %v4243_v36 = vpop.permute.xlu0 %2689  ;;  %2969 = vset.pattern.permute.xlu1 %v5814_v40 }
 0x3f7   :  { %5831 = vst [vmem:[#allocation24_spill] sm:$0xff] %v4243_v36  ;;  %2986 = vset.pattern.permute.xlu0 %v5819_v50  ;;  %v4273_v36 = vmul.f32 %v3217_v35, %v3851_v63 }
 0x3f8   :  { %1575 = vperm.xlu0 %2986, %v4246_v37   ;;  %v4251_v39 = vpop.permute.xlu1 %2275 }
 0x3f9   :  { %1348 = vperm.xlu1 %2969, %v4151_v48  }
 0x3fa   :  { %v4254_v13 = vpop.permute.xlu0 %1313 }
 0x3fb   :  { %5832 = vst [vmem:[#allocation25_spill] sm:$0xff] %v4254_v13 }
 0x3fc   :  { %2988 = vset.pattern.permute.xlu0 %v5817_v53  ;;  %v4257_v49 = vpop.permute.xlu1 %2683 }
 0x3fd   :  { %5833 = vst [vmem:[#allocation26_spill] sm:$0xff] %v4257_v49  ;;  %2335 = vperm.xlu0 %2988, %v4246_v37   ;;  %2971 = vset.pattern.permute.xlu1 %v5811_v9  ;;  %v3219_v49 = vpop.eup %3218 }
 0x3fe   :  { %1939 = vperm.xlu1 %2971, %v4151_v48   ;;  %v4294_v35 = vmul.f32 %v3219_v49, %v3857_v61 }
 0x3ff   :  { %v4262_v32 = vpop.permute.xlu0 %1911 }
 0x400   :  { %v4265_v59 = vpop.permute.xlu1 %1298 }
 0x401   :  { %5834 = vst [vmem:[#allocation27_spill] sm:$0xff] %v4265_v59  ;;  %2713 = vrot.lane.b32.xlu0 %v4246_v37, %s3319_s2 }
 0x402   :  { %2974 = vset.pattern.permute.xlu1 %v5819_v50  ;;  %2989 = vset.pattern.permute.xlu0 %v5814_v40 }
 0x403   :  { %1563 = vperm.xlu1 %2974, %v4177_v54  }
 0x404   :  { %v4275_v48 = vpop.permute.xlu0 %1535 }
 0x405   :  { %1373 = vperm.xlu0 %2989, %v4273_v36   ;;  %v4278_v13 = vpop.permute.xlu1 %1899 }
 0x406   :  { %5835 = vst [vmem:[#allocation28_spill] sm:$0xff] %v4278_v13 }
 0x407   :  { %2976 = vset.pattern.permute.xlu1 %v5817_v53 }
 0x408   :  { %2323 = vperm.xlu1 %2976, %v4177_v54  }
 0x409   :  { %v4282_v38 = vpop.permute.xlu0 %2295  ;;  %2991 = vset.pattern.permute.xlu0 %v5811_v9 }
 0x40a   :  { %1959 = vperm.xlu0 %2991, %v4273_v36   ;;  %v4286_v59 = vpop.permute.xlu1 %1303 }
 0x40b   :  { %5836 = vst [vmem:[#allocation29_spill] sm:$0xff] %v4286_v59 }
 0x40c   :  { %2707 = vrot.lane.b32.xlu1 %v4177_v54, %s3319_s2  ;;  %v3221_v54 = vpop.eup %3220 }
 0x40d   :  { %v4291_v63 = vpop.permute.xlu0 %2693  ;;  %2977 = vset.pattern.permute.xlu1 %v5814_v40 }
 0x40e   :  { %5837 = vst [vmem:[#allocation30_spill] sm:$0xff] %v4291_v63  ;;  %2994 = vset.pattern.permute.xlu0 %v5819_v50  ;;  %v4321_v63 = vmul.f32 %v3221_v54, %v3861_v11 }
 0x40f   :  { %1583 = vperm.xlu0 %2994, %v4294_v35   ;;  %v4299_v13 = vpop.permute.xlu1 %1523 }
 0x410   :  { %1358 = vperm.xlu1 %2977, %v4196_v27  }
 0x411   :  { %v4302_v59 = vpop.permute.xlu0 %1323 }
 0x412   :  { %5838 = vst [vmem:[#allocation31_spill] sm:$0xff] %v4302_v59 }
 0x413   :  { %2996 = vset.pattern.permute.xlu0 %v5817_v53 }
 0x414   :  { %2343 = vperm.xlu0 %2996, %v4294_v35   ;;  %2979 = vset.pattern.permute.xlu1 %v5811_v9  ;;  %v4307_v61 = vpop.permute.xlu1 %2283 }
 0x415   :  { %5839 = vst [vmem:[#allocation32_spill] sm:$0xff] %v4307_v61  ;;  %1947 = vperm.xlu1 %2979, %v4196_v27  }
 0x416   :  { %v4310_v57 = vpop.permute.xlu0 %1919 }
 0x418   :  { %2717 = vrot.lane.b32.xlu0 %v4294_v35, %s3319_s2  ;;  %v4315_v49 = vpop.permute.xlu1 %2687 }
 0x419   :  { %5840 = vst [vmem:[#allocation33_spill] sm:$0xff] %v4315_v49  ;;  %2982 = vset.pattern.permute.xlu1 %v5819_v50  ;;  %2997 = vset.pattern.permute.xlu0 %v5814_v40  ;;  %v3223_v49 = vpop.eup %3222 }
 0x41a   :  { %1571 = vperm.xlu1 %2982, %v4225_v2   ;;  %v4342_v54 = vmul.f32 %v3223_v49, %v3867_v56 }
 0x41b   :  { %v4323_v27 = vpop.permute.xlu0 %1543 }
 0x41c   :  { %1383 = vperm.xlu0 %2997, %v4321_v63   ;;  %v4326_v59 = vpop.permute.xlu1 %1308 }
 0x41d   :  { %5841 = vst [vmem:[#allocation34_spill] sm:$0xff] %v4326_v59 }
 0x41e   :  { %2984 = vset.pattern.permute.xlu1 %v5817_v53 }
 0x41f   :  { %2331 = vperm.xlu1 %2984, %v4225_v2  }
 0x420   :  { %v4330_v23 = vpop.permute.xlu0 %2303  ;;  %2999 = vset.pattern.permute.xlu0 %v5811_v9 }
 0x421   :  { %1967 = vperm.xlu0 %2999, %v4321_v63   ;;  %v4334_v61 = vpop.permute.xlu1 %1907 }
 0x422   :  { %5842 = vst [vmem:[#allocation35_spill] sm:$0xff] %v4334_v61 }
 0x423   :  { %2711 = vrot.lane.b32.xlu1 %v4225_v2, %s3319_s2  ;;  %v3225_v2 = vpop.eup %3224 }
 0x424   :  { %v4339_v11 = vpop.permute.xlu0 %2697  ;;  %2985 = vset.pattern.permute.xlu1 %v5814_v40 }
 0x425   :  { %5843 = vst [vmem:[#allocation36_spill] sm:$0xff] %v4339_v11  ;;  %3002 = vset.pattern.permute.xlu0 %v5819_v50  ;;  %v4369_v11 = vmul.f32 %v3225_v2, %v3871_v29 }
 0x426   :  { %1591 = vperm.xlu0 %3002, %v4342_v54   ;;  %v4347_v59 = vpop.permute.xlu1 %1531 }
 0x427   :  { %1368 = vperm.xlu1 %2985, %v4246_v37  }
 0x428   :  { %v4350_v61 = vpop.permute.xlu0 %1333 }
 0x429   :  { %5844 = vst [vmem:[#allocation37_spill] sm:$0xff] %v4350_v61 }
 0x42a   :  { %3004 = vset.pattern.permute.xlu0 %v5817_v53 }
 0x42b   :  { %2351 = vperm.xlu0 %3004, %v4342_v54   ;;  %2987 = vset.pattern.permute.xlu1 %v5811_v9  ;;  %v4355_v56 = vpop.permute.xlu1 %2291 }
 0x42c   :  { %5845 = vst [vmem:[#allocation38_spill] sm:$0xff] %v4355_v56  ;;  %1955 = vperm.xlu1 %2987, %v4246_v37  }
 0x42d   :  { %v4358_v8 = vpop.permute.xlu0 %1927 }
 0x42f   :  { %2721 = vrot.lane.b32.xlu0 %v4342_v54, %s3319_s2  ;;  %v4363_v49 = vpop.permute.xlu1 %2691 }
 0x430   :  { %5846 = vst [vmem:[#allocation39_spill] sm:$0xff] %v4363_v49  ;;  %2990 = vset.pattern.permute.xlu1 %v5819_v50  ;;  %3005 = vset.pattern.permute.xlu0 %v5814_v40  ;;  %v3227_v49 = vpop.eup %3226 }
 0x431   :  { %1579 = vperm.xlu1 %2990, %v4273_v36   ;;  %v4390_v2 = vmul.f32 %v3227_v49, %v3877_v45 }
 0x432   :  { %v4371_v37 = vpop.permute.xlu0 %1551 }
 0x433   :  { %1393 = vperm.xlu0 %3005, %v4369_v11   ;;  %v4374_v61 = vpop.permute.xlu1 %1318 }
 0x434   :  { %5847 = vst [vmem:[#allocation40_spill] sm:$0xff] %v4374_v61 }
 0x435   :  { %2992 = vset.pattern.permute.xlu1 %v5817_v53 }
 0x436   :  { %2339 = vperm.xlu1 %2992, %v4273_v36  }
 0x437   :  { %v4378_v16 = vpop.permute.xlu0 %2311  ;;  %3007 = vset.pattern.permute.xlu0 %v5811_v9 }
 0x438   :  { %1975 = vperm.xlu0 %3007, %v4369_v11   ;;  %v4382_v56 = vpop.permute.xlu1 %1915 }
 0x439   :  { %5848 = vst [vmem:[#allocation41_spill] sm:$0xff] %v4382_v56 }
 0x43a   :  { %2715 = vrot.lane.b32.xlu1 %v4273_v36, %s3319_s2  ;;  %v3229_v36 = vpop.eup %3228 }
 0x43b   :  { %v4387_v29 = vpop.permute.xlu0 %2701  ;;  %2993 = vset.pattern.permute.xlu1 %v5814_v40 }
 0x43c   :  { %5849 = vst [vmem:[#allocation42_spill] sm:$0xff] %v4387_v29  ;;  %3010 = vset.pattern.permute.xlu0 %v5819_v50  ;;  %v4417_v29 = vmul.f32 %v3229_v36, %v3881_v60 }
 0x43d   :  { %1599 = vperm.xlu0 %3010, %v4390_v2   ;;  %v4395_v61 = vpop.permute.xlu1 %1539 }
 0x43e   :  { %1378 = vperm.xlu1 %2993, %v4294_v35  }
 0x43f   :  { %v4398_v56 = vpop.permute.xlu0 %1343 }
 0x440   :  { %5850 = vst [vmem:[#allocation43_spill] sm:$0xff] %v4398_v56 }
 0x441   :  { %3012 = vset.pattern.permute.xlu0 %v5817_v53 }
 0x442   :  { %2359 = vperm.xlu0 %3012, %v4390_v2   ;;  %2995 = vset.pattern.permute.xlu1 %v5811_v9  ;;  %v4403_v45 = vpop.permute.xlu1 %2299 }
 0x443   :  { %5851 = vst [vmem:[#allocation44_spill] sm:$0xff] %v4403_v45  ;;  %1963 = vperm.xlu1 %2995, %v4294_v35  }
 0x444   :  { %v4406_v55 = vpop.permute.xlu0 %1935 }
 0x446   :  { %2725 = vrot.lane.b32.xlu0 %v4390_v2, %s3319_s2  ;;  %v4411_v49 = vpop.permute.xlu1 %2695 }
 0x447   :  { %5852 = vst [vmem:[#allocation45_spill] sm:$0xff] %v4411_v49  ;;  %2998 = vset.pattern.permute.xlu1 %v5819_v50  ;;  %3013 = vset.pattern.permute.xlu0 %v5814_v40  ;;  %v3231_v49 = vpop.eup %3230 }
 0x448   :  { %1587 = vperm.xlu1 %2998, %v4321_v63   ;;  %v4438_v36 = vmul.f32 %v3231_v49, %v3887_v3 }
 0x449   :  { %v4419_v35 = vpop.permute.xlu0 %1559 }
 0x44a   :  { %1403 = vperm.xlu0 %3013, %v4417_v29   ;;  %v4422_v56 = vpop.permute.xlu1 %1328 }
 0x44b   :  { %5853 = vst [vmem:[#allocation46_spill] sm:$0xff] %v4422_v56 }
 0x44c   :  { %3000 = vset.pattern.permute.xlu1 %v5817_v53 }
 0x44d   :  { %2347 = vperm.xlu1 %3000, %v4321_v63  }
 0x44e   :  { %v4426_v58 = vpop.permute.xlu0 %2319  ;;  %3015 = vset.pattern.permute.xlu0 %v5811_v9 }
 0x44f   :  { %1983 = vperm.xlu0 %3015, %v4417_v29   ;;  %v4430_v45 = vpop.permute.xlu1 %1923 }
 0x450   :  { %5854 = vst [vmem:[#allocation47_spill] sm:$0xff] %v4430_v45 }
 0x451   :  { %2719 = vrot.lane.b32.xlu1 %v4321_v63, %s3319_s2  ;;  %v3233_v63 = vpop.eup %3232 }
 0x452   :  { %v4435_v60 = vpop.permute.xlu0 %2705  ;;  %3001 = vset.pattern.permute.xlu1 %v5814_v40 }
 0x453   :  { %5855 = vst [vmem:[#allocation48_spill] sm:$0xff] %v4435_v60  ;;  %3018 = vset.pattern.permute.xlu0 %v5819_v50  ;;  %v4465_v60 = vmul.f32 %v3233_v63, %v3891_v7 }
 0x454   :  { %1607 = vperm.xlu0 %3018, %v4438_v36   ;;  %v4443_v56 = vpop.permute.xlu1 %1547 }
 0x455   :  { %1388 = vperm.xlu1 %3001, %v4342_v54  }
 0x456   :  { %v4446_v45 = vpop.permute.xlu0 %1353 }
 0x457   :  { %5856 = vst [vmem:[#allocation49_spill] sm:$0xff] %v4446_v45 }
 0x458   :  { %3020 = vset.pattern.permute.xlu0 %v5817_v53 }
 0x459   :  { %2367 = vperm.xlu0 %3020, %v4438_v36   ;;  %3003 = vset.pattern.permute.xlu1 %v5811_v9  ;;  %v4451_v3 = vpop.permute.xlu1 %2307 }
 0x45a   :  { %5857 = vst [vmem:[#allocation50_spill] sm:$0xff] %v4451_v3  ;;  %1971 = vperm.xlu1 %3003, %v4342_v54  }
 0x45b   :  { %v4454_v33 = vpop.permute.xlu0 %1943 }
 0x45d   :  { %2729 = vrot.lane.b32.xlu0 %v4438_v36, %s3319_s2  ;;  %v4459_v49 = vpop.permute.xlu1 %2699 }
 0x45e   :  { %5858 = vst [vmem:[#allocation51_spill] sm:$0xff] %v4459_v49  ;;  %3006 = vset.pattern.permute.xlu1 %v5819_v50  ;;  %3021 = vset.pattern.permute.xlu0 %v5814_v40  ;;  %v3235_v49 = vpop.eup %3234 }
 0x45f   :  { %1595 = vperm.xlu1 %3006, %v4369_v11   ;;  %v4486_v63 = vmul.f32 %v3235_v49, %v3897_v22 }
 0x460   :  { %v4467_v54 = vpop.permute.xlu0 %1567 }
 0x461   :  { %1413 = vperm.xlu0 %3021, %v4465_v60   ;;  %v4470_v45 = vpop.permute.xlu1 %1338 }
 0x462   :  { %5859 = vst [vmem:[#allocation52_spill] sm:$0xff] %v4470_v45 }
 0x463   :  { %3008 = vset.pattern.permute.xlu1 %v5817_v53 }
 0x464   :  { %2355 = vperm.xlu1 %3008, %v4369_v11  }
 0x465   :  { %v4474_v17 = vpop.permute.xlu0 %2327  ;;  %3023 = vset.pattern.permute.xlu0 %v5811_v9 }
 0x466   :  { %1991 = vperm.xlu0 %3023, %v4465_v60   ;;  %v4478_v3 = vpop.permute.xlu1 %1931 }
 0x467   :  { %5860 = vst [vmem:[#allocation53_spill] sm:$0xff] %v4478_v3 }
 0x468   :  { %2723 = vrot.lane.b32.xlu1 %v4369_v11, %s3319_s2  ;;  %v3237_v11 = vpop.eup %3236 }
 0x469   :  { %v4483_v7 = vpop.permute.xlu0 %2709  ;;  %3009 = vset.pattern.permute.xlu1 %v5814_v40 }
 0x46a   :  { %5861 = vst [vmem:[#allocation54_spill] sm:$0xff] %v4483_v7  ;;  %3026 = vset.pattern.permute.xlu0 %v5819_v50  ;;  %v4513_v7 = vmul.f32 %v3237_v11, %v3901_v25 }
 0x46b   :  { %1615 = vperm.xlu0 %3026, %v4486_v63   ;;  %v4491_v45 = vpop.permute.xlu1 %1555 }
 0x46c   :  { %1398 = vperm.xlu1 %3009, %v4390_v2  }
 0x46d   :  { %v4494_v3 = vpop.permute.xlu0 %1363 }
 0x46e   :  { %5862 = vst [vmem:[#allocation55_spill] sm:$0xff] %v4494_v3 }
 0x46f   :  { %3028 = vset.pattern.permute.xlu0 %v5817_v53 }
 0x470   :  { %2375 = vperm.xlu0 %3028, %v4486_v63   ;;  %3011 = vset.pattern.permute.xlu1 %v5811_v9  ;;  %v4499_v22 = vpop.permute.xlu1 %2315 }
 0x471   :  { %5863 = vst [vmem:[#allocation56_spill] sm:$0xff] %v4499_v22  ;;  %1979 = vperm.xlu1 %3011, %v4390_v2  }
 0x472   :  { %v4502_v28 = vpop.permute.xlu0 %1951 }
 0x474   :  { %2733 = vrot.lane.b32.xlu0 %v4486_v63, %s3319_s2  ;;  %v4507_v49 = vpop.permute.xlu1 %2703 }
 0x475   :  { %5864 = vst [vmem:[#allocation57_spill] sm:$0xff] %v4507_v49  ;;  %3014 = vset.pattern.permute.xlu1 %v5819_v50  ;;  %3029 = vset.pattern.permute.xlu0 %v5814_v40  ;;  %v3239_v49 = vpop.eup %3238 }
 0x476   :  { %1603 = vperm.xlu1 %3014, %v4417_v29   ;;  %v4534_v11 = vmul.f32 %v3239_v49, %v3907_v15 }
 0x477   :  { %v4515_v2 = vpop.permute.xlu0 %1575 }
 0x478   :  { %1423 = vperm.xlu0 %3029, %v4513_v7   ;;  %v4518_v3 = vpop.permute.xlu1 %1348 }
 0x479   :  { %5865 = vst [vmem:[#allocation58_spill] sm:$0xff] %v4518_v3 }
 0x47a   :  { %3016 = vset.pattern.permute.xlu1 %v5817_v53 }
 0x47b   :  { %2363 = vperm.xlu1 %3016, %v4417_v29  }
 0x47c   :  { %v4522_v4 = vpop.permute.xlu0 %2335  ;;  %3031 = vset.pattern.permute.xlu0 %v5811_v9 }
 0x47d   :  { %1999 = vperm.xlu0 %3031, %v4513_v7   ;;  %v4526_v22 = vpop.permute.xlu1 %1939 }
 0x47e   :  { %5866 = vst [vmem:[#allocation59_spill] sm:$0xff] %v4526_v22 }
 0x47f   :  { %2727 = vrot.lane.b32.xlu1 %v4417_v29, %s3319_s2  ;;  %v3241_v29 = vpop.eup %3240 }
 0x480   :  { %v4531_v25 = vpop.permute.xlu0 %2713  ;;  %3017 = vset.pattern.permute.xlu1 %v5814_v40 }
 0x481   :  { %5867 = vst [vmem:[#allocation60_spill] sm:$0xff] %v4531_v25  ;;  %3034 = vset.pattern.permute.xlu0 %v5819_v50  ;;  %v4560_v25 = vmul.f32 %v3241_v29, %v3911_v18 }
 0x482   :  { %1623 = vperm.xlu0 %3034, %v4534_v11   ;;  %v4539_v3 = vpop.permute.xlu1 %1563 }
 0x483   :  { %5868 = vst [vmem:[#allocation61_spill] sm:$0xff] %v4539_v3  ;;  %1408 = vperm.xlu1 %3017, %v4438_v36  }
 0x484   :  { %v4542_v22 = vpop.permute.xlu0 %1373 }
 0x485   :  { %5869 = vst [vmem:[#allocation62_spill] sm:$0xff] %v4542_v22 }
 0x486   :  { %3036 = vset.pattern.permute.xlu0 %v5817_v53 }
 0x487   :  { %2383 = vperm.xlu0 %3036, %v4534_v11   ;;  %3019 = vset.pattern.permute.xlu1 %v5811_v9  ;;  %v4547_v15 = vpop.permute.xlu1 %2323 }
 0x488   :  { %5870 = vst [vmem:[#allocation63_spill] sm:$0xff] %v4547_v15  ;;  %1987 = vperm.xlu1 %3019, %v4438_v36   ;;  %v4567_v15 = vld [vmem:[#allocation2] sm:$0xff] }
 0x489   :  { %v4550_v1 = vpop.permute.xlu0 %1959 }
 0x48b   :  { %2737 = vrot.lane.b32.xlu0 %v4534_v11, %s3319_s2  ;;  %v4554_v49 = vpop.permute.xlu1 %2707 }
 0x48c   :  { %5871 = vst [vmem:[#allocation64_spill] sm:$0xff] %v4554_v49  ;;  %3022 = vset.pattern.permute.xlu1 %v5819_v50  ;;  %3037 = vset.pattern.permute.xlu0 %v5814_v40  ;;  %v1646_v49 = vmul.f32 %v4567_v15, %v4083_v51  ;;  %v2406_v51 = vmul.f32 %v4567_v15, %v4090_v30 }
 0x48d   :  { %1611 = vperm.xlu1 %3022, %v4465_v60  }
 0x48e   :  { %v4562_v22 = vpop.permute.xlu0 %1583 }
 0x48f   :  { %1433 = vperm.xlu0 %3037, %v4560_v25   ;;  %v4565_v36 = vpop.permute.xlu1 %1358 }
 0x490   :  { %5872 = vst [vmem:[#allocation65_spill] sm:$0xff] %v4565_v36 }
 0x491   :  { %3024 = vset.pattern.permute.xlu1 %v5817_v53 }
 0x492   :  { %2371 = vperm.xlu1 %3024, %v4465_v60  }
 0x493   :  { %v4573_v3 = vpop.permute.xlu0 %2343  ;;  %1722 = vrot.lane.b32.xlu0 %v1646_v49, %s3320_s12 }
 0x494   :  { %v4577_v18 = vpop.permute.xlu1 %1947  ;;  %3039 = vset.pattern.permute.xlu0 %v5811_v9 }
 0x496   :  { %2731 = vrot.lane.b32.xlu1 %v4465_v60, %s3319_s2  ;;  %v4595_v60 = vld [vmem:[#allocation2 + $0x8] sm:$0xff] }
 0x497   :  { %v4582_v29 = vpop.permute.xlu0 %2717  ;;  %2007 = vperm.xlu0 %3039, %v4560_v25   ;;  %3025 = vset.pattern.permute.xlu1 %v5814_v40  ;;  %v2027_v49 = vmul.f32 %v4595_v60, %v4110_v14 }
 0x498   :  { %5873 = vst [vmem:[#allocation66_spill] sm:$0xff] %v4582_v29  ;;  %v3243_v29 = vpop.eup %3242 }
 0x499   :  { %v4588_v36 = vpop.permute.xlu1 %1571 }
 0x49a   :  { %5874 = vst [vmem:[#allocation67_spill] sm:$0xff] %v4588_v36  ;;  %1418 = vperm.xlu1 %3025, %v4486_v63  }
 0x49b   :  { %v4591_v26 = vpop.permute.xlu0 %1383  ;;  %2482 = vrot.lane.b32.xlu0 %v2406_v51, %s3319_s2 }
 0x49c   :  { %5875 = vst [vmem:[#allocation68_spill] sm:$0xff] %v4591_v26  ;;  %3042 = vset.pattern.permute.xlu0 %v5819_v50  ;;  %v4608_v26 = vmul.f32 %v3243_v29, %v3917_v21 }
 0x49e   :  { %3027 = vset.pattern.permute.xlu1 %v5811_v9  ;;  %v4601_v30 = vpop.permute.xlu1 %2331  ;;  %5877 = vst [vmem:[#allocation70_spill] sm:$0xff] %v4608_v26 }
 0x49f   :  { %5876 = vst [vmem:[#allocation69_spill] sm:$0xff] %v4601_v30  ;;  %2104 = vrot.lane.b32.xlu0 %v2027_v49, %s3321_s13  ;;  %1995 = vperm.xlu1 %3027, %v4486_v63   ;;  %v3245_v63 = vpop.eup %3244 }
 0x4a0   :  { %v4605_v51 = vpop.permute.xlu0 %1967  ;;  %v4628_v49 = vmul.f32 %v3245_v63, %v3921_v44  ;;  %v4663_v63 = vld [vmem:[#allocation2 + $0x18] sm:$0xff] }
 0x4a2   :  { %v4610_v36 = vpop.permute.xlu1 %2711  ;;  %5881 = vst [vmem:[#allocation74_spill] sm:$0xff] %v4628_v49 }
 0x4a3   :  { %5878 = vst [vmem:[#allocation71_spill] sm:$0xff] %v4610_v36  ;;  %1631 = vperm.xlu0 %3042, %v4608_v26   ;;  %3030 = vset.pattern.permute.xlu1 %v5819_v50 }
 0x4a4   :  { %1619 = vperm.xlu1 %3030, %v4513_v7  }
 0x4a5   :  { %v4615_v14 = vpop.permute.xlu0 %1591 }
 0x4a6   :  { %v4617_v42 = vpop.permute.xlu1 %1368 }
 0x4a7   :  { %5879 = vst [vmem:[#allocation72_spill] sm:$0xff] %v4617_v42  ;;  %3044 = vset.pattern.permute.xlu0 %v5817_v53  ;;  %v4637_v42 = vld [vmem:[#allocation2 + $0x10] sm:$0xff] }
 0x4a8   :  { %2391 = vperm.xlu0 %3044, %v4608_v26   ;;  %3032 = vset.pattern.permute.xlu1 %v5817_v53  ;;  %v1648_v30 = vmul.f32 %v4637_v42, %v4138_v31  ;;  %v2408_v31 = vmul.f32 %v4637_v42, %v4158_v0 }
 0x4a9   :  { %2379 = vperm.xlu1 %3032, %v4513_v7  }
 0x4aa   :  { %v4623_v21 = vpop.permute.xlu0 %2351 }
 0x4ab   :  { %v4625_v29 = vpop.permute.xlu1 %1955 }
 0x4ac   :  { %5880 = vst [vmem:[#allocation73_spill] sm:$0xff] %v4625_v29  ;;  %3045 = vset.pattern.permute.xlu0 %v5814_v40 }
 0x4ad   :  { %1443 = vperm.xlu0 %3045, %v4628_v49   ;;  %2735 = vrot.lane.b32.xlu1 %v4513_v7, %s3319_s2 }
 0x4ae   :  { %v4634_v36 = vpop.permute.xlu0 %2721  ;;  %3033 = vset.pattern.permute.xlu1 %v5814_v40 }
 0x4af   :  { %5882 = vst [vmem:[#allocation75_spill] sm:$0xff] %v4634_v36  ;;  %v2029_v36 = vmul.f32 %v4663_v63, %v4140_v24 }
 0x4b0   :  { %v4641_v29 = vpop.permute.xlu1 %1579 }
 0x4b1   :  { %1726 = vrot.lane.b32.xlu0 %v1648_v30, %s3320_s12  ;;  %1428 = vperm.xlu1 %3033, %v4534_v11  }
 0x4b2   :  { %v4646_v44 = vpop.permute.xlu0 %1393  ;;  %3047 = vset.pattern.permute.xlu0 %v5811_v9 }
 0x4b3   :  { %5883 = vst [vmem:[#allocation76_spill] sm:$0xff] %v4646_v44 }
 0x4b5   :  { %2015 = vperm.xlu0 %3047, %v4628_v49   ;;  %3035 = vset.pattern.permute.xlu1 %v5811_v9  ;;  %v4651_v7 = vpop.permute.xlu1 %2339 }
 0x4b6   :  { %5884 = vst [vmem:[#allocation77_spill] sm:$0xff] %v4651_v7  ;;  %2003 = vperm.xlu1 %3035, %v4534_v11   ;;  %v3247_v11 = vpop.eup %3246  ;;  %v5901_v7 = vld [vmem:[#allocation12_spill] sm:$0xff] }
 0x4b7   :  { %v4656_v30 = vpop.permute.xlu0 %1975 }
 0x4b9   :  { %2486 = vrot.lane.b32.xlu0 %v2408_v31, %s3319_s2  ;;  %v4659_v47 = vpop.permute.xlu1 %2715  ;;  %v2026_v31 = vmul.f32 %v4567_v15, %v4094_v52 }
 0x4ba   :  { %5885 = vst [vmem:[#allocation78_spill] sm:$0xff] %v4659_v47  ;;  %3038 = vset.pattern.permute.xlu1 %v5819_v50  ;;  %3050 = vset.pattern.permute.xlu0 %v5819_v50  ;;  %v4678_v47 = vmul.f32 %v3247_v11, %v3925_v62  ;;  %v1647_v11 = vmul.f32 %v4595_v60, %v4112_v10 }
 0x4bb   :  { %1627 = vperm.xlu1 %3038, %v4560_v25  }
 0x4bc   :  { %v4669_v0 = vpop.permute.xlu0 %1599  ;;  %5887 = vst [vmem:[#allocation80_spill] sm:$0xff] %v4678_v47 }
 0x4bd   :  { %2108 = vrot.lane.b32.xlu0 %v2029_v36, %s3321_s13  ;;  %v4674_v44 = vpop.permute.xlu1 %1378  ;;  %v3249_v36 = vpop.eup %3248 }
 0x4be   :  { %5886 = vst [vmem:[#allocation79_spill] sm:$0xff] %v4674_v44  ;;  %v4701_v44 = vmul.f32 %v3249_v36, %v3929_v34 }
 0x4bf   :  { %2102 = vrot.lane.b32.xlu1 %v2026_v31, %s3321_s13 }
 0x4c0   :  { %3040 = vset.pattern.permute.xlu1 %v5817_v53  ;;  %5892 = vst [vmem:[#allocation85_spill] sm:$0xff] %v4701_v44 }
 0x4c1   :  { %v4681_v24 = vpop.permute.xlu0 %2359  ;;  %1639 = vperm.xlu0 %3050, %v4678_v47  }
 0x4c2   :  { %v4684_v5 = vpop.permute.xlu1 %1963 }
 0x4c3   :  { %5888 = vst [vmem:[#allocation81_spill] sm:$0xff] %v4684_v5  ;;  %2387 = vperm.xlu1 %3040, %v4560_v25   ;;  %v4710_v5 = vld [vmem:[#allocation2 + $0x20] sm:$0xff] }
 0x4c4   :  { %v1650_v10 = vmul.f32 %v4710_v5, %v4153_v46 }
 0x4c5   :  { %v4687_v52 = vpop.permute.xlu0 %2725  ;;  %3052 = vset.pattern.permute.xlu0 %v5817_v53 }
 0x4c6   :  { %5889 = vst [vmem:[#allocation82_spill] sm:$0xff] %v4687_v52  ;;  %2399 = vperm.xlu0 %3052, %v4678_v47  }
 0x4c7   :  { %2739 = vrot.lane.b32.xlu1 %v4560_v25, %s3319_s2  ;;  %v4693_v62 = vpop.permute.xlu1 %1587  ;;  %v5894_v25 = vld [vmem:[#allocation9_spill] sm:$0xff] }
 0x4c8   :  { %5890 = vst [vmem:[#allocation83_spill] sm:$0xff] %v4693_v62  ;;  %3041 = vset.pattern.permute.xlu1 %v5814_v40  ;;  %v2407_v62 = vmul.f32 %v4595_v60, %v5894_v25  ;;  %v5897_v25 = vld [vmem:[#allocation13_spill] sm:$0xff] }
 0x4c9   :  { %v4698_v31 = vpop.permute.xlu0 %1403  ;;  %v2410_v46 = vmul.f32 %v4710_v5, %v5897_v25 }
 0x4ca   :  { %5891 = vst [vmem:[#allocation84_spill] sm:$0xff] %v4698_v31  ;;  %3053 = vset.pattern.permute.xlu0 %v5814_v40 }
 0x4cb   :  { %1453 = vperm.xlu0 %3053, %v4701_v44   ;;  %1724 = vrot.lane.b32.xlu1 %v1647_v11, %s3320_s12 }
 0x4cc   :  { %v4706_v52 = vpop.permute.xlu1 %2347 }
 0x4cd   :  { %5893 = vst [vmem:[#allocation86_spill] sm:$0xff] %v4706_v52 }
 0x4ce   :  { %v4714_v31 = vpop.permute.xlu0 %1983 }
 0x4cf   :  { %1730 = vrot.lane.b32.xlu0 %v1650_v10, %s3320_s12  ;;  %2484 = vrot.lane.b32.xlu1 %v2407_v62, %s3319_s2  ;;  %v4735_v10 = vld [vmem:[#allocation2 + $0x28] sm:$0xff] }
 0x4d0   :  { %v4718_v34 = vpop.permute.xlu1 %2719  ;;  %3055 = vset.pattern.permute.xlu0 %v5811_v9 }
 0x4d1   :  { %5895 = vst [vmem:[#allocation9_spill] sm:$0xff] %v4718_v34  ;;  %v2031_v34 = vmul.f32 %v4735_v10, %v4179_v20  ;;  %v2028_v20 = vmul.f32 %v4637_v42, %v5901_v7 }
 0x4d3   :  { %v4721_v36 = vpop.permute.xlu0 %1607  ;;  %2023 = vperm.xlu0 %3055, %v4701_v44   ;;  %1438 = vperm.xlu1 %3041, %v4608_v26  }
 0x4d4   :  { %v4725_v11 = vpop.permute.xlu1 %1388 }
 0x4d5   :  { %5896 = vst [vmem:[#allocation87_spill] sm:$0xff] %v4725_v11 }
 0x4d7   :  { %2490 = vrot.lane.b32.xlu0 %v2410_v46, %s3319_s2  ;;  %3043 = vset.pattern.permute.xlu1 %v5811_v9  ;;  %v4745_v46 = vld [vmem:[#allocation2 + $0x30] sm:$0xff] }
 0x4d8   :  { %v4731_v62 = vpop.permute.xlu0 %2367  ;;  %2011 = vperm.xlu1 %3043, %v4608_v26   ;;  %3057 = vset.pattern.permute.xlu0 %v5817_v53  ;;  %v1652_v11 = vmul.f32 %v4745_v46, %v4186_v43 }
 0x4d9   :  { %v4739_v52 = vpop.permute.xlu1 %1971 }
 0x4da   :  { %5898 = vst [vmem:[#allocation13_spill] sm:$0xff] %v4739_v52 }
 0x4db   :  { %2112 = vrot.lane.b32.xlu0 %v2031_v34, %s3321_s13  ;;  %v2412_v34 = vmul.f32 %v4745_v46, %v4199_v6 }
 0x4dc   :  { %v4742_v25 = vpop.permute.xlu0 %2729  ;;  %3046 = vset.pattern.permute.xlu1 %v5819_v50 }
 0x4dd   :  { %5899 = vst [vmem:[#allocation88_spill] sm:$0xff] %v4742_v25  ;;  %1635 = vperm.xlu1 %3046, %v4628_v49   ;;  %v4764_v25 = vld [vmem:[#allocation2 + $0x38] sm:$0xff] }
 0x4de   :  { %v4750_v26 = vpop.permute.xlu1 %1595  ;;  %v2033_v7 = vmul.f32 %v4764_v25, %v4214_v12  ;;  %v5906_v12 = vld [vmem:[#allocation17_spill] sm:$0xff] }
 0x4df   :  { %5900 = vst [vmem:[#allocation89_spill] sm:$0xff] %v4750_v26  ;;  %1734 = vrot.lane.b32.xlu0 %v1652_v11, %s3320_s12  ;;  %v5904_v11 = vld [vmem:[#allocation16_spill] sm:$0xff] }
 0x4e0   :  { %v4755_v52 = vpop.permute.xlu0 %1413  ;;  %v1649_v6 = vmul.f32 %v4663_v63, %v5904_v11 }
 0x4e1   :  { %5902 = vst [vmem:[#allocation12_spill] sm:$0xff] %v4755_v52  ;;  %2106 = vrot.lane.b32.xlu1 %v2028_v20, %s3321_s13  ;;  %v4776_v52 = vld [vmem:[#allocation2 + $0x40] sm:$0xff] }
 0x4e2   :  { %3048 = vset.pattern.permute.xlu1 %v5817_v53 }
 0x4e3   :  { %2494 = vrot.lane.b32.xlu0 %v2412_v34, %s3319_s2  ;;  %v4762_v43 = vpop.permute.xlu1 %2355  ;;  %v1654_v34 = vmul.f32 %v4776_v52, %v4227_v41 }
 0x4e4   :  { %5903 = vst [vmem:[#allocation90_spill] sm:$0xff] %v4762_v43 }
 0x4e5   :  { %v4768_v26 = vpop.permute.xlu0 %1991  ;;  %2395 = vperm.xlu1 %3048, %v4628_v49   ;;  %v2409_v49 = vmul.f32 %v4663_v63, %v5906_v12 }
 0x4e7   :  { %2116 = vrot.lane.b32.xlu0 %v2033_v7, %s3321_s13  ;;  %v4774_v20 = vpop.permute.xlu1 %2723  ;;  %v2414_v7 = vmul.f32 %v4776_v52, %v4234_v19  ;;  %v4805_v19 = vld [vmem:[#allocation2 + $0x50] sm:$0xff] }
 0x4e8   :  { %5905 = vst [vmem:[#allocation16_spill] sm:$0xff] %v4774_v20  ;;  %5909 = vst [vmem:[#allocation92_spill] sm:$0xff] %v4805_v19 }
 0x4e9   :  { %1728 = vrot.lane.b32.xlu1 %v1649_v6, %s3320_s12  ;;  %v4797_v6 = vld [vmem:[#allocation2 + $0x48] sm:$0xff] }
 0x4ea   :  { %v4781_v43 = vpop.permute.xlu0 %1615  ;;  %3049 = vset.pattern.permute.xlu1 %v5814_v40  ;;  %v2035_v40 = vmul.f32 %v4797_v6, %v4262_v32  ;;  %v2416_v32 = vmul.f32 %v4805_v19, %v4282_v38 }
 0x4eb   :  { %1738 = vrot.lane.b32.xlu0 %v1654_v34, %s3320_s12  ;;  %v4787_v11 = vpop.permute.xlu1 %1398 }
 0x4ec   :  { %5907 = vst [vmem:[#allocation17_spill] sm:$0xff] %v4787_v11  ;;  %v4827_v11 = vld [vmem:[#allocation2 + $0x58] sm:$0xff] }
 0x4ed   :  { %2488 = vrot.lane.b32.xlu1 %v2409_v49, %s3319_s2  ;;  %v1656_v49 = vmul.f32 %v4805_v19, %v4275_v48  ;;  %v5911_v48 = vld [vmem:[#allocation21_spill] sm:$0xff] }
 0x4ee   :  { %5912 = vst [vmem:[#allocation21_spill] sm:$0xff] %v4827_v11 }
 0x4ef   :  { %v4792_v20 = vpop.permute.xlu0 %2375  ;;  %2498 = vrot.lane.b32.xlu0 %v2414_v7, %s3319_s2 }
 0x4f0   :  { %v4795_v41 = vpop.permute.xlu1 %1979 }
 0x4f1   :  { %1448 = vperm.xlu1 %3049, %v4678_v47  }
 0x4f3   :  { %v4802_v34 = vpop.permute.xlu0 %2733  ;;  %2120 = vrot.lane.b32.xlu0 %v2035_v40, %s3321_s13 }
 0x4f4   :  { %5908 = vst [vmem:[#allocation91_spill] sm:$0xff] %v4802_v34  ;;  %v2030_v34 = vmul.f32 %v4710_v5, %v5911_v48 }
 0x4f5   :  { %3051 = vset.pattern.permute.xlu1 %v5811_v9  ;;  %v4810_v12 = vpop.permute.xlu1 %1603 }
 0x4f6   :  { %2019 = vperm.xlu1 %3051, %v4678_v47  }
 0x4f7   :  { %v4813_v7 = vpop.permute.xlu0 %1423  ;;  %1742 = vrot.lane.b32.xlu0 %v1656_v49, %s3320_s12  ;;  %v2037_v49 = vmul.f32 %v4827_v11, %v4310_v57  ;;  %v5916_v57 = vld [vmem:[#allocation23_spill] sm:$0xff] }
 0x4f8   :  { %5910 = vst [vmem:[#allocation93_spill] sm:$0xff] %v4813_v7 }
 0x4fa   :  { %3054 = vset.pattern.permute.xlu1 %v5819_v50  ;;  %v4819_v40 = vpop.permute.xlu1 %2363  ;;  %v4836_v50 = vld [vmem:[#allocation2 + $0x60] sm:$0xff] }
 0x4fb   :  { %2502 = vrot.lane.b32.xlu0 %v2416_v32, %s3319_s2  ;;  %1643 = vperm.xlu1 %3054, %v4701_v44   ;;  %5914 = vst [vmem:[#allocation95_spill] sm:$0xff] %v4836_v50  ;;  %v1658_v38 = vmul.f32 %v4836_v50, %v4323_v27 }
 0x4fc   :  { %v4823_v9 = vpop.permute.xlu0 %1999 }
 0x4fe   :  { %v4831_v7 = vpop.permute.xlu1 %2727 }
 0x4ff   :  { %5913 = vst [vmem:[#allocation94_spill] sm:$0xff] %v4831_v7  ;;  %2124 = vrot.lane.b32.xlu0 %v2037_v49, %s3321_s13  ;;  %2110 = vrot.lane.b32.xlu1 %v2030_v34, %s3321_s13  ;;  %v1651_v49 = vmul.f32 %v4735_v10, %v5916_v57  ;;  %v2418_v34 = vmul.f32 %v4836_v50, %v4330_v23 }
 0x500   :  { %3056 = vset.pattern.permute.xlu1 %v5817_v53  ;;  %v2411_v7 = vmul.f32 %v4735_v10, %v4251_v39 }
 0x501   :  { %v4840_v32 = vpop.permute.xlu0 %1623 }
 0x502   :  { %v4842_v48 = vpop.permute.xlu1 %1408 }
 0x503   :  { %5915 = vst [vmem:[#allocation96_spill] sm:$0xff] %v4842_v48  ;;  %1746 = vrot.lane.b32.xlu0 %v1658_v38, %s3320_s12  ;;  %2403 = vperm.xlu1 %3056, %v4701_v44   ;;  %v4858_v38 = vld [vmem:[#allocation2 + $0x68] sm:$0xff]  ;;  %v4870_v44 = vld [vmem:[#allocation2 + $0x70] sm:$0xff] }
 0x504   :  { %5917 = vst [vmem:[#allocation23_spill] sm:$0xff] %v4858_v38  ;;  %v2039_v48 = vmul.f32 %v4858_v38, %v4358_v8  ;;  %v1660_v39 = vmul.f32 %v4870_v44, %v4371_v37  ;;  %v1653_v8 = vmul.f32 %v4764_v25, %v4299_v13  ;;  %v5923_v37 = vld [vmem:[#allocation32_spill] sm:$0xff] }
 0x506   :  { %v4850_v53 = vpop.permute.xlu0 %2383 }
 0x507   :  { %2506 = vrot.lane.b32.xlu0 %v2418_v34, %s3319_s2  ;;  %1732 = vrot.lane.b32.xlu1 %v1651_v49, %s3320_s12  ;;  %v4854_v27 = vpop.permute.xlu1 %1987  ;;  %v5920_v34 = vld [vmem:[#allocation28_spill] sm:$0xff] }
 0x508   :  { %v2032_v49 = vmul.f32 %v4745_v46, %v5920_v34 }
 0x50a   :  { %v4862_v57 = vpop.permute.xlu0 %2737 }
 0x50b   :  { %5918 = vst [vmem:[#allocation97_spill] sm:$0xff] %v4862_v57  ;;  %2128 = vrot.lane.b32.xlu0 %v2039_v48, %s3321_s13  ;;  %2492 = vrot.lane.b32.xlu1 %v2411_v7, %s3319_s2  ;;  %v2420_v7 = vmul.f32 %v4870_v44, %v4378_v16  ;;  %v2413_v57 = vmul.f32 %v4764_v25, %v5923_v37  ;;  %v5925_v16 = vld [vmem:[#allocation35_spill] sm:$0xff] }
 0x50c   :  { %v4866_v23 = vpop.permute.xlu1 %1611 }
 0x50d   :  { %5919 = vst [vmem:[#allocation98_spill] sm:$0xff] %v4866_v23 }
 0x50e   :  { %v4874_v47 = vpop.permute.xlu0 %1433 }
 0x50f   :  { %5921 = vst [vmem:[#allocation28_spill] sm:$0xff] %v4874_v47  ;;  %1750 = vrot.lane.b32.xlu0 %v1660_v39, %s3320_s12  ;;  %2114 = vrot.lane.b32.xlu1 %v2032_v49, %s3321_s13  ;;  %v4890_v39 = vld [vmem:[#allocation2 + $0x78] sm:$0xff] }
 0x510   :  { %v2041_v49 = vmul.f32 %v4890_v39, %v4406_v55  ;;  %v1655_v55 = vmul.f32 %v4797_v6, %v4347_v59 }
 0x511   :  { %v4882_v48 = vpop.permute.xlu1 %2371 }
 0x512   :  { %5922 = vst [vmem:[#allocation99_spill] sm:$0xff] %v4882_v48  ;;  %v4884_v34 = vpop.permute.xlu0 %1722 }
 0x513   :  { %2510 = vrot.lane.b32.xlu0 %v2420_v7, %s3319_s2  ;;  %1736 = vrot.lane.b32.xlu1 %v1653_v8, %s3320_s12  ;;  %v2034_v7 = vmul.f32 %v4776_v52, %v5925_v16  ;;  %v4902_v8 = vld [vmem:[#allocation2 + $0x80] sm:$0xff] }
 0x514   :  { %v1662_v37 = vmul.f32 %v4902_v8, %v4419_v35  ;;  %v5928_v35 = vld [vmem:[#allocation38_spill] sm:$0xff] }
 0x515   :  { %v4894_v13 = vpop.permute.xlu1 %2731 }
 0x516   :  { %5924 = vst [vmem:[#allocation32_spill] sm:$0xff] %v4894_v13  ;;  %v4896_v47 = vpop.permute.xlu0 %2007  ;;  %v2415_v13 = vmul.f32 %v4797_v6, %v5928_v35 }
 0x517   :  { %2132 = vrot.lane.b32.xlu0 %v2041_v49, %s3321_s13  ;;  %2496 = vrot.lane.b32.xlu1 %v2413_v57, %s3319_s2  ;;  %v2422_v57 = vmul.f32 %v4902_v8, %v4426_v58 }
 0x519   :  { %v4906_v48 = vpop.permute.xlu1 %1418 }
 0x51a   :  { %5926 = vst [vmem:[#allocation35_spill] sm:$0xff] %v4906_v48  ;;  %v4908_v23 = vpop.permute.xlu0 %2482  ;;  %v5929_v48 = vld [vmem:[#allocation41_spill] sm:$0xff] }
 0x51b   :  { %1754 = vrot.lane.b32.xlu0 %v1662_v37, %s3320_s12  ;;  %2118 = vrot.lane.b32.xlu1 %v2034_v7, %s3321_s13  ;;  %v4924_v37 = vld [vmem:[#allocation2 + $0x88] sm:$0xff] }
 0x51c   :  { %v2043_v7 = vmul.f32 %v4924_v37, %v4454_v33 }
 0x51e   :  { %v4916_v49 = vpop.permute.xlu0 %2104  ;;  %v4918_v16 = vpop.permute.xlu1 %1995 }
 0x51f   :  { %5927 = vst [vmem:[#allocation100_spill] sm:$0xff] %v4918_v16  ;;  %2514 = vrot.lane.b32.xlu0 %v2422_v57, %s3319_s2  ;;  %1740 = vrot.lane.b32.xlu1 %v1655_v55, %s3320_s12  ;;  %v2036_v57 = vmul.f32 %v4805_v19, %v5929_v48  ;;  %v4936_v55 = vld [vmem:[#allocation2 + $0x90] sm:$0xff]  ;;  %v5933_v19 = vld [vmem:[#allocation44_spill] sm:$0xff] }
 0x520   :  { %v1664_v35 = vmul.f32 %v4936_v55, %v4467_v54 }
 0x522   :  { %v4928_v59 = vpop.permute.xlu0 %1631 }
 0x523   :  { %2136 = vrot.lane.b32.xlu0 %v2043_v7, %s3321_s13  ;;  %2500 = vrot.lane.b32.xlu1 %v2415_v13, %s3319_s2  ;;  %v4932_v58 = vpop.permute.xlu1 %1619  ;;  %v1657_v13 = vmul.f32 %v4827_v11, %v4395_v61  ;;  %v2424_v7 = vmul.f32 %v4936_v55, %v4474_v17 }
 0x527   :  { %v4940_v16 = vpop.permute.xlu0 %2391  ;;  %1758 = vrot.lane.b32.xlu0 %v1664_v35, %s3320_s12  ;;  %2122 = vrot.lane.b32.xlu1 %v2036_v57, %s3321_s13  ;;  %v2417_v35 = vmul.f32 %v4827_v11, %v5933_v19  ;;  %v4958_v57 = vld [vmem:[#allocation2 + $0x98] sm:$0xff] }
 0x528   :  { %v4944_v33 = vpop.permute.xlu1 %2379 }
 0x529   :  { %5930 = vst [vmem:[#allocation38_spill] sm:$0xff] %v4944_v33  ;;  %v2045_v33 = vmul.f32 %v4958_v57, %v4502_v28 }
 0x52b   :  { %2518 = vrot.lane.b32.xlu0 %v2424_v7, %s3319_s2  ;;  %1744 = vrot.lane.b32.xlu1 %v1657_v13, %s3320_s12  ;;  %v5935_v13 = vld [vmem:[#allocation47_spill] sm:$0xff] }
 0x52c   :  { %v4952_v48 = vpop.permute.xlu0 %1443  ;;  %v4954_v54 = vpop.permute.xlu1 %2735  ;;  %v2038_v7 = vmul.f32 %v4836_v50, %v5935_v13  ;;  %v5939_v50 = vld [vmem:[#allocation5_spill] sm:$0xff] }
 0x52d   :  { %5931 = vst [vmem:[#allocation41_spill] sm:$0xff] %v4952_v48  ;;  %5932 = vst [vmem:[#allocation101_spill] sm:$0xff] %v4954_v54  ;;  %v4970_v48 = vld [vmem:[#allocation2 + $0xa0] sm:$0xff] }
 0x52e   :  { %v1666_v19 = vmul.f32 %v4970_v48, %v4515_v2  ;;  %v5937_v2 = vld [vmem:[#allocation50_spill] sm:$0xff] }
 0x52f   :  { %2140 = vrot.lane.b32.xlu0 %v2045_v33, %s3321_s13  ;;  %2504 = vrot.lane.b32.xlu1 %v2417_v35, %s3319_s2  ;;  %v1659_v33 = vmul.f32 %v4858_v38, %v4443_v56  ;;  %v2426_v35 = vmul.f32 %v4970_v48, %v4522_v4  ;;  %v1456_v4 = vmul.f32 %v4567_v15, %v5939_v50 }
 0x530   :  { %v4964_v61 = vpop.permute.xlu0 %1726  ;;  %v4966_v17 = vpop.permute.xlu1 %1428  ;;  %v1661_v50 = vmul.f32 %v4890_v39, %v4491_v45  ;;  %v5942_v45 = vld [vmem:[#allocation56_spill] sm:$0xff] }
 0x531   :  { %5934 = vst [vmem:[#allocation44_spill] sm:$0xff] %v4966_v17 }
 0x533   :  { %1762 = vrot.lane.b32.xlu0 %v1666_v19, %s3320_s12  ;;  %2126 = vrot.lane.b32.xlu1 %v2038_v7, %s3321_s13  ;;  %v2419_v19 = vmul.f32 %v4858_v38, %v5937_v2  ;;  %v4990_v7 = vld [vmem:[#allocation2 + $0xa8] sm:$0xff]  ;;  %v5004_v2 = vld [vmem:[#allocation2 + $0xb0] sm:$0xff] }
 0x534   :  { %v4976_v28 = vpop.permute.xlu0 %2015  ;;  %v2047_v17 = vmul.f32 %v4990_v7, %v4550_v1  ;;  %v1668_v38 = vmul.f32 %v5004_v2, %v4562_v22  ;;  %v1836_v1 = vadd.f32 %v4884_v34, %v1456_v4 }
 0x535   :  { %v4982_v54 = vpop.permute.xlu1 %2003 }
 0x536   :  { %5936 = vst [vmem:[#allocation47_spill] sm:$0xff] %v4982_v54 }
 0x537   :  { %2522 = vrot.lane.b32.xlu0 %v2426_v35, %s3319_s2  ;;  %1748 = vrot.lane.b32.xlu1 %v1659_v33, %s3320_s12  ;;  %v5940_v35 = vld [vmem:[#allocation53_spill] sm:$0xff] }
 0x538   :  { %v4986_v13 = vpop.permute.xlu0 %2486  ;;  %v2040_v54 = vmul.f32 %v4870_v44, %v5940_v35  ;;  %v5946_v35 = vld [vmem:[#allocation59_spill] sm:$0xff] }
 0x53a   :  { %v4994_v56 = vpop.permute.xlu1 %1627 }
 0x53b   :  { %5938 = vst [vmem:[#allocation50_spill] sm:$0xff] %v4994_v56  ;;  %2144 = vrot.lane.b32.xlu0 %v2047_v17, %s3321_s13  ;;  %2508 = vrot.lane.b32.xlu1 %v2419_v19, %s3319_s2  ;;  %v2428_v17 = vmul.f32 %v5004_v2, %v4573_v3  ;;  %v2421_v3 = vmul.f32 %v4890_v39, %v5942_v45  ;;  %v5949_v45 = vld [vmem:[#allocation61_spill] sm:$0xff] }
 0x53c   :  { %v5000_v33 = vpop.permute.xlu0 %2108 }
 0x53e   :  { %v2103_v56 = vpop.permute.xlu1 %2102 }
 0x53f   :  { %v2216_v11 = vadd.f32 %v2103_v56, %v1836_v1  ;;  %1766 = vrot.lane.b32.xlu0 %v1668_v38, %s3320_s12  ;;  %2130 = vrot.lane.b32.xlu1 %v2040_v54, %s3321_s13  ;;  %v5941_v38 = vld [vmem:[#allocation7_spill] sm:$0xff]  ;;  %v5945_v56 = vld [vmem:[#allocation6_spill] sm:$0xff]  ;;  %v2042_v1 = vmul.f32 %v4902_v8, %v5946_v35 }
 0x540   :  { %v5011_v15 = vpop.permute.xlu0 %1639  ;;  %v1457_v4 = vmul.f32 %v4595_v60, %v5945_v56 }
 0x541   :  { %v2596_v22 = vadd.f32 %v4908_v23, %v2216_v11  ;;  %v5033_v11 = vld [vmem:[#allocation2 + $0xb8] sm:$0xff] }
 0x542   :  { %v5018_v19 = vpop.permute.xlu1 %2387  ;;  %5943 = vst [vmem:[#allocation5_spill] sm:$0xff] %v5033_v11  ;;  %v2049_v23 = vmul.f32 %v5033_v11, %v4605_v51 }
 0x543   :  { %2635 = vst.msk [vmem:[%s5789_s4] sm:$0xff] %vm2634_vm1, %v2596_v22  ;;  %2526 = vrot.lane.b32.xlu0 %v2428_v17, %s3319_s2  ;;  %1752 = vrot.lane.b32.xlu1 %v1661_v50, %s3320_s12  ;;  %v5047_v50 = vld [vmem:[#allocation2 + $0xc0] sm:$0xff] }
 0x544   :  { %2788 = vst.msk [vmem:[%s5789_s4] sm:$0xff] %vm2787_vm2, %v5941_v38  ;;  %5947 = vst [vmem:[#allocation7_spill] sm:$0xff] %v5047_v50  ;;  %v1670_v17 = vmul.f32 %v5047_v50, %v4615_v14  ;;  %v2430_v60 = vmul.f32 %v5047_v50, %v4623_v21  ;;  %v5951_v21 = vld [vmem:[#allocation8_spill] sm:$0xff] }
 0x545   :  { %v5037_v34 = vpop.permute.xlu0 %2399 }
 0x546   :  { %v5039_v54 = vpop.permute.xlu1 %2739 }
 0x547   :  { %5944 = vst [vmem:[#allocation53_spill] sm:$0xff] %v5039_v54  ;;  %2148 = vrot.lane.b32.xlu0 %v2049_v23, %s3321_s13  ;;  %2512 = vrot.lane.b32.xlu1 %v2421_v3, %s3319_s2  ;;  %v1663_v3 = vmul.f32 %v4924_v37, %v5949_v45  ;;  %v5087_v45 = vld [vmem:[#allocation2 + $0xd0] sm:$0xff] }
 0x54a   :  { %v5051_v51 = vpop.permute.xlu0 %1453  ;;  %v1725_v22 = vpop.permute.xlu1 %1724 }
 0x54b   :  { %5948 = vst [vmem:[#allocation56_spill] sm:$0xff] %v5051_v51  ;;  %v1837_v38 = vadd.f32 %v1725_v22, %v1457_v4  ;;  %1770 = vrot.lane.b32.xlu0 %v1670_v17, %s3320_s12  ;;  %2134 = vrot.lane.b32.xlu1 %v2042_v1, %s3321_s13  ;;  %v5950_v4 = vld [vmem:[#allocation63_spill] sm:$0xff]  ;;  %v5066_v1 = vld [vmem:[#allocation2 + $0xc8] sm:$0xff] }
 0x54c   :  { %v2423_v17 = vmul.f32 %v4924_v37, %v5950_v4  ;;  %v2051_v22 = vmul.f32 %v5066_v1, %v4656_v30  ;;  %v2044_v30 = vmul.f32 %v4936_v55, %v4577_v18  ;;  %v2432_v4 = vmul.f32 %v5087_v45, %v4681_v24 }
 0x54d   :  { %v2217_v23 = vadd.f32 %v4916_v49, %v1837_v38 }
 0x54e   :  { %v5060_v56 = vpop.permute.xlu0 %1730  ;;  %v2485_v35 = vpop.permute.xlu1 %2484 }
 0x54f   :  { %v2597_v14 = vadd.f32 %v2485_v35, %v2217_v23  ;;  %2530 = vrot.lane.b32.xlu0 %v2430_v60, %s3319_s2  ;;  %1756 = vrot.lane.b32.xlu1 %v1663_v3, %s3320_s12  ;;  %v1672_v3 = vmul.f32 %v5087_v45, %v4669_v0  ;;  %v5953_v35 = vld [vmem:[#allocation67_spill] sm:$0xff] }
 0x551   :  { %2636 = vst.msk [vmem:[%s5789_s4 + $0x8] sm:$0xff] %vm2634_vm1, %v2597_v14  ;;  %v1665_v14 = vmul.f32 %v4958_v57, %v5953_v35 }
 0x552   :  { %2789 = vst.msk [vmem:[%s5789_s4 + $0x8] sm:$0xff] %vm2787_vm2, %v5951_v21  ;;  %v5079_v49 = vpop.permute.xlu0 %2023  ;;  %v5081_v38 = vpop.permute.xlu1 %1438  ;;  %v5955_v21 = vld [vmem:[#allocation69_spill] sm:$0xff] }
 0x553   :  { %5952 = vst [vmem:[#allocation6_spill] sm:$0xff] %v5081_v38  ;;  %2152 = vrot.lane.b32.xlu0 %v2051_v22, %s3321_s13  ;;  %2516 = vrot.lane.b32.xlu1 %v2423_v17, %s3319_s2  ;;  %v5954_v17 = vld [vmem:[#allocation10_spill] sm:$0xff] }
 0x554   :  { %v1458_v22 = vmul.f32 %v4637_v42, %v5954_v17  ;;  %v5122_v17 = vld [vmem:[#allocation2 + $0xe0] sm:$0xff] }
 0x556   :  { %v5091_v60 = vpop.permute.xlu0 %2490  ;;  %v1838_v51 = vadd.f32 %v4964_v61, %v1458_v22  ;;  %v1667_v22 = vmul.f32 %v4990_v7, %v4641_v29 }
 0x557   :  { %1774 = vrot.lane.b32.xlu0 %v1672_v3, %s3320_s12  ;;  %2138 = vrot.lane.b32.xlu1 %v2044_v30, %s3321_s13  ;;  %v5095_v23 = vpop.permute.xlu1 %2011  ;;  %v2425_v30 = vmul.f32 %v4958_v57, %v5955_v21  ;;  %v5111_v3 = vld [vmem:[#allocation2 + $0xd8] sm:$0xff]  ;;  %v1674_v21 = vmul.f32 %v5122_v17, %v4721_v36  ;;  %v5957_v36 = vld [vmem:[#allocation11_spill] sm:$0xff] }
 0x558   :  { %v2053_v35 = vmul.f32 %v5111_v3, %v4714_v31 }
 0x55a   :  { %v5101_v18 = vpop.permute.xlu0 %2112 }
 0x55b   :  { %2534 = vrot.lane.b32.xlu0 %v2432_v4, %s3319_s2  ;;  %1760 = vrot.lane.b32.xlu1 %v1665_v14, %s3320_s12  ;;  %v5956_v4 = vld [vmem:[#allocation73_spill] sm:$0xff] }
 0x55c   :  { %v5105_v0 = vpop.permute.xlu1 %1635  ;;  %v2046_v42 = vmul.f32 %v4970_v48, %v5956_v4 }
 0x55e   :  { %v5115_v24 = vpop.permute.xlu0 %1734 }
 0x55f   :  { %2156 = vrot.lane.b32.xlu0 %v2053_v35, %s3321_s13  ;;  %2520 = vrot.lane.b32.xlu1 %v2425_v30, %s3319_s2  ;;  %v2434_v30 = vmul.f32 %v5122_v17, %v4731_v62  ;;  %v5959_v62 = vld [vmem:[#allocation77_spill] sm:$0xff] }
 0x560   :  { %v2107_v14 = vpop.permute.xlu1 %2106  ;;  %v2427_v35 = vmul.f32 %v4990_v7, %v5959_v62 }
 0x561   :  { %v2218_v54 = vadd.f32 %v2107_v14, %v1838_v51  ;;  %v5154_v14 = vld [vmem:[#allocation2 + $0xe8] sm:$0xff] }
 0x562   :  { %v5126_v38 = vpop.permute.xlu0 %2494  ;;  %v2055_v4 = vmul.f32 %v5154_v14, %v4768_v26 }
 0x563   :  { %v2598_v31 = vadd.f32 %v4986_v13, %v2218_v54  ;;  %1778 = vrot.lane.b32.xlu0 %v1674_v21, %s3320_s12  ;;  %2142 = vrot.lane.b32.xlu1 %v2046_v42, %s3321_s13  ;;  %v5958_v54 = vld [vmem:[#allocation15_spill] sm:$0xff] }
 0x564   :  { %v5131_v61 = vpop.permute.xlu1 %2395  ;;  %v1459_v51 = vmul.f32 %v4663_v63, %v5958_v54 }
 0x565   :  { %2637 = vst.msk [vmem:[%s5789_s4 + $0x10] sm:$0xff] %vm2634_vm1, %v2598_v31 }
 0x566   :  { %2790 = vst.msk [vmem:[%s5789_s4 + $0x10] sm:$0xff] %vm2787_vm2, %v5957_v36  ;;  %v5146_v13 = vpop.permute.xlu0 %2116  ;;  %v5165_v36 = vld [vmem:[#allocation2 + $0xf0] sm:$0xff] }
 0x567   :  { %2538 = vrot.lane.b32.xlu0 %v2434_v30, %s3319_s2  ;;  %1764 = vrot.lane.b32.xlu1 %v1667_v22, %s3320_s12  ;;  %v5960_v22 = vld [vmem:[#allocation81_spill] sm:$0xff]  ;;  %v1676_v54 = vmul.f32 %v5165_v36, %v4781_v43  ;;  %v5963_v43 = vld [vmem:[#allocation83_spill] sm:$0xff] }
 0x568   :  { %v1729_v29 = vpop.permute.xlu1 %1728  ;;  %v2048_v30 = vmul.f32 %v5004_v2, %v5960_v22 }
 0x569   :  { %v1839_v42 = vadd.f32 %v1729_v29, %v1459_v51  ;;  %v1669_v29 = vmul.f32 %v5033_v11, %v5963_v43 }
 0x56a   :  { %v5158_v21 = vpop.permute.xlu0 %1738 }
 0x56b   :  { %2160 = vrot.lane.b32.xlu0 %v2055_v4, %s3321_s13  ;;  %2524 = vrot.lane.b32.xlu1 %v2427_v35, %s3319_s2  ;;  %v2219_v63 = vadd.f32 %v5000_v33, %v1839_v42  ;;  %v5961_v33 = vld [vmem:[#allocation18_spill] sm:$0xff]  ;;  %v2436_v35 = vmul.f32 %v5165_v36, %v4792_v20  ;;  %v5965_v20 = vld [vmem:[#allocation13_spill] sm:$0xff] }
 0x56c   :  { %v2489_v31 = vpop.permute.xlu1 %2488  ;;  %v5964_v42 = vld [vmem:[#allocation86_spill] sm:$0xff] }
 0x56d   :  { %v2599_v62 = vadd.f32 %v2489_v31, %v2219_v63  ;;  %v2429_v63 = vmul.f32 %v5033_v11, %v5964_v42  ;;  %v5194_v31 = vld [vmem:[#allocation2 + $0xf8] sm:$0xff] }
 0x56e   :  { %v5169_v26 = vpop.permute.xlu0 %2498  ;;  %v2057_v22 = vmul.f32 %v5194_v31, %v4823_v9  ;;  %v5966_v9 = vld [vmem:[#allocation20_spill] sm:$0xff] }
 0x56f   :  { %2638 = vst.msk [vmem:[%s5789_s4 + $0x18] sm:$0xff] %vm2634_vm1, %v2599_v62  ;;  %1782 = vrot.lane.b32.xlu0 %v1676_v54, %s3320_s12  ;;  %2146 = vrot.lane.b32.xlu1 %v2048_v30, %s3321_s13  ;;  %v2050_v62 = vmul.f32 %v5047_v50, %v5965_v20  ;;  %v1460_v42 = vmul.f32 %v4710_v5, %v5966_v9  ;;  %v5968_v5 = vld [vmem:[#allocation90_spill] sm:$0xff] }
 0x570   :  { %2791 = vst.msk [vmem:[%s5789_s4 + $0x18] sm:$0xff] %vm2787_vm2, %v5961_v33  ;;  %v5182_v51 = vpop.permute.xlu1 %1448  ;;  %v5206_v33 = vld [vmem:[#allocation2 + $0x100] sm:$0xff] }
 0x571   :  { %5962 = vst [vmem:[#allocation59_spill] sm:$0xff] %v5182_v51  ;;  %v1678_v43 = vmul.f32 %v5206_v33, %v4840_v32  ;;  %v2438_v20 = vmul.f32 %v5206_v33, %v4850_v53  ;;  %v1840_v51 = vadd.f32 %v5060_v56, %v1460_v42 }
 0x572   :  { %v5188_v4 = vpop.permute.xlu0 %2120 }
 0x573   :  { %2542 = vrot.lane.b32.xlu0 %v2436_v35, %s3319_s2  ;;  %1768 = vrot.lane.b32.xlu1 %v1669_v29, %s3320_s12 }
 0x575   :  { %v5198_v30 = vpop.permute.xlu1 %2019 }
 0x576   :  { %v5200_v54 = vpop.permute.xlu0 %1742 }
 0x577   :  { %2164 = vrot.lane.b32.xlu0 %v2057_v22, %s3321_s13  ;;  %2528 = vrot.lane.b32.xlu1 %v2429_v63, %s3319_s2  ;;  %v5967_v63 = vld [vmem:[#allocation89_spill] sm:$0xff] }
 0x578   :  { %v1671_v22 = vmul.f32 %v5066_v1, %v5967_v63 }
 0x57a   :  { %v5210_v29 = vpop.permute.xlu0 %2502  ;;  %v5212_v35 = vpop.permute.xlu1 %1643 }
 0x57b   :  { %1786 = vrot.lane.b32.xlu0 %v1678_v43, %s3320_s12  ;;  %2150 = vrot.lane.b32.xlu1 %v2050_v62, %s3321_s13  ;;  %v2431_v43 = vmul.f32 %v5066_v1, %v5968_v5  ;;  %v5229_v62 = vld [vmem:[#allocation2 + $0x108] sm:$0xff] }
 0x57c   :  { %v2059_v9 = vmul.f32 %v5229_v62, %v4896_v47  ;;  %v5970_v47 = vld [vmem:[#allocation22_spill] sm:$0xff] }
 0x57e   :  { %v5223_v32 = vpop.permute.xlu0 %2124  ;;  %v2111_v50 = vpop.permute.xlu1 %2110 }
 0x57f   :  { %v2220_v11 = vadd.f32 %v2111_v50, %v1840_v51  ;;  %2546 = vrot.lane.b32.xlu0 %v2438_v20, %s3319_s2  ;;  %1772 = vrot.lane.b32.xlu1 %v1671_v22, %s3320_s12  ;;  %v5969_v50 = vld [vmem:[#allocation14_spill] sm:$0xff]  ;;  %v5253_v51 = vld [vmem:[#allocation2 + $0x110] sm:$0xff] }
 0x580   :  { %v1680_v42 = vmul.f32 %v5253_v51, %v4928_v59  ;;  %v5971_v59 = vld [vmem:[#allocation27_spill] sm:$0xff] }
 0x581   :  { %v2600_v53 = vadd.f32 %v5091_v60, %v2220_v11  ;;  %v1461_v11 = vmul.f32 %v4735_v10, %v5970_v47  ;;  %v2052_v60 = vmul.f32 %v5087_v45, %v4795_v41  ;;  %v2440_v10 = vmul.f32 %v5253_v51, %v4940_v16 }
 0x582   :  { %v5234_v63 = vpop.permute.xlu0 %1746  ;;  %v5236_v56 = vpop.permute.xlu1 %2403 }
 0x583   :  { %2639 = vst.msk [vmem:[%s5789_s4 + $0x20] sm:$0xff] %vm2634_vm1, %v2600_v53  ;;  %2168 = vrot.lane.b32.xlu0 %v2059_v9, %s3321_s13  ;;  %2532 = vrot.lane.b32.xlu1 %v2431_v43, %s3319_s2  ;;  %v1673_v43 = vmul.f32 %v5111_v3, %v4810_v12  ;;  %v5274_v12 = vld [vmem:[#allocation2 + $0x118] sm:$0xff] }
 0x584   :  { %2792 = vst.msk [vmem:[%s5789_s4 + $0x20] sm:$0xff] %vm2787_vm2, %v5969_v50  ;;  %v1462_v50 = vmul.f32 %v4745_v46, %v5971_v59  ;;  %v2061_v16 = vmul.f32 %v5274_v12, %v4976_v28  ;;  %v5972_v46 = vld [vmem:[#allocation26_spill] sm:$0xff]  ;;  %v5973_v28 = vld [vmem:[#allocation29_spill] sm:$0xff] }
 0x586   :  { %v5257_v22 = vpop.permute.xlu0 %2506  ;;  %v1733_v20 = vpop.permute.xlu1 %1732 }
 0x587   :  { %v1841_v5 = vadd.f32 %v1733_v20, %v1461_v11  ;;  %1790 = vrot.lane.b32.xlu0 %v1680_v42, %s3320_s12  ;;  %2154 = vrot.lane.b32.xlu1 %v2052_v60, %s3321_s13  ;;  %v2433_v11 = vmul.f32 %v5111_v3, %v4819_v40  ;;  %v2054_v20 = vmul.f32 %v5122_v17, %v4854_v27  ;;  %v5975_v27 = vld [vmem:[#allocation98_spill] sm:$0xff] }
 0x589   :  { %v2221_v41 = vadd.f32 %v5101_v18, %v1841_v5  ;;  %v1842_v18 = vadd.f32 %v5115_v24, %v1462_v50  ;;  %v1463_v24 = vmul.f32 %v4764_v25, %v5973_v28  ;;  %v5296_v5 = vld [vmem:[#allocation2 + $0x120] sm:$0xff]  ;;  %v5327_v28 = vld [vmem:[#allocation2 + $0x128] sm:$0xff] }
 0x58a   :  { %v5266_v9 = vpop.permute.xlu0 %2128  ;;  %v2493_v53 = vpop.permute.xlu1 %2492  ;;  %v5974_v25 = vld [vmem:[#allocation19_spill] sm:$0xff] }
 0x58b   :  { %v2601_v47 = vadd.f32 %v2493_v53, %v2221_v41  ;;  %2550 = vrot.lane.b32.xlu0 %v2440_v10, %s3319_s2  ;;  %1776 = vrot.lane.b32.xlu1 %v1673_v43, %s3320_s12  ;;  %v1682_v43 = vmul.f32 %v5296_v5, %v5011_v15  ;;  %v1675_v15 = vmul.f32 %v5154_v14, %v5975_v27 }
 0x58d   :  { %2640 = vst.msk [vmem:[%s5789_s4 + $0x28] sm:$0xff] %vm2634_vm1, %v2601_v47 }
 0x58e   :  { %2793 = vst.msk [vmem:[%s5789_s4 + $0x28] sm:$0xff] %vm2787_vm2, %v5972_v46  ;;  %v5288_v60 = vpop.permute.xlu0 %1750  ;;  %v2115_v40 = vpop.permute.xlu1 %2114 }
 0x58f   :  { %v2222_v42 = vadd.f32 %v2115_v40, %v1842_v18  ;;  %2172 = vrot.lane.b32.xlu0 %v2061_v16, %s3321_s13  ;;  %2536 = vrot.lane.b32.xlu1 %v2433_v11, %s3319_s2  ;;  %v5976_v16 = vld [vmem:[#allocation34_spill] sm:$0xff]  ;;  %v5977_v40 = vld [vmem:[#allocation99_spill] sm:$0xff] }
 0x590   :  { %v1464_v18 = vmul.f32 %v4776_v52, %v5976_v16  ;;  %v5978_v52 = vld [vmem:[#allocation33_spill] sm:$0xff] }
 0x591   :  { %v2602_v10 = vadd.f32 %v5126_v38, %v2222_v42  ;;  %v2442_v38 = vmul.f32 %v5296_v5, %v5037_v34  ;;  %v2435_v42 = vmul.f32 %v5154_v14, %v5977_v40  ;;  %v2063_v34 = vmul.f32 %v5327_v28, %v5079_v49  ;;  %v5979_v49 = vld [vmem:[#allocation25_spill] sm:$0xff] }
 0x592   :  { %v5301_v41 = vpop.permute.xlu0 %2510  ;;  %v1737_v53 = vpop.permute.xlu1 %1736 }
 0x593   :  { %2641 = vst.msk [vmem:[%s5789_s4 + $0x30] sm:$0xff] %vm2634_vm1, %v2602_v10  ;;  %v1843_v59 = vadd.f32 %v1737_v53, %v1463_v24  ;;  %1794 = vrot.lane.b32.xlu0 %v1682_v43, %s3320_s12  ;;  %2158 = vrot.lane.b32.xlu1 %v2054_v20, %s3321_s13  ;;  %v5980_v10 = vld [vmem:[#allocation100_spill] sm:$0xff] }
 0x594   :  { %2794 = vst.msk [vmem:[%s5789_s4 + $0x30] sm:$0xff] %vm2787_vm2, %v5974_v25  ;;  %v2056_v53 = vmul.f32 %v5165_v36, %v5980_v10  ;;  %v5989_v10 = vld [vmem:[#allocation21_spill] sm:$0xff] }
 0x595   :  { %v2223_v50 = vadd.f32 %v5146_v13, %v1843_v59  ;;  %v1844_v13 = vadd.f32 %v5158_v21, %v1464_v18  ;;  %v1465_v21 = vmul.f32 %v4797_v6, %v5979_v49  ;;  %v5982_v6 = vld [vmem:[#allocation24_spill] sm:$0xff] }
 0x596   :  { %v5319_v47 = vpop.permute.xlu0 %2132  ;;  %v2497_v11 = vpop.permute.xlu1 %2496  ;;  %v5983_v18 = vld [vmem:[#allocation40_spill] sm:$0xff] }
 0x597   :  { %v2603_v46 = vadd.f32 %v2497_v11, %v2223_v50  ;;  %2554 = vrot.lane.b32.xlu0 %v2442_v38, %s3319_s2  ;;  %1780 = vrot.lane.b32.xlu1 %v1675_v15, %s3320_s12  ;;  %v5981_v38 = vld [vmem:[#allocation70_spill] sm:$0xff] }
 0x599   :  { %2642 = vst.msk [vmem:[%s5789_s4 + $0x38] sm:$0xff] %vm2634_vm1, %v2603_v46  ;;  %v5984_v46 = vld [vmem:[#allocation92_spill] sm:$0xff] }
 0x59a   :  { %2795 = vst.msk [vmem:[%s5789_s4 + $0x38] sm:$0xff] %vm2787_vm2, %v5978_v52  ;;  %v5341_v24 = vpop.permute.xlu0 %1754  ;;  %v2119_v20 = vpop.permute.xlu1 %2118  ;;  %v1466_v40 = vmul.f32 %v5984_v46, %v5983_v18 }
 0x59b   :  { %v2224_v43 = vadd.f32 %v2119_v20, %v1844_v13  ;;  %2176 = vrot.lane.b32.xlu0 %v2063_v34, %s3321_s13  ;;  %2540 = vrot.lane.b32.xlu1 %v2435_v42, %s3319_s2  ;;  %v5985_v34 = vld [vmem:[#allocation80_spill] sm:$0xff]  ;;  %v5986_v13 = vld [vmem:[#allocation38_spill] sm:$0xff] }
 0x59c   :  { %v2437_v52 = vmul.f32 %v5194_v31, %v5986_v13  ;;  %v1846_v20 = vadd.f32 %v5200_v54, %v1466_v40  ;;  %v5993_v40 = vld [vmem:[#allocation46_spill] sm:$0xff] }
 0x59d   :  { %v2604_v59 = vadd.f32 %v5169_v26, %v2224_v43  ;;  %v1677_v26 = vmul.f32 %v5194_v31, %v4932_v58  ;;  %v5987_v58 = vld [vmem:[#allocation39_spill] sm:$0xff] }
 0x59e   :  { %v5350_v25 = vpop.permute.xlu0 %2514  ;;  %v1741_v27 = vpop.permute.xlu1 %1740 }
 0x59f   :  { %2643 = vst.msk [vmem:[%s5789_s4 + $0x40] sm:$0xff] %vm2634_vm1, %v2604_v59  ;;  %v1845_v15 = vadd.f32 %v1741_v27, %v1465_v21  ;;  %2741 = vrot.lane.b32.xlu0 %v5981_v38, %s3319_s2  ;;  %2162 = vrot.lane.b32.xlu1 %v2056_v53, %s3321_s13  ;;  %v5988_v21 = vld [vmem:[#allocation31_spill] sm:$0xff] }
 0x5a0   :  { %2796 = vst.msk [vmem:[%s5789_s4 + $0x40] sm:$0xff] %vm2787_vm2, %v5982_v6  ;;  %v1467_v54 = vmul.f32 %v5989_v10, %v5988_v21  ;;  %v5990_v53 = vld [vmem:[#allocation47_spill] sm:$0xff]  ;;  %v2060_v10 = vmul.f32 %v5253_v51, %v5095_v23  ;;  %v1681_v23 = vmul.f32 %v5274_v12, %v5105_v0 }
 0x5a1   :  { %v2225_v50 = vadd.f32 %v5188_v4, %v1845_v15  ;;  %v2058_v59 = vmul.f32 %v5206_v33, %v5990_v53  ;;  %v5997_v21 = vld [vmem:[#allocation23_spill] sm:$0xff] }
 0x5a2   :  { %v5367_v11 = vpop.permute.xlu0 %2136  ;;  %v2501_v16 = vpop.permute.xlu1 %2500  ;;  %v6000_v0 = vld [vmem:[#allocation51_spill] sm:$0xff] }
 0x5a3   :  { %v2605_v42 = vadd.f32 %v2501_v16, %v2225_v50  ;;  %2745 = vrot.lane.b32.xlu0 %v5985_v34, %s3319_s2  ;;  %1784 = vrot.lane.b32.xlu1 %v1677_v26, %s3320_s12  ;;  %v5991_v26 = vld [vmem:[#allocation30_spill] sm:$0xff] }
 0x5a4   :  { %v5992_v50 = vld [vmem:[#allocation50_spill] sm:$0xff] }
 0x5a5   :  { %2644 = vst.msk [vmem:[%s5789_s4 + $0x48] sm:$0xff] %vm2634_vm1, %v2605_v42  ;;  %v5994_v42 = vld [vmem:[#allocation95_spill] sm:$0xff] }
 0x5a6   :  { %2797 = vst.msk [vmem:[%s5789_s4 + $0x48] sm:$0xff] %vm2787_vm2, %v5987_v58  ;;  %v5386_v4 = vpop.permute.xlu0 %1758  ;;  %v2123_v43 = vpop.permute.xlu1 %2122  ;;  %v1468_v34 = vmul.f32 %v5994_v42, %v5993_v40 }
 0x5a7   :  { %v2226_v49 = vadd.f32 %v2123_v43, %v1846_v20  ;;  %2544 = vrot.lane.b32.xlu1 %v2437_v52, %s3319_s2  ;;  %v2439_v52 = vmul.f32 %v5229_v62, %v5018_v19  ;;  %v5996_v19 = vld [vmem:[#allocation37_spill] sm:$0xff] }
 0x5a8   :  { %v1848_v20 = vadd.f32 %v5234_v63, %v1468_v34  ;;  %v1469_v63 = vmul.f32 %v5997_v21, %v5996_v19  ;;  %v2062_v34 = vmul.f32 %v5296_v5, %v5198_v30  ;;  %v6003_v19 = vld [vmem:[#allocation58_spill] sm:$0xff] }
 0x5a9   :  { %v2606_v27 = vadd.f32 %v5210_v29, %v2226_v49  ;;  %v1679_v29 = vmul.f32 %v5229_v62, %v5992_v50  ;;  %v5999_v50 = vld [vmem:[#allocation52_spill] sm:$0xff]  ;;  %v1472_v21 = vmul.f32 %v4902_v8, %v6003_v19 }
 0x5aa   :  { %v5394_v15 = vpop.permute.xlu0 %2518  ;;  %v1745_v38 = vpop.permute.xlu1 %1744 }
 0x5ab   :  { %2645 = vst.msk [vmem:[%s5789_s4 + $0x50] sm:$0xff] %vm2634_vm1, %v2606_v27  ;;  %v1847_v6 = vadd.f32 %v1745_v38, %v1467_v54  ;;  %2166 = vrot.lane.b32.xlu1 %v2058_v59, %s3321_s13  ;;  %v5998_v38 = vld [vmem:[#allocation36_spill] sm:$0xff] }
 0x5ac   :  { %2798 = vst.msk [vmem:[%s5789_s4 + $0x50] sm:$0xff] %vm2787_vm2, %v5991_v26 }
 0x5ad   :  { %v2227_v16 = vadd.f32 %v5223_v32, %v1847_v6  ;;  %v5995_v32 = vld [vmem:[#allocation45_spill] sm:$0xff] }
 0x5ae   :  { %v5409_v18 = vpop.permute.xlu0 %2140  ;;  %v2505_v46 = vpop.permute.xlu1 %2504 }
 0x5af   :  { %v2607_v13 = vadd.f32 %v2505_v46, %v2227_v16  ;;  %1788 = vrot.lane.b32.xlu1 %v1679_v29, %s3320_s12  ;;  %v1470_v29 = vmul.f32 %v4870_v44, %v5999_v50  ;;  %v2441_v46 = vmul.f32 %v5274_v12, %v5131_v61  ;;  %v6001_v61 = vld [vmem:[#allocation43_spill] sm:$0xff] }
 0x5b1   :  { %2646 = vst.msk [vmem:[%s5789_s4 + $0x58] sm:$0xff] %vm2634_vm1, %v2607_v13  ;;  %v1850_v40 = vadd.f32 %v5288_v60, %v1470_v29  ;;  %v1471_v60 = vmul.f32 %v4890_v39, %v6001_v61  ;;  %v1683_v39 = vmul.f32 %v5327_v28, %v5212_v35  ;;  %v6007_v29 = vld [vmem:[#allocation48_spill] sm:$0xff] }
 0x5b2   :  { %2799 = vst.msk [vmem:[%s5789_s4 + $0x58] sm:$0xff] %vm2787_vm2, %v5995_v32  ;;  %v5426_v58 = vpop.permute.xlu0 %1762  ;;  %v2127_v43 = vpop.permute.xlu1 %2126 }
 0x5b3   :  { %v2228_v49 = vadd.f32 %v2127_v43, %v1848_v20  ;;  %2548 = vrot.lane.b32.xlu1 %v2439_v52, %s3319_s2  ;;  %v6002_v43 = vld [vmem:[#allocation42_spill] sm:$0xff] }
 0x5b5   :  { %v2608_v54 = vadd.f32 %v5257_v22, %v2228_v49 }
 0x5b6   :  { %v5434_v53 = vpop.permute.xlu0 %2522  ;;  %v1749_v59 = vpop.permute.xlu1 %1748 }
 0x5b7   :  { %2647 = vst.msk [vmem:[%s5789_s4 + $0x60] sm:$0xff] %vm2634_vm1, %v2608_v54  ;;  %v1849_v27 = vadd.f32 %v1749_v59, %v1469_v63  ;;  %2170 = vrot.lane.b32.xlu1 %v2060_v10, %s3321_s13  ;;  %v1852_v10 = vadd.f32 %v5341_v24, %v1472_v21  ;;  %v6004_v54 = vld [vmem:[#allocation57_spill] sm:$0xff]  ;;  %v6005_v59 = vld [vmem:[#allocation74_spill] sm:$0xff] }
 0x5b8   :  { %2800 = vst.msk [vmem:[%s5789_s4 + $0x60] sm:$0xff] %vm2787_vm2, %v5998_v38  ;;  %v2443_v38 = vmul.f32 %v5327_v28, %v5236_v56 }
 0x5b9   :  { %v2229_v22 = vadd.f32 %v5266_v9, %v1849_v27  ;;  %v6006_v27 = vld [vmem:[#allocation49_spill] sm:$0xff] }
 0x5ba   :  { %v5449_v6 = vpop.permute.xlu0 %2144  ;;  %v2509_v26 = vpop.permute.xlu1 %2508  ;;  %v1473_v24 = vmul.f32 %v4924_v37, %v6006_v27 }
 0x5bb   :  { %v2609_v16 = vadd.f32 %v2509_v26, %v2229_v22  ;;  %1792 = vrot.lane.b32.xlu1 %v1681_v23, %s3320_s12 }
 0x5bd   :  { %2648 = vst.msk [vmem:[%s5789_s4 + $0x68] sm:$0xff] %vm2634_vm1, %v2609_v16  ;;  %v6008_v16 = vld [vmem:[#allocation65_spill] sm:$0xff] }
 0x5be   :  { %2801 = vst.msk [vmem:[%s5789_s4 + $0x68] sm:$0xff] %vm2787_vm2, %v6000_v0  ;;  %v5466_v44 = vpop.permute.xlu0 %1766  ;;  %v2131_v9 = vpop.permute.xlu1 %2130  ;;  %v6009_v0 = vld [vmem:[#allocation85_spill] sm:$0xff] }
 0x5bf   :  { %v2230_v42 = vadd.f32 %v2131_v9, %v1850_v40  ;;  %2552 = vrot.lane.b32.xlu1 %v2441_v46, %s3319_s2  ;;  %v1474_v46 = vmul.f32 %v4936_v55, %v6008_v16  ;;  %v6019_v16 = vld [vmem:[#allocation68_spill] sm:$0xff] }
 0x5c1   :  { %v2610_v13 = vadd.f32 %v5301_v41, %v2230_v42  ;;  %v1854_v9 = vadd.f32 %v5386_v4, %v1474_v46  ;;  %v6010_v42 = vld [vmem:[#allocation64_spill] sm:$0xff] }
 0x5c2   :  { %v5474_v52 = vpop.permute.xlu0 %2526  ;;  %v1753_v20 = vpop.permute.xlu1 %1752 }
 0x5c3   :  { %2649 = vst.msk [vmem:[%s5789_s4 + $0x70] sm:$0xff] %vm2634_vm1, %v2610_v13  ;;  %v1851_v32 = vadd.f32 %v1753_v20, %v1471_v60  ;;  %2174 = vrot.lane.b32.xlu1 %v2062_v34, %s3321_s13  ;;  %v6011_v60 = vld [vmem:[#allocation55_spill] sm:$0xff] }
 0x5c4   :  { %2802 = vst.msk [vmem:[%s5789_s4 + $0x70] sm:$0xff] %vm2787_vm2, %v6002_v43  ;;  %v1475_v34 = vmul.f32 %v4958_v57, %v6011_v60  ;;  %v6012_v43 = vld [vmem:[#allocation54_spill] sm:$0xff]  ;;  %v6022_v60 = vld [vmem:[#allocation87_spill] sm:$0xff] }
 0x5c5   :  { %v2231_v30 = vadd.f32 %v5319_v47, %v1851_v32 }
 0x5c6   :  { %v5489_v41 = vpop.permute.xlu0 %2148  ;;  %v2513_v49 = vpop.permute.xlu1 %2512 }
 0x5c7   :  { %v2611_v63 = vadd.f32 %v2513_v49, %v2231_v30  ;;  %1796 = vrot.lane.b32.xlu1 %v1683_v39, %s3320_s12  ;;  %v6013_v30 = vld [vmem:[#allocation72_spill] sm:$0xff] }
 0x5c8   :  { %v1476_v49 = vmul.f32 %v4970_v48, %v6013_v30 }
 0x5c9   :  { %2650 = vst.msk [vmem:[%s5789_s4 + $0x78] sm:$0xff] %vm2634_vm1, %v2611_v63  ;;  %v6014_v63 = vld [vmem:[#allocation71_spill] sm:$0xff] }
 0x5ca   :  { %2803 = vst.msk [vmem:[%s5789_s4 + $0x78] sm:$0xff] %vm2787_vm2, %v6004_v54  ;;  %v5504_v35 = vpop.permute.xlu0 %1770  ;;  %v2135_v47 = vpop.permute.xlu1 %2134  ;;  %v1856_v21 = vadd.f32 %v5426_v58, %v1476_v49 }
 0x5cb   :  { %v2232_v8 = vadd.f32 %v2135_v47, %v1852_v10  ;;  %2743 = vrot.lane.b32.xlu1 %v6005_v59, %s3319_s2  ;;  %v6015_v47 = vld [vmem:[#allocation62_spill] sm:$0xff] }
 0x5cc   :  { %v1477_v48 = vmul.f32 %v4990_v7, %v6015_v47 }
 0x5cd   :  { %v2612_v23 = vadd.f32 %v5350_v25, %v2232_v8 }
 0x5ce   :  { %v5513_v22 = vpop.permute.xlu0 %2530  ;;  %v1757_v26 = vpop.permute.xlu1 %1756 }
 0x5cf   :  { %2651 = vst.msk [vmem:[%s5789_s4 + $0x80] sm:$0xff] %vm2634_vm1, %v2612_v23  ;;  %v1853_v50 = vadd.f32 %v1757_v26, %v1473_v24  ;;  %2556 = vrot.lane.b32.xlu1 %v2443_v38, %s3319_s2  ;;  %v6016_v24 = vld [vmem:[#allocation60_spill] sm:$0xff]  ;;  %v6017_v23 = vld [vmem:[#allocation79_spill] sm:$0xff] }
 0x5d0   :  { %2804 = vst.msk [vmem:[%s5789_s4 + $0x80] sm:$0xff] %vm2787_vm2, %v6007_v29 }
 0x5d1   :  { %v2233_v37 = vadd.f32 %v5367_v11, %v1853_v50 }
 0x5d2   :  { %v5526_v56 = vpop.permute.xlu0 %2152  ;;  %v2517_v25 = vpop.permute.xlu1 %2516 }
 0x5d3   :  { %v2613_v40 = vadd.f32 %v2517_v25, %v2233_v37  ;;  %2747 = vrot.lane.b32.xlu1 %v6009_v0, %s3319_s2  ;;  %v6018_v37 = vld [vmem:[#allocation78_spill] sm:$0xff] }
 0x5d5   :  { %2652 = vst.msk [vmem:[%s5789_s4 + $0x88] sm:$0xff] %vm2634_vm1, %v2613_v40 }
 0x5d6   :  { %2805 = vst.msk [vmem:[%s5789_s4 + $0x88] sm:$0xff] %vm2787_vm2, %v6010_v42  ;;  %v5542_v11 = vpop.permute.xlu0 %1774  ;;  %v2139_v55 = vpop.permute.xlu1 %2138  ;;  %v6021_v42 = vld [vmem:[#allocation66_spill] sm:$0xff] }
 0x5d7   :  { %v2234_v61 = vadd.f32 %v2139_v55, %v1854_v9 }
 0x5d9   :  { %v2614_v4 = vadd.f32 %v5394_v15, %v2234_v61 }
 0x5da   :  { %v5547_v13 = vpop.permute.xlu0 %2534  ;;  %v1761_v20 = vpop.permute.xlu1 %1760 }
 0x5db   :  { %2653 = vst.msk [vmem:[%s5789_s4 + $0x90] sm:$0xff] %vm2634_vm1, %v2614_v4  ;;  %v1855_v32 = vadd.f32 %v1761_v20, %v1475_v34  ;;  %v6023_v34 = vld [vmem:[#allocation7_spill] sm:$0xff] }
 0x5dc   :  { %2806 = vst.msk [vmem:[%s5789_s4 + $0x90] sm:$0xff] %vm2787_vm2, %v6012_v43  ;;  %v6024_v43 = vld [vmem:[#allocation9_spill] sm:$0xff] }
 0x5dd   :  { %v2235_v39 = vadd.f32 %v5409_v18, %v1855_v32 }
 0x5de   :  { %v5559_v57 = vpop.permute.xlu0 %2156  ;;  %v2521_v15 = vpop.permute.xlu1 %2520 }
 0x5df   :  { %v2615_v19 = vadd.f32 %v2521_v15, %v2235_v39  ;;  %v6025_v15 = vld [vmem:[#allocation76_spill] sm:$0xff] }
 0x5e0   :  { %v1481_v30 = vmul.f32 %v5066_v1, %v6025_v15  ;;  %v6027_v1 = vld [vmem:[#allocation17_spill] sm:$0xff] }
 0x5e1   :  { %2654 = vst.msk [vmem:[%s5789_s4 + $0x98] sm:$0xff] %vm2634_vm1, %v2615_v19 }
 0x5e2   :  { %2807 = vst.msk [vmem:[%s5789_s4 + $0x98] sm:$0xff] %vm2787_vm2, %v6014_v63  ;;  %v5573_v18 = vpop.permute.xlu0 %1778  ;;  %v2143_v10 = vpop.permute.xlu1 %2142  ;;  %v6026_v63 = vld [vmem:[#allocation75_spill] sm:$0xff] }
 0x5e3   :  { %v2236_v54 = vadd.f32 %v2143_v10, %v1856_v21 }
 0x5e5   :  { %v2616_v58 = vadd.f32 %v5434_v53, %v2236_v54  ;;  %v1478_v53 = vmul.f32 %v5004_v2, %v6017_v23  ;;  %v6020_v2 = vld [vmem:[#allocation5_spill] sm:$0xff] }
 0x5e6   :  { %v1765_v8 = vpop.permute.xlu1 %1764  ;;  %v5582_v59 = vpop.permute.xlu0 %2538  ;;  %v1479_v46 = vmul.f32 %v6020_v2, %v6019_v16  ;;  %v6032_v16 = vld [vmem:[#allocation94_spill] sm:$0xff] }
 0x5e7   :  { %2655 = vst.msk [vmem:[%s5789_s4 + $0xa0] sm:$0xff] %vm2634_vm1, %v2616_v58  ;;  %v1857_v27 = vadd.f32 %v1765_v8, %v1477_v48  ;;  %v1858_v50 = vadd.f32 %v5466_v44, %v1478_v53  ;;  %v6028_v8 = vld [vmem:[#allocation16_spill] sm:$0xff]  ;;  %v6030_v53 = vld [vmem:[#allocation82_spill] sm:$0xff] }
 0x5e8   :  { %2808 = vst.msk [vmem:[%s5789_s4 + $0xa0] sm:$0xff] %vm2787_vm2, %v6016_v24  ;;  %v6029_v24 = vld [vmem:[#allocation84_spill] sm:$0xff] }
 0x5e9   :  { %v2237_v38 = vadd.f32 %v5449_v6, %v1857_v27 }
 0x5ea   :  { %v2525_v7 = vpop.permute.xlu1 %2524  ;;  %v5593_v29 = vpop.permute.xlu0 %2160 }
 0x5eb   :  { %v2617_v26 = vadd.f32 %v2525_v7, %v2237_v38 }
 0x5ed   :  { %2656 = vst.msk [vmem:[%s5789_s4 + $0xa8] sm:$0xff] %vm2634_vm1, %v2617_v26 }
 0x5ee   :  { %2809 = vst.msk [vmem:[%s5789_s4 + $0xa8] sm:$0xff] %vm2787_vm2, %v6018_v37  ;;  %v2147_v6 = vpop.permute.xlu1 %2146  ;;  %v1783_v0 = vpop.permute.xlu0 %1782 }
 0x5ef   :  { %v2238_v25 = vadd.f32 %v2147_v6, %v1858_v50 }
 0x5f1   :  { %v2618_v44 = vadd.f32 %v5474_v52, %v2238_v25  ;;  %v1480_v52 = vmul.f32 %v6023_v34, %v6022_v60 }
 0x5f2   :  { %v1769_v40 = vpop.permute.xlu1 %1768  ;;  %v2543_v32 = vpop.permute.xlu0 %2542 }
 0x5f3   :  { %2657 = vst.msk [vmem:[%s5789_s4 + $0xb0] sm:$0xff] %vm2634_vm1, %v2618_v44  ;;  %v1859_v9 = vadd.f32 %v1769_v40, %v1479_v46  ;;  %v1860_v20 = vadd.f32 %v5504_v35, %v1480_v52  ;;  %v6033_v46 = vld [vmem:[#allocation12_spill] sm:$0xff] }
 0x5f4   :  { %2810 = vst.msk [vmem:[%s5789_s4 + $0xb0] sm:$0xff] %vm2787_vm2, %v6021_v42  ;;  %v6034_v42 = vld [vmem:[#allocation88_spill] sm:$0xff] }
 0x5f5   :  { %v2239_v55 = vadd.f32 %v5489_v41, %v1859_v9 }
 0x5f6   :  { %v2529_v61 = vpop.permute.xlu1 %2528  ;;  %v2165_v19 = vpop.permute.xlu0 %2164 }
 0x5f7   :  { %v2619_v4 = vadd.f32 %v2529_v61, %v2239_v55 }
 0x5f9   :  { %2658 = vst.msk [vmem:[%s5789_s4 + $0xb8] sm:$0xff] %vm2634_vm1, %v2619_v4  ;;  %v6036_v4 = vld [vmem:[#allocation32_spill] sm:$0xff] }
 0x5fa   :  { %2811 = vst.msk [vmem:[%s5789_s4 + $0xb8] sm:$0xff] %vm2787_vm2, %v6024_v43  ;;  %v2151_v41 = vpop.permute.xlu1 %2150  ;;  %v1787_v58 = vpop.permute.xlu0 %1786  ;;  %v6037_v43 = vld [vmem:[#allocation93_spill] sm:$0xff] }
 0x5fb   :  { %v2240_v39 = vadd.f32 %v2151_v41, %v1860_v20  ;;  %v1487_v41 = vmul.f32 %v5194_v31, %v6037_v43 }
 0x5fd   :  { %v2620_v49 = vadd.f32 %v5513_v22, %v2240_v39  ;;  %v1482_v22 = vmul.f32 %v5087_v45, %v6027_v1  ;;  %v1483_v45 = vmul.f32 %v5111_v3, %v6029_v24  ;;  %v6031_v3 = vld [vmem:[#allocation96_spill] sm:$0xff] }
 0x5fe   :  { %v1773_v35 = vpop.permute.xlu1 %1772  ;;  %v2547_v7 = vpop.permute.xlu0 %2546 }
 0x5ff   :  { %2659 = vst.msk [vmem:[%s5789_s4 + $0xc0] sm:$0xff] %vm2634_vm1, %v2620_v49  ;;  %v1861_v21 = vadd.f32 %v1773_v35, %v1481_v30  ;;  %v1862_v48 = vadd.f32 %v5542_v11, %v1482_v22  ;;  %v6038_v30 = vld [vmem:[#allocation91_spill] sm:$0xff]  ;;  %v6041_v22 = vld [vmem:[#allocation28_spill] sm:$0xff] }
 0x600   :  { %2812 = vst.msk [vmem:[%s5789_s4 + $0xc0] sm:$0xff] %vm2787_vm2, %v6026_v63 }
 0x601   :  { %v2241_v10 = vadd.f32 %v5526_v56, %v1861_v21  ;;  %v6039_v21 = vld [vmem:[#allocation44_spill] sm:$0xff] }
 0x602   :  { %v2533_v54 = vpop.permute.xlu1 %2532  ;;  %v2169_v25 = vpop.permute.xlu0 %2168  ;;  %v1488_v31 = vmul.f32 %v5206_v33, %v6039_v21 }
 0x603   :  { %v2621_v47 = vadd.f32 %v2533_v54, %v2241_v10  ;;  %v6040_v54 = vld [vmem:[#allocation101_spill] sm:$0xff] }
 0x604   :  { %v1868_v63 = vadd.f32 %v1787_v58, %v1488_v31 }
 0x605   :  { %2660 = vst.msk [vmem:[%s5789_s4 + $0xc8] sm:$0xff] %vm2634_vm1, %v2621_v47  ;;  %v1489_v47 = vmul.f32 %v5229_v62, %v6041_v22 }
 0x606   :  { %2813 = vst.msk [vmem:[%s5789_s4 + $0xc8] sm:$0xff] %vm2787_vm2, %v6028_v8  ;;  %v2155_v56 = vpop.permute.xlu1 %2154  ;;  %v1791_v40 = vpop.permute.xlu0 %1790 }
 0x607   :  { %v2242_v27 = vadd.f32 %v2155_v56, %v1862_v48  ;;  %v6042_v56 = vld [vmem:[#allocation97_spill] sm:$0xff] }
 0x609   :  { %v2622_v38 = vadd.f32 %v5547_v13, %v2242_v27  ;;  %v1484_v13 = vmul.f32 %v5122_v17, %v6031_v3  ;;  %v1485_v17 = vmul.f32 %v5154_v14, %v6033_v46  ;;  %v6035_v14 = vld [vmem:[#allocation35_spill] sm:$0xff] }
 0x60a   :  { %v1777_v11 = vpop.permute.xlu1 %1776  ;;  %v2551_v52 = vpop.permute.xlu0 %2550 }
 0x60b   :  { %2661 = vst.msk [vmem:[%s5789_s4 + $0xd0] sm:$0xff] %vm2634_vm1, %v2622_v38  ;;  %v1863_v23 = vadd.f32 %v1777_v11, %v1483_v45  ;;  %v1864_v6 = vadd.f32 %v5573_v18, %v1484_v13  ;;  %v6043_v45 = vld [vmem:[#allocation6_spill] sm:$0xff] }
 0x60c   :  { %2814 = vst.msk [vmem:[%s5789_s4 + $0xd0] sm:$0xff] %vm2787_vm2, %v6030_v53  ;;  %v1490_v62 = vmul.f32 %v5253_v51, %v6043_v45 }
 0x60d   :  { %v2243_v26 = vadd.f32 %v5559_v57, %v1863_v23  ;;  %v6044_v23 = vld [vmem:[#allocation53_spill] sm:$0xff] }
 0x60e   :  { %v2537_v50 = vpop.permute.xlu1 %2536  ;;  %v1870_v11 = vadd.f32 %v1791_v40, %v1490_v62 }
 0x60f   :  { %v2623_v37 = vadd.f32 %v2537_v50, %v2243_v26  ;;  %v6045_v50 = vld [vmem:[#allocation41_spill] sm:$0xff] }
 0x610   :  { %v1491_v3 = vmul.f32 %v5274_v12, %v6045_v50 }
 0x611   :  { %2662 = vst.msk [vmem:[%s5789_s4 + $0xd8] sm:$0xff] %vm2634_vm1, %v2623_v37 }
 0x612   :  { %2815 = vst.msk [vmem:[%s5789_s4 + $0xd8] sm:$0xff] %vm2787_vm2, %v6032_v16  ;;  %v2159_v57 = vpop.permute.xlu1 %2158 }
 0x613   :  { %v2244_v2 = vadd.f32 %v2159_v57, %v1864_v6  ;;  %v6046_v57 = vld [vmem:[#allocation59_spill] sm:$0xff] }
 0x615   :  { %v2624_v44 = vadd.f32 %v5582_v59, %v2244_v2  ;;  %v1486_v59 = vmul.f32 %v5165_v36, %v6035_v14  ;;  %v1492_v2 = vmul.f32 %v5296_v5, %v6046_v57 }
 0x616   :  { %v1781_v18 = vpop.permute.xlu1 %1780 }
 0x617   :  { %2663 = vst.msk [vmem:[%s5789_s4 + $0xe0] sm:$0xff] %vm2634_vm1, %v2624_v44  ;;  %v1865_v9 = vadd.f32 %v1781_v18, %v1485_v17  ;;  %v1866_v34 = vadd.f32 %v1783_v0, %v1486_v59  ;;  %v2173_v0 = vpop.permute.xlu0 %2172 }
 0x618   :  { %2816 = vst.msk [vmem:[%s5789_s4 + $0xe0] sm:$0xff] %vm2787_vm2, %v6034_v42 }
 0x619   :  { %v2245_v55 = vadd.f32 %v5593_v29, %v1865_v9  ;;  %v6047_v9 = vld [vmem:[#allocation56_spill] sm:$0xff] }
 0x61a   :  { %v2541_v61 = vpop.permute.xlu1 %2540  ;;  %v1493_v42 = vmul.f32 %v5327_v28, %v6047_v9 }
 0x61b   :  { %v2625_v60 = vadd.f32 %v2541_v61, %v2245_v55  ;;  %v1795_v10 = vpop.permute.xlu0 %1794 }
 0x61c   :  { %v1872_v46 = vadd.f32 %v1795_v10, %v1492_v2 }
 0x61d   :  { %2664 = vst.msk [vmem:[%s5789_s4 + $0xe8] sm:$0xff] %vm2634_vm1, %v2625_v60 }
 0x61e   :  { %2817 = vst.msk [vmem:[%s5789_s4 + $0xe8] sm:$0xff] %vm2787_vm2, %v6036_v4  ;;  %v2163_v20 = vpop.permute.xlu1 %2162 }
 0x61f   :  { %v2246_v29 = vadd.f32 %v2163_v20, %v1866_v34  ;;  %v2555_v58 = vpop.permute.xlu0 %2554 }
 0x621   :  { %v2626_v36 = vadd.f32 %v2543_v32, %v2246_v29 }
 0x622   :  { %v1785_v39 = vpop.permute.xlu1 %1784 }
 0x623   :  { %2665 = vst.msk [vmem:[%s5789_s4 + $0xf0] sm:$0xff] %vm2634_vm1, %v2626_v36  ;;  %v1867_v15 = vadd.f32 %v1785_v39, %v1487_v41 }
 0x624   :  { %2818 = vst.msk [vmem:[%s5789_s4 + $0xf0] sm:$0xff] %vm2787_vm2, %v6038_v30 }
 0x625   :  { %v2247_v49 = vadd.f32 %v2165_v19, %v1867_v15 }
 0x626   :  { %v2545_v35 = vpop.permute.xlu1 %2544 }
 0x627   :  { %v2627_v32 = vadd.f32 %v2545_v35, %v2247_v49 }
 0x629   :  { %2666 = vst.msk [vmem:[%s5789_s4 + $0xf8] sm:$0xff] %vm2634_vm1, %v2627_v32 }
 0x62a   :  { %2819 = vst.msk [vmem:[%s5789_s4 + $0xf8] sm:$0xff] %vm2787_vm2, %v6040_v54  ;;  %v2167_v1 = vpop.permute.xlu1 %2166 }
 0x62b   :  { %v2248_v19 = vadd.f32 %v2167_v1, %v1868_v63 }
 0x62d   :  { %v2628_v33 = vadd.f32 %v2547_v7, %v2248_v19  ;;  %v2177_v7 = vpop.permute.xlu0 %2176 }
 0x62e   :  { %v1789_v48 = vpop.permute.xlu1 %1788 }
 0x62f   :  { %2667 = vst.msk [vmem:[%s5789_s4 + $0x100] sm:$0xff] %vm2634_vm1, %v2628_v33  ;;  %v1869_v8 = vadd.f32 %v1789_v48, %v1489_v47 }
 0x630   :  { %2820 = vst.msk [vmem:[%s5789_s4 + $0x100] sm:$0xff] %vm2787_vm2, %v6042_v56 }
 0x631   :  { %v2249_v27 = vadd.f32 %v2169_v25, %v1869_v8  ;;  %v2742_v37 = vpop.permute.xlu0 %2741 }
 0x632   :  { %v2549_v24 = vpop.permute.xlu1 %2548 }
 0x633   :  { %v2629_v38 = vadd.f32 %v2549_v24, %v2249_v27 }
 0x635   :  { %2668 = vst.msk [vmem:[%s5789_s4 + $0x108] sm:$0xff] %vm2634_vm1, %v2629_v38  ;;  %v2746_v55 = vpop.permute.xlu0 %2745 }
 0x636   :  { %2821 = vst.msk [vmem:[%s5789_s4 + $0x108] sm:$0xff] %vm2787_vm2, %v6044_v23  ;;  %v2171_v53 = vpop.permute.xlu1 %2170 }
 0x637   :  { %v2250_v26 = vadd.f32 %v2171_v53, %v1870_v11 }
 0x639   :  { %v2630_v51 = vadd.f32 %v2551_v52, %v2250_v26 }
 0x63a   :  { %v1793_v13 = vpop.permute.xlu1 %1792 }
 0x63b   :  { %2669 = vst.msk [vmem:[%s5789_s4 + $0x110] sm:$0xff] %vm2634_vm1, %v2630_v51  ;;  %v1871_v6 = vadd.f32 %v1793_v13, %v1491_v3 }
 0x63c   :  { %2822 = vst.msk [vmem:[%s5789_s4 + $0x110] sm:$0xff] %vm2787_vm2, %v2742_v37 }
 0x63d   :  { %v2251_v25 = vadd.f32 %v2173_v0, %v1871_v6 }
 0x63e   :  { %v2553_v16 = vpop.permute.xlu1 %2552 }
 0x63f   :  { %v2631_v12 = vadd.f32 %v2553_v16, %v2251_v25 }
 0x641   :  { %2670 = vst.msk [vmem:[%s5789_s4 + $0x118] sm:$0xff] %vm2634_vm1, %v2631_v12 }
 0x642   :  { %v2175_v17 = vpop.permute.xlu1 %2174 }
 0x643   :  { %v2252_v44 = vadd.f32 %v2175_v17, %v1872_v46 }
 0x645   :  { %v2632_v18 = vadd.f32 %v2555_v58, %v2252_v44 }
 0x646   :  { %v1797_v40 = vpop.permute.xlu1 %1796 }
 0x647   :  { %2671 = vst.msk [vmem:[%s5789_s4 + $0x120] sm:$0xff] %vm2634_vm1, %v2632_v18  ;;  %v1873_v5 = vadd.f32 %v1797_v40, %v1493_v42 }
 0x648   :  { %2824 = vst.msk [vmem:[%s5789_s4 + $0x120] sm:$0xff] %vm2787_vm2, %v2746_v55 }
 0x649   :  { %v2253_v14 = vadd.f32 %v2177_v7, %v1873_v5 }
 0x64a   :  { %v2744_v61 = vpop.permute.xlu1 %2743 }
 0x64b   :  { %2823 = vst.msk [vmem:[%s5789_s4 + $0x118] sm:$0xff] %vm2787_vm2, %v2744_v61 }
 0x64e   :  { %v2557_v28 = vpop.permute.xlu1 %2556 }
 0x64f   :  { %v2633_v59 = vadd.f32 %v2557_v28, %v2253_v14 }
 0x651   :  { %2672 = vst.msk [vmem:[%s5789_s4 + $0x128] sm:$0xff] %vm2634_vm1, %v2633_v59 }
 0x652   :  { %v2748_v60 = vpop.permute.xlu1 %2747 }
 0x653   :  { %2825 = vst.msk [vmem:[%s5789_s4 + $0x128] sm:$0xff] %vm2787_vm2, %v2748_v60 }
 0x654   :  { %2830 = vsyncpa [#allocation3], 1 }

</bundles_post_ra>
